<compile_context>
chip_gen: v5e
topology: v5e:2x2
jax: 0.10.0
libtpu: 0.0.40
codegen_flags: <defaults>
</compile_context>

<pallas_src>
import jax
import jax.numpy as jnp
from jax.experimental import pallas as pl
from jax.experimental.pallas import tpu as pltpu


def _round_up(x, m):
    return ((x + m - 1) // m) * m


def _pow2_floor(n):
    return 1 << (max(1, n).bit_length() - 1)


# ----------------------------- kernel builder ------------------------------- #

def _build_kernel(CIN, L, COUT, K1, K2, K3, Bsub):
    # Layer geometry (valid conv, MaxPool1d(10, 5)).
    L1 = L - K1 + 1
    P1 = (L1 - 10) // 5 + 1
    L2 = P1 - K2 + 1
    P2 = (L2 - 10) // 5 + 1
    L3 = P2 - K3 + 1
    P3 = (L3 - 10) // 5 + 1

    LC1P = _round_up(L1, 128)          # per-item lane stride, layer-1 im2col
    LC23P = _round_up(L2, 128)         # per-item lane stride, layer-2/3 im2col
    CP23 = _round_up(COUT, 8)          # 8-sublane-aligned per-tap stride (layers 2/3)
    KC1 = K1 * CIN                     # layer-1 contraction depth (dense)
    KC23 = max(K2, K3) * CP23          # layer-2/3 im2col scratch rows

    # Items per MXU call: target ~512 lanes per matmul.
    G1 = min(Bsub, max(1, 512 // LC1P))
    G23 = min(Bsub, max(1, 512 // LC23P))

    TP = 32            # pooled-row chunk for the batched maxpool (bounds live vregs)
    TW = 128           # column chunk for the transposed staging of the conv output

    def stage_and_pool(cols_ref, w_ref, b_ref, kc, lcp, lc, G, mp_ref, write_pool):
        """Conv matmul (+bias +ReLU) per item-group, transposed staging, batched pool."""
        P = (lc - 10) // 5 + 1
        # --- conv(+folded BN) + ReLU: one MXU matmul per group of G items ---
        for g in range(Bsub // G):
            n0 = g * G * lcp
            cols = cols_ref[0:kc, n0:n0 + G * lcp]                     # (kc, G*lcp) bf16
            y = jnp.dot(w_ref[...], cols, preferred_element_type=jnp.float32)
            y = jnp.maximum(y + b_ref[...], 0.0)                       # (COUT, G*lcp) f32
            # stage y.T per item into mp_ref (items side by side along lanes)
            for gi in range(G):
                i = g * G + gi
                for c0 in range(0, lc, TW):
                    cw = min(TW, lc - c0)
                    mp_ref[c0:c0 + cw, i * COUT:(i + 1) * COUT] = \
                        y[:, gi * lcp + c0:gi * lcp + c0 + cw].T
        # --- MaxPool1d(10, 5) on all Bsub items at once (lane-dense strided reads) ---
        for t0 in range(0, P, TP):
            tp = min(TP, P - t0)
            acc = mp_ref[pl.ds(5 * t0, tp, stride=5), :]
            for k in range(1, 10):
                acc = jnp.maximum(acc, mp_ref[pl.ds(5 * t0 + k, tp, stride=5), :])
            write_pool(t0, tp, acc)                                    # (tp, Bsub*COUT)
        return P

    def kernel(x_ref, w1_ref, b1_ref, w2_ref, b2_ref, w3_ref, b3_ref,
               fc1w_ref, fc1b_ref, fc2w_ref, fc2b_ref,
               out_ref, cols1_ref, cols23_ref, mp_ref, act_ref, feat_ref):

        def write_act(t0, tp, v):
            act_ref[t0:t0 + tp, :] = v

        # ---------------- layer 1: conv1 (+BN folded) + ReLU + maxpool ----------------
        # im2col: K1 shifted windows of each item's (CIN, L) input, bf16, items packed
        # along lanes with a 128-aligned per-item stride.
        for i in range(Bsub):
            a = x_ref[i].astype(jnp.bfloat16)                          # (CIN, L)
            for k in range(K1):
                cols1_ref[k * CIN:(k + 1) * CIN, i * LC1P:i * LC1P + L1] = a[:, k:k + L1]
        stage_and_pool(cols1_ref, w1_ref, b1_ref, KC1, LC1P, L1, G1, mp_ref, write_act)

        # ---------------- layers 2 & 3: conv (+BN folded) + ReLU + maxpool ------------
        # Zero the 8-alignment pad rows of the shared layer-2/3 im2col region once per
        # step (the valid per-tap stores below never touch them; the folded weights are
        # zero there too, so contraction over those rows contributes nothing).
        if CP23 > COUT:
            zpad = jnp.zeros((CP23 - COUT, Bsub * LC23P), jnp.bfloat16)
            for k in range(max(K2, K3)):
                cols23_ref[k * CP23 + COUT:(k + 1) * CP23, :] = zpad

        def conv23(lin, K, w_ref, b_ref):
            lc = lin - K + 1
            for i in range(Bsub):
                # previous layer's pooled output (position-major) -> channel-major bf16
                a = act_ref[0:lin, i * COUT:(i + 1) * COUT].T.astype(jnp.bfloat16)
                for k in range(K):
                    cols23_ref[k * CP23:k * CP23 + COUT,
                               i * LC23P:i * LC23P + lc] = a[:, k:k + lc]
            return stage_and_pool(cols23_ref, w_ref, b_ref, K * CP23, LC23P, lc, G23,
                                  mp_ref, write_act)

        conv23(P1, K2, w2_ref, b2_ref)
        conv23(P2, K3, w3_ref, b3_ref)

        # ---------------- AdaptiveAvgPool1d(1): sum * (1/P3) per item -----------------
        inv_p3 = 1.0 / float(P3)
        for i in range(Bsub):
            v = act_ref[0:P3, i * COUT:(i + 1) * COUT]                 # (P3, COUT)
            feat_ref[i:i + 1, :] = jnp.sum(v, axis=0, keepdims=True) * inv_p3

        # ---------------- FC1 -> (dropout: identity in eval) -> FC2 -------------------
        feat = feat_ref[...].astype(jnp.bfloat16)                      # (Bsub, COUT)
        z = jnp.dot(feat, fc1w_ref[...], preferred_element_type=jnp.float32) + fc1b_ref[...]
        # TODO(synk): nn.Dropout(p=0.4) is identity in eval mode; no RNG applied.
        z = jnp.dot(z.astype(jnp.bfloat16), fc2w_ref[...],
                    preferred_element_type=jnp.float32) + fc2b_ref[...]
        out_ref[...] = z                                               # (Bsub, NCP) f32

    dims = dict(L1=L1, P1=P1, L2=L2, P2=P2, L3=L3, P3=P3,
                LC1P=LC1P, LC23P=LC23P, CP23=CP23, KC1=KC1, KC23=KC23)
    return kernel, dims


# ----------------------------- wrapper -------------------------------------- #

def net2_forward(params, x, block_b=16):
    B, CIN, L = x.shape
    COUT = params["w1"].shape[0]
    K1, K2, K3 = params["w1"].shape[2], params["w2"].shape[2], params["w3"].shape[2]
    NC = params["fc2_w"].shape[0]
    NCP = _round_up(max(NC, 128), 128)          # lane-dense output block
    assert params["w2"].shape[0] == COUT and params["w3"].shape[0] == COUT

    # >=2 grid steps whenever B>=2 (v7x megacore); power-of-two Bsub so groups tile.
    Bsub = _pow2_floor(max(1, min(block_b, -(-B // 2))))
    n_blocks = -(-B // Bsub)
    Bpad = n_blocks * Bsub

    kernel, d = _build_kernel(CIN, L, COUT, K1, K2, K3, Bsub)
    assert d["L3"] >= 10, "input length too short for Net2"

    eps = 1e-5
    CP23 = d["CP23"]

    def fold_bn(w, b, g, beta, cin_pad):
        # Eval-mode BN (running_mean=0, running_var=1) folded into conv weight/bias.
        # TODO(synk): fold real running_mean/running_var here for a trained checkpoint.
        scale = g / jnp.sqrt(1.0 + eps)
        wt = (w * scale[:, None, None]).transpose(0, 2, 1)             # (Cout, K, Cin)
        cin = wt.shape[2]
        if cin_pad > cin:
            wt = jnp.pad(wt, ((0, 0), (0, 0), (0, cin_pad - cin)))     # zero pad rows
        w2d = wt.reshape(w.shape[0], -1)
        return w2d.astype(jnp.bfloat16), ((b * scale + beta)[:, None]).astype(jnp.float32)

    w1, b1 = fold_bn(params["w1"], params["b1"], params["bn1_g"], params["bn1_b"], CIN)
    w2, b2 = fold_bn(params["w2"], params["b2"], params["bn2_g"], params["bn2_b"], CP23)
    w3, b3 = fold_bn(params["w3"], params["b3"], params["bn3_g"], params["bn3_b"], CP23)

    fc1w = params["fc1_w"].T.astype(jnp.bfloat16)                      # (COUT, 40)
    fc1b = params["fc1_b"][None, :].astype(jnp.float32)                # (1, 40)
    fc2w = jnp.zeros((params["fc2_w"].shape[1], NCP), jnp.bfloat16)
    fc2w = fc2w.at[:, :NC].set(params["fc2_w"].T.astype(jnp.bfloat16))  # (40, NCP)
    fc2b = jnp.zeros((1, NCP), jnp.float32).at[0, :NC].set(params["fc2_b"])

    xp = x if Bpad == B else jnp.pad(x, ((0, Bpad - B), (0, 0), (0, 0)))
    xr = xp.reshape(n_blocks, Bsub, CIN, L)

    consts = [w1, b1, w2, b2, w3, b3, fc1w, fc1b, fc2w, fc2b]

    in_specs = [pl.BlockSpec((None, Bsub, CIN, L), lambda b: (b, 0, 0, 0))] + \
               [pl.BlockSpec(c.shape, lambda b: (0, 0)) for c in consts]

    out = pl.pallas_call(
        kernel,
        out_shape=jax.ShapeDtypeStruct((n_blocks, Bsub, NCP), jnp.float32),
        grid_spec=pltpu.PrefetchScalarGridSpec(
            num_scalar_prefetch=0,
            grid=(n_blocks,),
            in_specs=in_specs,
            out_specs=pl.BlockSpec((None, Bsub, NCP), lambda b: (b, 0, 0)),
            scratch_shapes=[
                pltpu.VMEM((d["KC1"], Bsub * d["LC1P"]), jnp.bfloat16),    # layer-1 im2col
                pltpu.VMEM((d["KC23"], Bsub * d["LC23P"]), jnp.bfloat16),  # layer-2/3 im2col
                pltpu.VMEM((_round_up(d["L1"], 8), Bsub * COUT), jnp.float32),  # y.T staging
                pltpu.VMEM((_round_up(d["P1"], 8), Bsub * COUT), jnp.float32),  # pooled acts
                pltpu.VMEM((Bsub, COUT), jnp.float32),                          # features
            ],
        ),
        compiler_params=pltpu.CompilerParams(dimension_semantics=("parallel",)),
    )(xr, *consts)

    return out.reshape(Bpad, NCP)[:B, :NC]


# ----------------------------- params / reference --------------------------- #

def init_params(key, in_channels, num_classes):
    ks = jax.random.split(key, 16)

    def u(k, shape, s=0.1):
        return jax.random.uniform(k, shape, jnp.float32, -s, s)

    return {
        "w1": u(ks[0], (20, in_channels, 20)), "b1": u(ks[1], (20,)),
        "w2": u(ks[2], (20, 20, 10)),          "b2": u(ks[3], (20,)),
        "w3": u(ks[4], (20, 20, 10)),          "b3": u(ks[5], (20,)),
        "bn1_g": 1.0 + u(ks[6], (20,)),  "bn1_b": u(ks[7], (20,)),
        "bn2_g": 1.0 + u(ks[8], (20,)),  "bn2_b": u(ks[9], (20,)),
        "bn3_g": 1.0 + u(ks[10], (20,)), "bn3_b": u(ks[11], (20,)),
        "fc1_w": u(ks[12], (40, 20)),               "fc1_b": u(ks[13], (40,)),
        "fc2_w": u(ks[14], (num_classes, 40)),      "fc2_b": u(ks[15], (num_classes,)),
    }


def ref_forward(params, x):
    """Pure-JAX reference (same eval-mode BN / identity-dropout semantics)."""
    eps = 1e-5

    def conv1d(y, w, bias):                        # y: (B,Cin,L), w: (Cout,Cin,K)
        K = w.shape[-1]
        Lout = y.shape[-1] - K + 1
        out = jnp.zeros((y.shape[0], w.shape[0], Lout), jnp.float32)
        for k in range(K):
            out = out + jnp.einsum("oi,bil->bol", w[:, :, k], y[:, :, k:k + Lout])
        return out + bias[None, :, None]

    def bn_relu(y, g, beta):
        return jnp.maximum(y * (g / jnp.sqrt(1.0 + eps))[None, :, None]
                           + beta[None, :, None], 0.0)

    def maxpool(y):
        L = y.shape[-1]
        P = (L - 10) // 5 + 1
        return jnp.stack([y[:, :, 5 * t:5 * t + 10].max(axis=-1) for t in range(P)],
                         axis=-1)

    y = maxpool(bn_relu(conv1d(x, params["w1"], params["b1"]), params["bn1_g"], params["bn1_b"]))
    y = maxpool(bn_relu(conv1d(y, params["w2"], params["b2"]), params["bn2_g"], params["bn2_b"]))
    y = maxpool(bn_relu(conv1d(y, params["w3"], params["b3"]), params["bn3_g"], params["bn3_b"]))
    feat = y.mean(axis=-1)                          # global avg pool + squeeze
    z = feat @ params["fc1_w"].T + params["fc1_b"]
    z = z @ params["fc2_w"].T + params["fc2_b"]
    return z


# ----------------------------- main ----------------------------------------- #

if __name__ == "__main__":
    B, CIN, L, NC = 2, 4, 600, 2                    # smallest L that keeps all 3 stages valid
    key = jax.random.PRNGKey(0)
    kx, kp = jax.random.split(key)
    x = jax.random.normal(kx, (B, CIN, L), jnp.float32)
    params = init_params(kp, CIN, NC)

    out = jax.jit(net2_forward)(params, x)
    out = jax.block_until_ready(out)

    ref = ref_forward(params, x)
    assert out.shape == (B, NC) and out.dtype == jnp.float32
    assert bool(jnp.all(jnp.isfinite(out)))
    err = float(jnp.max(jnp.abs(out - ref)))
    assert bool(jnp.allclose(out, ref, rtol=5e-2, atol=2e-2)), f"mismatch: {err}"
    print("KERNEL_OK")
</pallas_src>

<mosaic_0001>
module attributes {stable_mosaic.version = 11 : i64} {
  func.func @kernel(%arg0: i32, %arg1: memref<1x1x4x600xf32, #tpu.memory_space<vmem>>, %arg2: memref<20x80xbf16, #tpu.memory_space<vmem>>, %arg3: memref<20x1xf32, #tpu.memory_space<vmem>>, %arg4: memref<20x240xbf16, #tpu.memory_space<vmem>>, %arg5: memref<20x1xf32, #tpu.memory_space<vmem>>, %arg6: memref<20x240xbf16, #tpu.memory_space<vmem>>, %arg7: memref<20x1xf32, #tpu.memory_space<vmem>>, %arg8: memref<20x40xbf16, #tpu.memory_space<vmem>>, %arg9: memref<1x40xf32, #tpu.memory_space<vmem>>, %arg10: memref<40x128xbf16, #tpu.memory_space<vmem>>, %arg11: memref<1x128xf32, #tpu.memory_space<vmem>>, %arg12: memref<1x1x128xf32, #tpu.memory_space<vmem>>, %arg13: memref<80x640xbf16, #tpu.memory_space<vmem>>, %arg14: memref<240x128xbf16, #tpu.memory_space<vmem>>, %arg15: memref<584x20xf32, #tpu.memory_space<vmem>>, %arg16: memref<120x20xf32, #tpu.memory_space<vmem>>, %arg17: memref<1x20xf32, #tpu.memory_space<vmem>>) attributes {dimension_semantics = [#tpu.dimension_semantics<parallel>], iteration_bounds = array<i64: 2>, scalar_prefetch = 0 : i64, scratch_operands = 5 : i64, tpu.core_type = #tpu.core_type<tc>, window_params = [{transform_indices = @transform_0, window_bounds = array<i64: 1, 1, 4, 600>}, {pipeline_mode = #tpu.pipeline_mode<synchronous>, transform_indices = @transform_1, window_bounds = array<i64: 20, 80>}, {pipeline_mode = #tpu.pipeline_mode<synchronous>, transform_indices = @transform_2, window_bounds = array<i64: 20, 1>}, {pipeline_mode = #tpu.pipeline_mode<synchronous>, transform_indices = @transform_3, window_bounds = array<i64: 20, 240>}, {pipeline_mode = #tpu.pipeline_mode<synchronous>, transform_indices = @transform_4, window_bounds = array<i64: 20, 1>}, {pipeline_mode = #tpu.pipeline_mode<synchronous>, transform_indices = @transform_5, window_bounds = array<i64: 20, 240>}, {pipeline_mode = #tpu.pipeline_mode<synchronous>, transform_indices = @transform_6, window_bounds = array<i64: 20, 1>}, {pipeline_mode = #tpu.pipeline_mode<synchronous>, transform_indices = @transform_7, window_bounds = array<i64: 20, 40>}, {pipeline_mode = #tpu.pipeline_mode<synchronous>, transform_indices = @transform_8, window_bounds = array<i64: 1, 40>}, {pipeline_mode = #tpu.pipeline_mode<synchronous>, transform_indices = @transform_9, window_bounds = array<i64: 40, 128>}, {pipeline_mode = #tpu.pipeline_mode<synchronous>, transform_indices = @transform_10, window_bounds = array<i64: 1, 128>}, {transform_indices = @transform_11, window_bounds = array<i64: 1, 1, 128>}]} {
    %c0 = arith.constant 0 : index
    %c0_0 = arith.constant 0 : index
    %c0_1 = arith.constant 0 : index
    %c0_2 = arith.constant 0 : index
    %0 = vector.load %arg1[%c0, %c0_0, %c0_1, %c0_2] : memref<1x1x4x600xf32, #tpu.memory_space<vmem>>, vector<1x1x4x600xf32>
    %1 = vector.shape_cast %0 : vector<1x1x4x600xf32> to vector<4x600xf32>
    %2 = arith.truncf %1 : vector<4x600xf32> to vector<4x600xbf16>
    %3 = vector.extract_strided_slice %2 {offsets = [0, 0], sizes = [4, 581], strides = [1, 1]} : vector<4x600xbf16> to vector<4x581xbf16>
    %c0_3 = arith.constant 0 : index
    %c0_4 = arith.constant 0 : index
    %4 = vector.load %arg13[%c0_3, %c0_4] : memref<80x640xbf16, #tpu.memory_space<vmem>>, vector<4x581xbf16>
    tpu.vector_store %arg13[%c0_3, %c0_4], %3 {strides = array<i32>} : memref<80x640xbf16, #tpu.memory_space<vmem>>, vector<4x581xbf16>,
    %5 = vector.extract_strided_slice %2 {offsets = [0, 1], sizes = [4, 581], strides = [1, 1]} : vector<4x600xbf16> to vector<4x581xbf16>
    %c4 = arith.constant 4 : index
    %c0_5 = arith.constant 0 : index
    %6 = vector.load %arg13[%c4, %c0_5] : memref<80x640xbf16, #tpu.memory_space<vmem>>, vector<4x581xbf16>
    tpu.vector_store %arg13[%c4, %c0_5], %5 {strides = array<i32>} : memref<80x640xbf16, #tpu.memory_space<vmem>>, vector<4x581xbf16>,
    %7 = vector.extract_strided_slice %2 {offsets = [0, 2], sizes = [4, 581], strides = [1, 1]} : vector<4x600xbf16> to vector<4x581xbf16>
    %c8 = arith.constant 8 : index
    %c0_6 = arith.constant 0 : index
    %8 = vector.load %arg13[%c8, %c0_6] : memref<80x640xbf16, #tpu.memory_space<vmem>>, vector<4x581xbf16>
    tpu.vector_store %arg13[%c8, %c0_6], %7 {strides = array<i32>} : memref<80x640xbf16, #tpu.memory_space<vmem>>, vector<4x581xbf16>,
    %9 = vector.extract_strided_slice %2 {offsets = [0, 3], sizes = [4, 581], strides = [1, 1]} : vector<4x600xbf16> to vector<4x581xbf16>
    %c12 = arith.constant 12 : index
    %c0_7 = arith.constant 0 : index
    %10 = vector.load %arg13[%c12, %c0_7] : memref<80x640xbf16, #tpu.memory_space<vmem>>, vector<4x581xbf16>
    tpu.vector_store %arg13[%c12, %c0_7], %9 {strides = array<i32>} : memref<80x640xbf16, #tpu.memory_space<vmem>>, vector<4x581xbf16>,
    %11 = vector.extract_strided_slice %2 {offsets = [0, 4], sizes = [4, 581], strides = [1, 1]} : vector<4x600xbf16> to vector<4x581xbf16>
    %c16 = arith.constant 16 : index
    %c0_8 = arith.constant 0 : index
    %12 = vector.load %arg13[%c16, %c0_8] : memref<80x640xbf16, #tpu.memory_space<vmem>>, vector<4x581xbf16>
    tpu.vector_store %arg13[%c16, %c0_8], %11 {strides = array<i32>} : memref<80x640xbf16, #tpu.memory_space<vmem>>, vector<4x581xbf16>,
    %13 = vector.extract_strided_slice %2 {offsets = [0, 5], sizes = [4, 581], strides = [1, 1]} : vector<4x600xbf16> to vector<4x581xbf16>
    %c20 = arith.constant 20 : index
    %c0_9 = arith.constant 0 : index
    %14 = vector.load %arg13[%c20, %c0_9] : memref<80x640xbf16, #tpu.memory_space<vmem>>, vector<4x581xbf16>
    tpu.vector_store %arg13[%c20, %c0_9], %13 {strides = array<i32>} : memref<80x640xbf16, #tpu.memory_space<vmem>>, vector<4x581xbf16>,
    %15 = vector.extract_strided_slice %2 {offsets = [0, 6], sizes = [4, 581], strides = [1, 1]} : vector<4x600xbf16> to vector<4x581xbf16>
    %c24 = arith.constant 24 : index
    %c0_10 = arith.constant 0 : index
    %16 = vector.load %arg13[%c24, %c0_10] : memref<80x640xbf16, #tpu.memory_space<vmem>>, vector<4x581xbf16>
    tpu.vector_store %arg13[%c24, %c0_10], %15 {strides = array<i32>} : memref<80x640xbf16, #tpu.memory_space<vmem>>, vector<4x581xbf16>,
    %17 = vector.extract_strided_slice %2 {offsets = [0, 7], sizes = [4, 581], strides = [1, 1]} : vector<4x600xbf16> to vector<4x581xbf16>
    %c28 = arith.constant 28 : index
    %c0_11 = arith.constant 0 : index
    %18 = vector.load %arg13[%c28, %c0_11] : memref<80x640xbf16, #tpu.memory_space<vmem>>, vector<4x581xbf16>
    tpu.vector_store %arg13[%c28, %c0_11], %17 {strides = array<i32>} : memref<80x640xbf16, #tpu.memory_space<vmem>>, vector<4x581xbf16>,
    %19 = vector.extract_strided_slice %2 {offsets = [0, 8], sizes = [4, 581], strides = [1, 1]} : vector<4x600xbf16> to vector<4x581xbf16>
    %c32 = arith.constant 32 : index
    %c0_12 = arith.constant 0 : index
    %20 = vector.load %arg13[%c32, %c0_12] : memref<80x640xbf16, #tpu.memory_space<vmem>>, vector<4x581xbf16>
    tpu.vector_store %arg13[%c32, %c0_12], %19 {strides = array<i32>} : memref<80x640xbf16, #tpu.memory_space<vmem>>, vector<4x581xbf16>,
    %21 = vector.extract_strided_slice %2 {offsets = [0, 9], sizes = [4, 581], strides = [1, 1]} : vector<4x600xbf16> to vector<4x581xbf16>
    %c36 = arith.constant 36 : index
    %c0_13 = arith.constant 0 : index
    %22 = vector.load %arg13[%c36, %c0_13] : memref<80x640xbf16, #tpu.memory_space<vmem>>, vector<4x581xbf16>
    tpu.vector_store %arg13[%c36, %c0_13], %21 {strides = array<i32>} : memref<80x640xbf16, #tpu.memory_space<vmem>>, vector<4x581xbf16>,
    %23 = vector.extract_strided_slice %2 {offsets = [0, 10], sizes = [4, 581], strides = [1, 1]} : vector<4x600xbf16> to vector<4x581xbf16>
    %c40 = arith.constant 40 : index
    %c0_14 = arith.constant 0 : index
    %24 = vector.load %arg13[%c40, %c0_14] : memref<80x640xbf16, #tpu.memory_space<vmem>>, vector<4x581xbf16>
    tpu.vector_store %arg13[%c40, %c0_14], %23 {strides = array<i32>} : memref<80x640xbf16, #tpu.memory_space<vmem>>, vector<4x581xbf16>,
    %25 = vector.extract_strided_slice %2 {offsets = [0, 11], sizes = [4, 581], strides = [1, 1]} : vector<4x600xbf16> to vector<4x581xbf16>
    %c44 = arith.constant 44 : index
    %c0_15 = arith.constant 0 : index
    %26 = vector.load %arg13[%c44, %c0_15] : memref<80x640xbf16, #tpu.memory_space<vmem>>, vector<4x581xbf16>
    tpu.vector_store %arg13[%c44, %c0_15], %25 {strides = array<i32>} : memref<80x640xbf16, #tpu.memory_space<vmem>>, vector<4x581xbf16>,
    %27 = vector.extract_strided_slice %2 {offsets = [0, 12], sizes = [4, 581], strides = [1, 1]} : vector<4x600xbf16> to vector<4x581xbf16>
    %c48 = arith.constant 48 : index
    %c0_16 = arith.constant 0 : index
    %28 = vector.load %arg13[%c48, %c0_16] : memref<80x640xbf16, #tpu.memory_space<vmem>>, vector<4x581xbf16>
    tpu.vector_store %arg13[%c48, %c0_16], %27 {strides = array<i32>} : memref<80x640xbf16, #tpu.memory_space<vmem>>, vector<4x581xbf16>,
    %29 = vector.extract_strided_slice %2 {offsets = [0, 13], sizes = [4, 581], strides = [1, 1]} : vector<4x600xbf16> to vector<4x581xbf16>
    %c52 = arith.constant 52 : index
    %c0_17 = arith.constant 0 : index
    %30 = vector.load %arg13[%c52, %c0_17] : memref<80x640xbf16, #tpu.memory_space<vmem>>, vector<4x581xbf16>
    tpu.vector_store %arg13[%c52, %c0_17], %29 {strides = array<i32>} : memref<80x640xbf16, #tpu.memory_space<vmem>>, vector<4x581xbf16>,
    %31 = vector.extract_strided_slice %2 {offsets = [0, 14], sizes = [4, 581], strides = [1, 1]} : vector<4x600xbf16> to vector<4x581xbf16>
    %c56 = arith.constant 56 : index
    %c0_18 = arith.constant 0 : index
    %32 = vector.load %arg13[%c56, %c0_18] : memref<80x640xbf16, #tpu.memory_space<vmem>>, vector<4x581xbf16>
    tpu.vector_store %arg13[%c56, %c0_18], %31 {strides = array<i32>} : memref<80x640xbf16, #tpu.memory_space<vmem>>, vector<4x581xbf16>,
    %33 = vector.extract_strided_slice %2 {offsets = [0, 15], sizes = [4, 581], strides = [1, 1]} : vector<4x600xbf16> to vector<4x581xbf16>
    %c60 = arith.constant 60 : index
    %c0_19 = arith.constant 0 : index
    %34 = vector.load %arg13[%c60, %c0_19] : memref<80x640xbf16, #tpu.memory_space<vmem>>, vector<4x581xbf16>
    tpu.vector_store %arg13[%c60, %c0_19], %33 {strides = array<i32>} : memref<80x640xbf16, #tpu.memory_space<vmem>>, vector<4x581xbf16>,
    %35 = vector.extract_strided_slice %2 {offsets = [0, 16], sizes = [4, 581], strides = [1, 1]} : vector<4x600xbf16> to vector<4x581xbf16>
    %c64 = arith.constant 64 : index
    %c0_20 = arith.constant 0 : index
    %36 = vector.load %arg13[%c64, %c0_20] : memref<80x640xbf16, #tpu.memory_space<vmem>>, vector<4x581xbf16>
    tpu.vector_store %arg13[%c64, %c0_20], %35 {strides = array<i32>} : memref<80x640xbf16, #tpu.memory_space<vmem>>, vector<4x581xbf16>,
    %37 = vector.extract_strided_slice %2 {offsets = [0, 17], sizes = [4, 581], strides = [1, 1]} : vector<4x600xbf16> to vector<4x581xbf16>
    %c68 = arith.constant 68 : index
    %c0_21 = arith.constant 0 : index
    %38 = vector.load %arg13[%c68, %c0_21] : memref<80x640xbf16, #tpu.memory_space<vmem>>, vector<4x581xbf16>
    tpu.vector_store %arg13[%c68, %c0_21], %37 {strides = array<i32>} : memref<80x640xbf16, #tpu.memory_space<vmem>>, vector<4x581xbf16>,
    %39 = vector.extract_strided_slice %2 {offsets = [0, 18], sizes = [4, 581], strides = [1, 1]} : vector<4x600xbf16> to vector<4x581xbf16>
    %c72 = arith.constant 72 : index
    %c0_22 = arith.constant 0 : index
    %40 = vector.load %arg13[%c72, %c0_22] : memref<80x640xbf16, #tpu.memory_space<vmem>>, vector<4x581xbf16>
    tpu.vector_store %arg13[%c72, %c0_22], %39 {strides = array<i32>} : memref<80x640xbf16, #tpu.memory_space<vmem>>, vector<4x581xbf16>,
    %41 = vector.extract_strided_slice %2 {offsets = [0, 19], sizes = [4, 581], strides = [1, 1]} : vector<4x600xbf16> to vector<4x581xbf16>
    %c76 = arith.constant 76 : index
    %c0_23 = arith.constant 0 : index
    %42 = vector.load %arg13[%c76, %c0_23] : memref<80x640xbf16, #tpu.memory_space<vmem>>, vector<4x581xbf16>
    tpu.vector_store %arg13[%c76, %c0_23], %41 {strides = array<i32>} : memref<80x640xbf16, #tpu.memory_space<vmem>>, vector<4x581xbf16>,
    %c0_24 = arith.constant 0 : index
    %c0_25 = arith.constant 0 : index
    %43 = vector.load %arg13[%c0_24, %c0_25] : memref<80x640xbf16, #tpu.memory_space<vmem>>, vector<80x640xbf16>
    %c0_26 = arith.constant 0 : index
    %c0_27 = arith.constant 0 : index
    %44 = vector.load %arg2[%c0_26, %c0_27] : memref<20x80xbf16, #tpu.memory_space<vmem>>, vector<20x80xbf16>
    %cst = arith.constant dense<0.000000e+00> : vector<20x640xf32>
    %45 = tpu.matmul %44, %43, %cst {dimension_numbers = #tpu.dot_dimension_numbers<[1], [0], [0], [1], [0, 0, 1, 1], [], []>} : vector<20x80xbf16>, vector<80x640xbf16>, vector<20x640xf32> -> vector<20x640xf32>
    %c0_28 = arith.constant 0 : index
    %c0_29 = arith.constant 0 : index
    %46 = vector.load %arg3[%c0_28, %c0_29] : memref<20x1xf32, #tpu.memory_space<vmem>>, vector<20x1xf32>
    %47 = vector.broadcast %46 : vector<20x1xf32> to vector<20x640xf32>
    %48 = arith.addf %45, %47 : vector<20x640xf32>
    %cst_30 = arith.constant 0.000000e+00 : f32
    %49 = vector.broadcast %cst_30 : f32 to vector<20x640xf32>
    %50 = arith.maximumf %48, %49 : vector<20x640xf32>
    %51 = vector.extract_strided_slice %50 {offsets = [0, 0], sizes = [20, 128], strides = [1, 1]} : vector<20x640xf32> to vector<20x128xf32>
    %52 = tpu.transpose %51, [1, 0] : vector<20x128xf32> -> vector<128x20xf32>
    %c0_31 = arith.constant 0 : index
    %c0_32 = arith.constant 0 : index
    %53 = vector.load %arg15[%c0_31, %c0_32] : memref<584x20xf32, #tpu.memory_space<vmem>>, vector<128x20xf32>
    tpu.vector_store %arg15[%c0_31, %c0_32], %52 {strides = array<i32>} : memref<584x20xf32, #tpu.memory_space<vmem>>, vector<128x20xf32>,
    %54 = vector.extract_strided_slice %50 {offsets = [0, 128], sizes = [20, 128], strides = [1, 1]} : vector<20x640xf32> to vector<20x128xf32>
    %55 = tpu.transpose %54, [1, 0] : vector<20x128xf32> -> vector<128x20xf32>
    %c128 = arith.constant 128 : index
    %c0_33 = arith.constant 0 : index
    %56 = vector.load %arg15[%c128, %c0_33] : memref<584x20xf32, #tpu.memory_space<vmem>>, vector<128x20xf32>
    tpu.vector_store %arg15[%c128, %c0_33], %55 {strides = array<i32>} : memref<584x20xf32, #tpu.memory_space<vmem>>, vector<128x20xf32>,
    %57 = vector.extract_strided_slice %50 {offsets = [0, 256], sizes = [20, 128], strides = [1, 1]} : vector<20x640xf32> to vector<20x128xf32>
    %58 = tpu.transpose %57, [1, 0] : vector<20x128xf32> -> vector<128x20xf32>
    %c256 = arith.constant 256 : index
    %c0_34 = arith.constant 0 : index
    %59 = vector.load %arg15[%c256, %c0_34] : memref<584x20xf32, #tpu.memory_space<vmem>>, vector<128x20xf32>
    tpu.vector_store %arg15[%c256, %c0_34], %58 {strides = array<i32>} : memref<584x20xf32, #tpu.memory_space<vmem>>, vector<128x20xf32>,
    %60 = vector.extract_strided_slice %50 {offsets = [0, 384], sizes = [20, 128], strides = [1, 1]} : vector<20x640xf32> to vector<20x128xf32>
    %61 = tpu.transpose %60, [1, 0] : vector<20x128xf32> -> vector<128x20xf32>
    %c384 = arith.constant 384 : index
    %c0_35 = arith.constant 0 : index
    %62 = vector.load %arg15[%c384, %c0_35] : memref<584x20xf32, #tpu.memory_space<vmem>>, vector<128x20xf32>
    tpu.vector_store %arg15[%c384, %c0_35], %61 {strides = array<i32>} : memref<584x20xf32, #tpu.memory_space<vmem>>, vector<128x20xf32>,
    %63 = vector.extract_strided_slice %50 {offsets = [0, 512], sizes = [20, 69], strides = [1, 1]} : vector<20x640xf32> to vector<20x69xf32>
    %64 = tpu.transpose %63, [1, 0] : vector<20x69xf32> -> vector<69x20xf32>
    %c512 = arith.constant 512 : index
    %c0_36 = arith.constant 0 : index
    %65 = vector.load %arg15[%c512, %c0_36] : memref<584x20xf32, #tpu.memory_space<vmem>>, vector<69x20xf32>
    tpu.vector_store %arg15[%c512, %c0_36], %64 {strides = array<i32>} : memref<584x20xf32, #tpu.memory_space<vmem>>, vector<69x20xf32>,
    %c0_37 = arith.constant 0 : index
    %c0_38 = arith.constant 0 : index
    %66 = tpu.strided_load %arg15[%c0_37, %c0_38] {strides = array<i32: 5, 1>} : memref<584x20xf32, #tpu.memory_space<vmem>>, vector<32x20xf32>
    %c1 = arith.constant 1 : index
    %c0_39 = arith.constant 0 : index
    %67 = tpu.strided_load %arg15[%c1, %c0_39] {strides = array<i32: 5, 1>} : memref<584x20xf32, #tpu.memory_space<vmem>>, vector<32x20xf32>
    %68 = arith.maximumf %66, %67 : vector<32x20xf32>
    %c2 = arith.constant 2 : index
    %c0_40 = arith.constant 0 : index
    %69 = tpu.strided_load %arg15[%c2, %c0_40] {strides = array<i32: 5, 1>} : memref<584x20xf32, #tpu.memory_space<vmem>>, vector<32x20xf32>
    %70 = arith.maximumf %68, %69 : vector<32x20xf32>
    %c3 = arith.constant 3 : index
    %c0_41 = arith.constant 0 : index
    %71 = tpu.strided_load %arg15[%c3, %c0_41] {strides = array<i32: 5, 1>} : memref<584x20xf32, #tpu.memory_space<vmem>>, vector<32x20xf32>
    %72 = arith.maximumf %70, %71 : vector<32x20xf32>
    %c4_42 = arith.constant 4 : index
    %c0_43 = arith.constant 0 : index
    %73 = tpu.strided_load %arg15[%c4_42, %c0_43] {strides = array<i32: 5, 1>} : memref<584x20xf32, #tpu.memory_space<vmem>>, vector<32x20xf32>
    %74 = arith.maximumf %72, %73 : vector<32x20xf32>
    %c5 = arith.constant 5 : index
    %c0_44 = arith.constant 0 : index
    %75 = tpu.strided_load %arg15[%c5, %c0_44] {strides = array<i32: 5, 1>} : memref<584x20xf32, #tpu.memory_space<vmem>>, vector<32x20xf32>
    %76 = arith.maximumf %74, %75 : vector<32x20xf32>
    %c6 = arith.constant 6 : index
    %c0_45 = arith.constant 0 : index
    %77 = tpu.strided_load %arg15[%c6, %c0_45] {strides = array<i32: 5, 1>} : memref<584x20xf32, #tpu.memory_space<vmem>>, vector<32x20xf32>
    %78 = arith.maximumf %76, %77 : vector<32x20xf32>
    %c7 = arith.constant 7 : index
    %c0_46 = arith.constant 0 : index
    %79 = tpu.strided_load %arg15[%c7, %c0_46] {strides = array<i32: 5, 1>} : memref<584x20xf32, #tpu.memory_space<vmem>>, vector<32x20xf32>
    %80 = arith.maximumf %78, %79 : vector<32x20xf32>
    %c8_47 = arith.constant 8 : index
    %c0_48 = arith.constant 0 : index
    %81 = tpu.strided_load %arg15[%c8_47, %c0_48] {strides = array<i32: 5, 1>} : memref<584x20xf32, #tpu.memory_space<vmem>>, vector<32x20xf32>
    %82 = arith.maximumf %80, %81 : vector<32x20xf32>
    %c9 = arith.constant 9 : index
    %c0_49 = arith.constant 0 : index
    %83 = tpu.strided_load %arg15[%c9, %c0_49] {strides = array<i32: 5, 1>} : memref<584x20xf32, #tpu.memory_space<vmem>>, vector<32x20xf32>
    %84 = arith.maximumf %82, %83 : vector<32x20xf32>
    %c0_50 = arith.constant 0 : index
    %c0_51 = arith.constant 0 : index
    %85 = vector.load %arg16[%c0_50, %c0_51] : memref<120x20xf32, #tpu.memory_space<vmem>>, vector<32x20xf32>
    tpu.vector_store %arg16[%c0_50, %c0_51], %84 {strides = array<i32>} : memref<120x20xf32, #tpu.memory_space<vmem>>, vector<32x20xf32>,
    %c160 = arith.constant 160 : index
    %c0_52 = arith.constant 0 : index
    %86 = tpu.strided_load %arg15[%c160, %c0_52] {strides = array<i32: 5, 1>} : memref<584x20xf32, #tpu.memory_space<vmem>>, vector<32x20xf32>
    %c161 = arith.constant 161 : index
    %c0_53 = arith.constant 0 : index
    %87 = tpu.strided_load %arg15[%c161, %c0_53] {strides = array<i32: 5, 1>} : memref<584x20xf32, #tpu.memory_space<vmem>>, vector<32x20xf32>
    %88 = arith.maximumf %86, %87 : vector<32x20xf32>
    %c162 = arith.constant 162 : index
    %c0_54 = arith.constant 0 : index
    %89 = tpu.strided_load %arg15[%c162, %c0_54] {strides = array<i32: 5, 1>} : memref<584x20xf32, #tpu.memory_space<vmem>>, vector<32x20xf32>
    %90 = arith.maximumf %88, %89 : vector<32x20xf32>
    %c163 = arith.constant 163 : index
    %c0_55 = arith.constant 0 : index
    %91 = tpu.strided_load %arg15[%c163, %c0_55] {strides = array<i32: 5, 1>} : memref<584x20xf32, #tpu.memory_space<vmem>>, vector<32x20xf32>
    %92 = arith.maximumf %90, %91 : vector<32x20xf32>
    %c164 = arith.constant 164 : index
    %c0_56 = arith.constant 0 : index
    %93 = tpu.strided_load %arg15[%c164, %c0_56] {strides = array<i32: 5, 1>} : memref<584x20xf32, #tpu.memory_space<vmem>>, vector<32x20xf32>
    %94 = arith.maximumf %92, %93 : vector<32x20xf32>
    %c165 = arith.constant 165 : index
    %c0_57 = arith.constant 0 : index
    %95 = tpu.strided_load %arg15[%c165, %c0_57] {strides = array<i32: 5, 1>} : memref<584x20xf32, #tpu.memory_space<vmem>>, vector<32x20xf32>
    %96 = arith.maximumf %94, %95 : vector<32x20xf32>
    %c166 = arith.constant 166 : index
    %c0_58 = arith.constant 0 : index
    %97 = tpu.strided_load %arg15[%c166, %c0_58] {strides = array<i32: 5, 1>} : memref<584x20xf32, #tpu.memory_space<vmem>>, vector<32x20xf32>
    %98 = arith.maximumf %96, %97 : vector<32x20xf32>
    %c167 = arith.constant 167 : index
    %c0_59 = arith.constant 0 : index
    %99 = tpu.strided_load %arg15[%c167, %c0_59] {strides = array<i32: 5, 1>} : memref<584x20xf32, #tpu.memory_space<vmem>>, vector<32x20xf32>
    %100 = arith.maximumf %98, %99 : vector<32x20xf32>
    %c168 = arith.constant 168 : index
    %c0_60 = arith.constant 0 : index
    %101 = tpu.strided_load %arg15[%c168, %c0_60] {strides = array<i32: 5, 1>} : memref<584x20xf32, #tpu.memory_space<vmem>>, vector<32x20xf32>
    %102 = arith.maximumf %100, %101 : vector<32x20xf32>
    %c169 = arith.constant 169 : index
    %c0_61 = arith.constant 0 : index
    %103 = tpu.strided_load %arg15[%c169, %c0_61] {strides = array<i32: 5, 1>} : memref<584x20xf32, #tpu.memory_space<vmem>>, vector<32x20xf32>
    %104 = arith.maximumf %102, %103 : vector<32x20xf32>
    %c32_62 = arith.constant 32 : index
    %c0_63 = arith.constant 0 : index
    %105 = vector.load %arg16[%c32_62, %c0_63] : memref<120x20xf32, #tpu.memory_space<vmem>>, vector<32x20xf32>
    tpu.vector_store %arg16[%c32_62, %c0_63], %104 {strides = array<i32>} : memref<120x20xf32, #tpu.memory_space<vmem>>, vector<32x20xf32>,
    %c320 = arith.constant 320 : index
    %c0_64 = arith.constant 0 : index
    %106 = tpu.strided_load %arg15[%c320, %c0_64] {strides = array<i32: 5, 1>} : memref<584x20xf32, #tpu.memory_space<vmem>>, vector<32x20xf32>
    %c321 = arith.constant 321 : index
    %c0_65 = arith.constant 0 : index
    %107 = tpu.strided_load %arg15[%c321, %c0_65] {strides = array<i32: 5, 1>} : memref<584x20xf32, #tpu.memory_space<vmem>>, vector<32x20xf32>
    %108 = arith.maximumf %106, %107 : vector<32x20xf32>
    %c322 = arith.constant 322 : index
    %c0_66 = arith.constant 0 : index
    %109 = tpu.strided_load %arg15[%c322, %c0_66] {strides = array<i32: 5, 1>} : memref<584x20xf32, #tpu.memory_space<vmem>>, vector<32x20xf32>
    %110 = arith.maximumf %108, %109 : vector<32x20xf32>
    %c323 = arith.constant 323 : index
    %c0_67 = arith.constant 0 : index
    %111 = tpu.strided_load %arg15[%c323, %c0_67] {strides = array<i32: 5, 1>} : memref<584x20xf32, #tpu.memory_space<vmem>>, vector<32x20xf32>
    %112 = arith.maximumf %110, %111 : vector<32x20xf32>
    %c324 = arith.constant 324 : index
    %c0_68 = arith.constant 0 : index
    %113 = tpu.strided_load %arg15[%c324, %c0_68] {strides = array<i32: 5, 1>} : memref<584x20xf32, #tpu.memory_space<vmem>>, vector<32x20xf32>
    %114 = arith.maximumf %112, %113 : vector<32x20xf32>
    %c325 = arith.constant 325 : index
    %c0_69 = arith.constant 0 : index
    %115 = tpu.strided_load %arg15[%c325, %c0_69] {strides = array<i32: 5, 1>} : memref<584x20xf32, #tpu.memory_space<vmem>>, vector<32x20xf32>
    %116 = arith.maximumf %114, %115 : vector<32x20xf32>
    %c326 = arith.constant 326 : index
    %c0_70 = arith.constant 0 : index
    %117 = tpu.strided_load %arg15[%c326, %c0_70] {strides = array<i32: 5, 1>} : memref<584x20xf32, #tpu.memory_space<vmem>>, vector<32x20xf32>
    %118 = arith.maximumf %116, %117 : vector<32x20xf32>
    %c327 = arith.constant 327 : index
    %c0_71 = arith.constant 0 : index
    %119 = tpu.strided_load %arg15[%c327, %c0_71] {strides = array<i32: 5, 1>} : memref<584x20xf32, #tpu.memory_space<vmem>>, vector<32x20xf32>
    %120 = arith.maximumf %118, %119 : vector<32x20xf32>
    %c328 = arith.constant 328 : index
    %c0_72 = arith.constant 0 : index
    %121 = tpu.strided_load %arg15[%c328, %c0_72] {strides = array<i32: 5, 1>} : memref<584x20xf32, #tpu.memory_space<vmem>>, vector<32x20xf32>
    %122 = arith.maximumf %120, %121 : vector<32x20xf32>
    %c329 = arith.constant 329 : index
    %c0_73 = arith.constant 0 : index
    %123 = tpu.strided_load %arg15[%c329, %c0_73] {strides = array<i32: 5, 1>} : memref<584x20xf32, #tpu.memory_space<vmem>>, vector<32x20xf32>
    %124 = arith.maximumf %122, %123 : vector<32x20xf32>
    %c64_74 = arith.constant 64 : index
    %c0_75 = arith.constant 0 : index
    %125 = vector.load %arg16[%c64_74, %c0_75] : memref<120x20xf32, #tpu.memory_space<vmem>>, vector<32x20xf32>
    tpu.vector_store %arg16[%c64_74, %c0_75], %124 {strides = array<i32>} : memref<120x20xf32, #tpu.memory_space<vmem>>, vector<32x20xf32>,
    %c480 = arith.constant 480 : index
    %c0_76 = arith.constant 0 : index
    %126 = tpu.strided_load %arg15[%c480, %c0_76] {strides = array<i32: 5, 1>} : memref<584x20xf32, #tpu.memory_space<vmem>>, vector<19x20xf32>
    %c481 = arith.constant 481 : index
    %c0_77 = arith.constant 0 : index
    %127 = tpu.strided_load %arg15[%c481, %c0_77] {strides = array<i32: 5, 1>} : memref<584x20xf32, #tpu.memory_space<vmem>>, vector<19x20xf32>
    %128 = arith.maximumf %126, %127 : vector<19x20xf32>
    %c482 = arith.constant 482 : index
    %c0_78 = arith.constant 0 : index
    %129 = tpu.strided_load %arg15[%c482, %c0_78] {strides = array<i32: 5, 1>} : memref<584x20xf32, #tpu.memory_space<vmem>>, vector<19x20xf32>
    %130 = arith.maximumf %128, %129 : vector<19x20xf32>
    %c483 = arith.constant 483 : index
    %c0_79 = arith.constant 0 : index
    %131 = tpu.strided_load %arg15[%c483, %c0_79] {strides = array<i32: 5, 1>} : memref<584x20xf32, #tpu.memory_space<vmem>>, vector<19x20xf32>
    %132 = arith.maximumf %130, %131 : vector<19x20xf32>
    %c484 = arith.constant 484 : index
    %c0_80 = arith.constant 0 : index
    %133 = tpu.strided_load %arg15[%c484, %c0_80] {strides = array<i32: 5, 1>} : memref<584x20xf32, #tpu.memory_space<vmem>>, vector<19x20xf32>
    %134 = arith.maximumf %132, %133 : vector<19x20xf32>
    %c485 = arith.constant 485 : index
    %c0_81 = arith.constant 0 : index
    %135 = tpu.strided_load %arg15[%c485, %c0_81] {strides = array<i32: 5, 1>} : memref<584x20xf32, #tpu.memory_space<vmem>>, vector<19x20xf32>
    %136 = arith.maximumf %134, %135 : vector<19x20xf32>
    %c486 = arith.constant 486 : index
    %c0_82 = arith.constant 0 : index
    %137 = tpu.strided_load %arg15[%c486, %c0_82] {strides = array<i32: 5, 1>} : memref<584x20xf32, #tpu.memory_space<vmem>>, vector<19x20xf32>
    %138 = arith.maximumf %136, %137 : vector<19x20xf32>
    %c487 = arith.constant 487 : index
    %c0_83 = arith.constant 0 : index
    %139 = tpu.strided_load %arg15[%c487, %c0_83] {strides = array<i32: 5, 1>} : memref<584x20xf32, #tpu.memory_space<vmem>>, vector<19x20xf32>
    %140 = arith.maximumf %138, %139 : vector<19x20xf32>
    %c488 = arith.constant 488 : index
    %c0_84 = arith.constant 0 : index
    %141 = tpu.strided_load %arg15[%c488, %c0_84] {strides = array<i32: 5, 1>} : memref<584x20xf32, #tpu.memory_space<vmem>>, vector<19x20xf32>
    %142 = arith.maximumf %140, %141 : vector<19x20xf32>
    %c489 = arith.constant 489 : index
    %c0_85 = arith.constant 0 : index
    %143 = tpu.strided_load %arg15[%c489, %c0_85] {strides = array<i32: 5, 1>} : memref<584x20xf32, #tpu.memory_space<vmem>>, vector<19x20xf32>
    %144 = arith.maximumf %142, %143 : vector<19x20xf32>
    %c96 = arith.constant 96 : index
    %c0_86 = arith.constant 0 : index
    %145 = vector.load %arg16[%c96, %c0_86] : memref<120x20xf32, #tpu.memory_space<vmem>>, vector<19x20xf32>
    tpu.vector_store %arg16[%c96, %c0_86], %144 {strides = array<i32>} : memref<120x20xf32, #tpu.memory_space<vmem>>, vector<19x20xf32>,
    %cst_87 = arith.constant 0.000000e+00 : bf16
    %146 = vector.broadcast %cst_87 : bf16 to vector<4x128xbf16>
    %c20_88 = arith.constant 20 : index
    %c0_89 = arith.constant 0 : index
    %147 = vector.load %arg14[%c20_88, %c0_89] : memref<240x128xbf16, #tpu.memory_space<vmem>>, vector<4x128xbf16>
    tpu.vector_store %arg14[%c20_88, %c0_89], %146 {strides = array<i32>} : memref<240x128xbf16, #tpu.memory_space<vmem>>, vector<4x128xbf16>,
    %c44_90 = arith.constant 44 : index
    %c0_91 = arith.constant 0 : index
    %148 = vector.load %arg14[%c44_90, %c0_91] : memref<240x128xbf16, #tpu.memory_space<vmem>>, vector<4x128xbf16>
    tpu.vector_store %arg14[%c44_90, %c0_91], %146 {strides = array<i32>} : memref<240x128xbf16, #tpu.memory_space<vmem>>, vector<4x128xbf16>,
    %c68_92 = arith.constant 68 : index
    %c0_93 = arith.constant 0 : index
    %149 = vector.load %arg14[%c68_92, %c0_93] : memref<240x128xbf16, #tpu.memory_space<vmem>>, vector<4x128xbf16>
    tpu.vector_store %arg14[%c68_92, %c0_93], %146 {strides = array<i32>} : memref<240x128xbf16, #tpu.memory_space<vmem>>, vector<4x128xbf16>,
    %c92 = arith.constant 92 : index
    %c0_94 = arith.constant 0 : index
    %150 = vector.load %arg14[%c92, %c0_94] : memref<240x128xbf16, #tpu.memory_space<vmem>>, vector<4x128xbf16>
    tpu.vector_store %arg14[%c92, %c0_94], %146 {strides = array<i32>} : memref<240x128xbf16, #tpu.memory_space<vmem>>, vector<4x128xbf16>,
    %c116 = arith.constant 116 : index
    %c0_95 = arith.constant 0 : index
    %151 = vector.load %arg14[%c116, %c0_95] : memref<240x128xbf16, #tpu.memory_space<vmem>>, vector<4x128xbf16>
    tpu.vector_store %arg14[%c116, %c0_95], %146 {strides = array<i32>} : memref<240x128xbf16, #tpu.memory_space<vmem>>, vector<4x128xbf16>,
    %c140 = arith.constant 140 : index
    %c0_96 = arith.constant 0 : index
    %152 = vector.load %arg14[%c140, %c0_96] : memref<240x128xbf16, #tpu.memory_space<vmem>>, vector<4x128xbf16>
    tpu.vector_store %arg14[%c140, %c0_96], %146 {strides = array<i32>} : memref<240x128xbf16, #tpu.memory_space<vmem>>, vector<4x128xbf16>,
    %c164_97 = arith.constant 164 : index
    %c0_98 = arith.constant 0 : index
    %153 = vector.load %arg14[%c164_97, %c0_98] : memref<240x128xbf16, #tpu.memory_space<vmem>>, vector<4x128xbf16>
    tpu.vector_store %arg14[%c164_97, %c0_98], %146 {strides = array<i32>} : memref<240x128xbf16, #tpu.memory_space<vmem>>, vector<4x128xbf16>,
    %c188 = arith.constant 188 : index
    %c0_99 = arith.constant 0 : index
    %154 = vector.load %arg14[%c188, %c0_99] : memref<240x128xbf16, #tpu.memory_space<vmem>>, vector<4x128xbf16>
    tpu.vector_store %arg14[%c188, %c0_99], %146 {strides = array<i32>} : memref<240x128xbf16, #tpu.memory_space<vmem>>, vector<4x128xbf16>,
    %c212 = arith.constant 212 : index
    %c0_100 = arith.constant 0 : index
    %155 = vector.load %arg14[%c212, %c0_100] : memref<240x128xbf16, #tpu.memory_space<vmem>>, vector<4x128xbf16>
    tpu.vector_store %arg14[%c212, %c0_100], %146 {strides = array<i32>} : memref<240x128xbf16, #tpu.memory_space<vmem>>, vector<4x128xbf16>,
    %c236 = arith.constant 236 : index
    %c0_101 = arith.constant 0 : index
    %156 = vector.load %arg14[%c236, %c0_101] : memref<240x128xbf16, #tpu.memory_space<vmem>>, vector<4x128xbf16>
    tpu.vector_store %arg14[%c236, %c0_101], %146 {strides = array<i32>} : memref<240x128xbf16, #tpu.memory_space<vmem>>, vector<4x128xbf16>,
    %c0_102 = arith.constant 0 : index
    %c0_103 = arith.constant 0 : index
    %157 = vector.load %arg16[%c0_102, %c0_103] : memref<120x20xf32, #tpu.memory_space<vmem>>, vector<115x20xf32>
    %158 = tpu.transpose %157, [1, 0] : vector<115x20xf32> -> vector<20x115xf32>
    %159 = arith.truncf %158 : vector<20x115xf32> to vector<20x115xbf16>
    %160 = vector.extract_strided_slice %159 {offsets = [0, 0], sizes = [20, 106], strides = [1, 1]} : vector<20x115xbf16> to vector<20x106xbf16>
    %c0_104 = arith.constant 0 : index
    %c0_105 = arith.constant 0 : index
    %161 = vector.load %arg14[%c0_104, %c0_105] : memref<240x128xbf16, #tpu.memory_space<vmem>>, vector<20x106xbf16>
    tpu.vector_store %arg14[%c0_104, %c0_105], %160 {strides = array<i32>} : memref<240x128xbf16, #tpu.memory_space<vmem>>, vector<20x106xbf16>,
    %162 = vector.extract_strided_slice %159 {offsets = [0, 1], sizes = [20, 106], strides = [1, 1]} : vector<20x115xbf16> to vector<20x106xbf16>
    %c24_106 = arith.constant 24 : index
    %c0_107 = arith.constant 0 : index
    %163 = vector.load %arg14[%c24_106, %c0_107] : memref<240x128xbf16, #tpu.memory_space<vmem>>, vector<20x106xbf16>
    tpu.vector_store %arg14[%c24_106, %c0_107], %162 {strides = array<i32>} : memref<240x128xbf16, #tpu.memory_space<vmem>>, vector<20x106xbf16>,
    %164 = vector.extract_strided_slice %159 {offsets = [0, 2], sizes = [20, 106], strides = [1, 1]} : vector<20x115xbf16> to vector<20x106xbf16>
    %c48_108 = arith.constant 48 : index
    %c0_109 = arith.constant 0 : index
    %165 = vector.load %arg14[%c48_108, %c0_109] : memref<240x128xbf16, #tpu.memory_space<vmem>>, vector<20x106xbf16>
    tpu.vector_store %arg14[%c48_108, %c0_109], %164 {strides = array<i32>} : memref<240x128xbf16, #tpu.memory_space<vmem>>, vector<20x106xbf16>,
    %166 = vector.extract_strided_slice %159 {offsets = [0, 3], sizes = [20, 106], strides = [1, 1]} : vector<20x115xbf16> to vector<20x106xbf16>
    %c72_110 = arith.constant 72 : index
    %c0_111 = arith.constant 0 : index
    %167 = vector.load %arg14[%c72_110, %c0_111] : memref<240x128xbf16, #tpu.memory_space<vmem>>, vector<20x106xbf16>
    tpu.vector_store %arg14[%c72_110, %c0_111], %166 {strides = array<i32>} : memref<240x128xbf16, #tpu.memory_space<vmem>>, vector<20x106xbf16>,
    %168 = vector.extract_strided_slice %159 {offsets = [0, 4], sizes = [20, 106], strides = [1, 1]} : vector<20x115xbf16> to vector<20x106xbf16>
    %c96_112 = arith.constant 96 : index
    %c0_113 = arith.constant 0 : index
    %169 = vector.load %arg14[%c96_112, %c0_113] : memref<240x128xbf16, #tpu.memory_space<vmem>>, vector<20x106xbf16>
    tpu.vector_store %arg14[%c96_112, %c0_113], %168 {strides = array<i32>} : memref<240x128xbf16, #tpu.memory_space<vmem>>, vector<20x106xbf16>,
    %170 = vector.extract_strided_slice %159 {offsets = [0, 5], sizes = [20, 106], strides = [1, 1]} : vector<20x115xbf16> to vector<20x106xbf16>
    %c120 = arith.constant 120 : index
    %c0_114 = arith.constant 0 : index
    %171 = vector.load %arg14[%c120, %c0_114] : memref<240x128xbf16, #tpu.memory_space<vmem>>, vector<20x106xbf16>
    tpu.vector_store %arg14[%c120, %c0_114], %170 {strides = array<i32>} : memref<240x128xbf16, #tpu.memory_space<vmem>>, vector<20x106xbf16>,
    %172 = vector.extract_strided_slice %159 {offsets = [0, 6], sizes = [20, 106], strides = [1, 1]} : vector<20x115xbf16> to vector<20x106xbf16>
    %c144 = arith.constant 144 : index
    %c0_115 = arith.constant 0 : index
    %173 = vector.load %arg14[%c144, %c0_115] : memref<240x128xbf16, #tpu.memory_space<vmem>>, vector<20x106xbf16>
    tpu.vector_store %arg14[%c144, %c0_115], %172 {strides = array<i32>} : memref<240x128xbf16, #tpu.memory_space<vmem>>, vector<20x106xbf16>,
    %174 = vector.extract_strided_slice %159 {offsets = [0, 7], sizes = [20, 106], strides = [1, 1]} : vector<20x115xbf16> to vector<20x106xbf16>
    %c168_116 = arith.constant 168 : index
    %c0_117 = arith.constant 0 : index
    %175 = vector.load %arg14[%c168_116, %c0_117] : memref<240x128xbf16, #tpu.memory_space<vmem>>, vector<20x106xbf16>
    tpu.vector_store %arg14[%c168_116, %c0_117], %174 {strides = array<i32>} : memref<240x128xbf16, #tpu.memory_space<vmem>>, vector<20x106xbf16>,
    %176 = vector.extract_strided_slice %159 {offsets = [0, 8], sizes = [20, 106], strides = [1, 1]} : vector<20x115xbf16> to vector<20x106xbf16>
    %c192 = arith.constant 192 : index
    %c0_118 = arith.constant 0 : index
    %177 = vector.load %arg14[%c192, %c0_118] : memref<240x128xbf16, #tpu.memory_space<vmem>>, vector<20x106xbf16>
    tpu.vector_store %arg14[%c192, %c0_118], %176 {strides = array<i32>} : memref<240x128xbf16, #tpu.memory_space<vmem>>, vector<20x106xbf16>,
    %178 = vector.extract_strided_slice %159 {offsets = [0, 9], sizes = [20, 106], strides = [1, 1]} : vector<20x115xbf16> to vector<20x106xbf16>
    %c216 = arith.constant 216 : index
    %c0_119 = arith.constant 0 : index
    %179 = vector.load %arg14[%c216, %c0_119] : memref<240x128xbf16, #tpu.memory_space<vmem>>, vector<20x106xbf16>
    tpu.vector_store %arg14[%c216, %c0_119], %178 {strides = array<i32>} : memref<240x128xbf16, #tpu.memory_space<vmem>>, vector<20x106xbf16>,
    %c0_120 = arith.constant 0 : index
    %c0_121 = arith.constant 0 : index
    %180 = vector.load %arg14[%c0_120, %c0_121] : memref<240x128xbf16, #tpu.memory_space<vmem>>, vector<240x128xbf16>
    %c0_122 = arith.constant 0 : index
    %c0_123 = arith.constant 0 : index
    %181 = vector.load %arg4[%c0_122, %c0_123] : memref<20x240xbf16, #tpu.memory_space<vmem>>, vector<20x240xbf16>
    %cst_124 = arith.constant dense<0.000000e+00> : vector<20x128xf32>
    %182 = tpu.matmul %181, %180, %cst_124 {dimension_numbers = #tpu.dot_dimension_numbers<[1], [0], [0], [1], [0, 0, 1, 1], [], []>} : vector<20x240xbf16>, vector<240x128xbf16>, vector<20x128xf32> -> vector<20x128xf32>
    %c0_125 = arith.constant 0 : index
    %c0_126 = arith.constant 0 : index
    %183 = vector.load %arg5[%c0_125, %c0_126] : memref<20x1xf32, #tpu.memory_space<vmem>>, vector<20x1xf32>
    %184 = vector.broadcast %183 : vector<20x1xf32> to vector<20x128xf32>
    %185 = arith.addf %182, %184 : vector<20x128xf32>
    %cst_127 = arith.constant 0.000000e+00 : f32
    %186 = vector.broadcast %cst_127 : f32 to vector<20x128xf32>
    %187 = arith.maximumf %185, %186 : vector<20x128xf32>
    %188 = vector.extract_strided_slice %187 {offsets = [0, 0], sizes = [20, 106], strides = [1, 1]} : vector<20x128xf32> to vector<20x106xf32>
    %189 = tpu.transpose %188, [1, 0] : vector<20x106xf32> -> vector<106x20xf32>
    %c0_128 = arith.constant 0 : index
    %c0_129 = arith.constant 0 : index
    %190 = vector.load %arg15[%c0_128, %c0_129] : memref<584x20xf32, #tpu.memory_space<vmem>>, vector<106x20xf32>
    tpu.vector_store %arg15[%c0_128, %c0_129], %189 {strides = array<i32>} : memref<584x20xf32, #tpu.memory_space<vmem>>, vector<106x20xf32>,
    %c0_130 = arith.constant 0 : index
    %c0_131 = arith.constant 0 : index
    %191 = tpu.strided_load %arg15[%c0_130, %c0_131] {strides = array<i32: 5, 1>} : memref<584x20xf32, #tpu.memory_space<vmem>>, vector<20x20xf32>
    %c1_132 = arith.constant 1 : index
    %c0_133 = arith.constant 0 : index
    %192 = tpu.strided_load %arg15[%c1_132, %c0_133] {strides = array<i32: 5, 1>} : memref<584x20xf32, #tpu.memory_space<vmem>>, vector<20x20xf32>
    %193 = arith.maximumf %191, %192 : vector<20x20xf32>
    %c2_134 = arith.constant 2 : index
    %c0_135 = arith.constant 0 : index
    %194 = tpu.strided_load %arg15[%c2_134, %c0_135] {strides = array<i32: 5, 1>} : memref<584x20xf32, #tpu.memory_space<vmem>>, vector<20x20xf32>
    %195 = arith.maximumf %193, %194 : vector<20x20xf32>
    %c3_136 = arith.constant 3 : index
    %c0_137 = arith.constant 0 : index
    %196 = tpu.strided_load %arg15[%c3_136, %c0_137] {strides = array<i32: 5, 1>} : memref<584x20xf32, #tpu.memory_space<vmem>>, vector<20x20xf32>
    %197 = arith.maximumf %195, %196 : vector<20x20xf32>
    %c4_138 = arith.constant 4 : index
    %c0_139 = arith.constant 0 : index
    %198 = tpu.strided_load %arg15[%c4_138, %c0_139] {strides = array<i32: 5, 1>} : memref<584x20xf32, #tpu.memory_space<vmem>>, vector<20x20xf32>
    %199 = arith.maximumf %197, %198 : vector<20x20xf32>
    %c5_140 = arith.constant 5 : index
    %c0_141 = arith.constant 0 : index
    %200 = tpu.strided_load %arg15[%c5_140, %c0_141] {strides = array<i32: 5, 1>} : memref<584x20xf32, #tpu.memory_space<vmem>>, vector<20x20xf32>
    %201 = arith.maximumf %199, %200 : vector<20x20xf32>
    %c6_142 = arith.constant 6 : index
    %c0_143 = arith.constant 0 : index
    %202 = tpu.strided_load %arg15[%c6_142, %c0_143] {strides = array<i32: 5, 1>} : memref<584x20xf32, #tpu.memory_space<vmem>>, vector<20x20xf32>
    %203 = arith.maximumf %201, %202 : vector<20x20xf32>
    %c7_144 = arith.constant 7 : index
    %c0_145 = arith.constant 0 : index
    %204 = tpu.strided_load %arg15[%c7_144, %c0_145] {strides = array<i32: 5, 1>} : memref<584x20xf32, #tpu.memory_space<vmem>>, vector<20x20xf32>
    %205 = arith.maximumf %203, %204 : vector<20x20xf32>
    %c8_146 = arith.constant 8 : index
    %c0_147 = arith.constant 0 : index
    %206 = tpu.strided_load %arg15[%c8_146, %c0_147] {strides = array<i32: 5, 1>} : memref<584x20xf32, #tpu.memory_space<vmem>>, vector<20x20xf32>
    %207 = arith.maximumf %205, %206 : vector<20x20xf32>
    %c9_148 = arith.constant 9 : index
    %c0_149 = arith.constant 0 : index
    %208 = tpu.strided_load %arg15[%c9_148, %c0_149] {strides = array<i32: 5, 1>} : memref<584x20xf32, #tpu.memory_space<vmem>>, vector<20x20xf32>
    %209 = arith.maximumf %207, %208 : vector<20x20xf32>
    %c0_150 = arith.constant 0 : index
    %c0_151 = arith.constant 0 : index
    %210 = vector.load %arg16[%c0_150, %c0_151] : memref<120x20xf32, #tpu.memory_space<vmem>>, vector<20x20xf32>
    tpu.vector_store %arg16[%c0_150, %c0_151], %209 {strides = array<i32>} : memref<120x20xf32, #tpu.memory_space<vmem>>, vector<20x20xf32>,
    %c0_152 = arith.constant 0 : index
    %c0_153 = arith.constant 0 : index
    %211 = vector.load %arg16[%c0_152, %c0_153] : memref<120x20xf32, #tpu.memory_space<vmem>>, vector<20x20xf32>
    %212 = tpu.transpose %211, [1, 0] : vector<20x20xf32> -> vector<20x20xf32>
    %213 = arith.truncf %212 : vector<20x20xf32> to vector<20x20xbf16>
    %214 = vector.extract_strided_slice %213 {offsets = [0, 0], sizes = [20, 11], strides = [1, 1]} : vector<20x20xbf16> to vector<20x11xbf16>
    %c0_154 = arith.constant 0 : index
    %c0_155 = arith.constant 0 : index
    %215 = vector.load %arg14[%c0_154, %c0_155] : memref<240x128xbf16, #tpu.memory_space<vmem>>, vector<20x11xbf16>
    tpu.vector_store %arg14[%c0_154, %c0_155], %214 {strides = array<i32>} : memref<240x128xbf16, #tpu.memory_space<vmem>>, vector<20x11xbf16>,
    %216 = vector.extract_strided_slice %213 {offsets = [0, 1], sizes = [20, 11], strides = [1, 1]} : vector<20x20xbf16> to vector<20x11xbf16>
    %c24_156 = arith.constant 24 : index
    %c0_157 = arith.constant 0 : index
    %217 = vector.load %arg14[%c24_156, %c0_157] : memref<240x128xbf16, #tpu.memory_space<vmem>>, vector<20x11xbf16>
    tpu.vector_store %arg14[%c24_156, %c0_157], %216 {strides = array<i32>} : memref<240x128xbf16, #tpu.memory_space<vmem>>, vector<20x11xbf16>,
    %218 = vector.extract_strided_slice %213 {offsets = [0, 2], sizes = [20, 11], strides = [1, 1]} : vector<20x20xbf16> to vector<20x11xbf16>
    %c48_158 = arith.constant 48 : index
    %c0_159 = arith.constant 0 : index
    %219 = vector.load %arg14[%c48_158, %c0_159] : memref<240x128xbf16, #tpu.memory_space<vmem>>, vector<20x11xbf16>
    tpu.vector_store %arg14[%c48_158, %c0_159], %218 {strides = array<i32>} : memref<240x128xbf16, #tpu.memory_space<vmem>>, vector<20x11xbf16>,
    %220 = vector.extract_strided_slice %213 {offsets = [0, 3], sizes = [20, 11], strides = [1, 1]} : vector<20x20xbf16> to vector<20x11xbf16>
    %c72_160 = arith.constant 72 : index
    %c0_161 = arith.constant 0 : index
    %221 = vector.load %arg14[%c72_160, %c0_161] : memref<240x128xbf16, #tpu.memory_space<vmem>>, vector<20x11xbf16>
    tpu.vector_store %arg14[%c72_160, %c0_161], %220 {strides = array<i32>} : memref<240x128xbf16, #tpu.memory_space<vmem>>, vector<20x11xbf16>,
    %222 = vector.extract_strided_slice %213 {offsets = [0, 4], sizes = [20, 11], strides = [1, 1]} : vector<20x20xbf16> to vector<20x11xbf16>
    %c96_162 = arith.constant 96 : index
    %c0_163 = arith.constant 0 : index
    %223 = vector.load %arg14[%c96_162, %c0_163] : memref<240x128xbf16, #tpu.memory_space<vmem>>, vector<20x11xbf16>
    tpu.vector_store %arg14[%c96_162, %c0_163], %222 {strides = array<i32>} : memref<240x128xbf16, #tpu.memory_space<vmem>>, vector<20x11xbf16>,
    %224 = vector.extract_strided_slice %213 {offsets = [0, 5], sizes = [20, 11], strides = [1, 1]} : vector<20x20xbf16> to vector<20x11xbf16>
    %c120_164 = arith.constant 120 : index
    %c0_165 = arith.constant 0 : index
    %225 = vector.load %arg14[%c120_164, %c0_165] : memref<240x128xbf16, #tpu.memory_space<vmem>>, vector<20x11xbf16>
    tpu.vector_store %arg14[%c120_164, %c0_165], %224 {strides = array<i32>} : memref<240x128xbf16, #tpu.memory_space<vmem>>, vector<20x11xbf16>,
    %226 = vector.extract_strided_slice %213 {offsets = [0, 6], sizes = [20, 11], strides = [1, 1]} : vector<20x20xbf16> to vector<20x11xbf16>
    %c144_166 = arith.constant 144 : index
    %c0_167 = arith.constant 0 : index
    %227 = vector.load %arg14[%c144_166, %c0_167] : memref<240x128xbf16, #tpu.memory_space<vmem>>, vector<20x11xbf16>
    tpu.vector_store %arg14[%c144_166, %c0_167], %226 {strides = array<i32>} : memref<240x128xbf16, #tpu.memory_space<vmem>>, vector<20x11xbf16>,
    %228 = vector.extract_strided_slice %213 {offsets = [0, 7], sizes = [20, 11], strides = [1, 1]} : vector<20x20xbf16> to vector<20x11xbf16>
    %c168_168 = arith.constant 168 : index
    %c0_169 = arith.constant 0 : index
    %229 = vector.load %arg14[%c168_168, %c0_169] : memref<240x128xbf16, #tpu.memory_space<vmem>>, vector<20x11xbf16>
    tpu.vector_store %arg14[%c168_168, %c0_169], %228 {strides = array<i32>} : memref<240x128xbf16, #tpu.memory_space<vmem>>, vector<20x11xbf16>,
    %230 = vector.extract_strided_slice %213 {offsets = [0, 8], sizes = [20, 11], strides = [1, 1]} : vector<20x20xbf16> to vector<20x11xbf16>
    %c192_170 = arith.constant 192 : index
    %c0_171 = arith.constant 0 : index
    %231 = vector.load %arg14[%c192_170, %c0_171] : memref<240x128xbf16, #tpu.memory_space<vmem>>, vector<20x11xbf16>
    tpu.vector_store %arg14[%c192_170, %c0_171], %230 {strides = array<i32>} : memref<240x128xbf16, #tpu.memory_space<vmem>>, vector<20x11xbf16>,
    %232 = vector.extract_strided_slice %213 {offsets = [0, 9], sizes = [20, 11], strides = [1, 1]} : vector<20x20xbf16> to vector<20x11xbf16>
    %c216_172 = arith.constant 216 : index
    %c0_173 = arith.constant 0 : index
    %233 = vector.load %arg14[%c216_172, %c0_173] : memref<240x128xbf16, #tpu.memory_space<vmem>>, vector<20x11xbf16>
    tpu.vector_store %arg14[%c216_172, %c0_173], %232 {strides = array<i32>} : memref<240x128xbf16, #tpu.memory_space<vmem>>, vector<20x11xbf16>,
    %c0_174 = arith.constant 0 : index
    %c0_175 = arith.constant 0 : index
    %234 = vector.load %arg14[%c0_174, %c0_175] : memref<240x128xbf16, #tpu.memory_space<vmem>>, vector<240x128xbf16>
    %c0_176 = arith.constant 0 : index
    %c0_177 = arith.constant 0 : index
    %235 = vector.load %arg6[%c0_176, %c0_177] : memref<20x240xbf16, #tpu.memory_space<vmem>>, vector<20x240xbf16>
    %cst_178 = arith.constant dense<0.000000e+00> : vector<20x128xf32>
    %236 = tpu.matmul %235, %234, %cst_178 {dimension_numbers = #tpu.dot_dimension_numbers<[1], [0], [0], [1], [0, 0, 1, 1], [], []>} : vector<20x240xbf16>, vector<240x128xbf16>, vector<20x128xf32> -> vector<20x128xf32>
    %c0_179 = arith.constant 0 : index
    %c0_180 = arith.constant 0 : index
    %237 = vector.load %arg7[%c0_179, %c0_180] : memref<20x1xf32, #tpu.memory_space<vmem>>, vector<20x1xf32>
    %238 = vector.broadcast %237 : vector<20x1xf32> to vector<20x128xf32>
    %239 = arith.addf %236, %238 : vector<20x128xf32>
    %cst_181 = arith.constant 0.000000e+00 : f32
    %240 = vector.broadcast %cst_181 : f32 to vector<20x128xf32>
    %241 = arith.maximumf %239, %240 : vector<20x128xf32>
    %242 = vector.extract_strided_slice %241 {offsets = [0, 0], sizes = [20, 11], strides = [1, 1]} : vector<20x128xf32> to vector<20x11xf32>
    %243 = tpu.transpose %242, [1, 0] : vector<20x11xf32> -> vector<11x20xf32>
    %c0_182 = arith.constant 0 : index
    %c0_183 = arith.constant 0 : index
    %244 = vector.load %arg15[%c0_182, %c0_183] : memref<584x20xf32, #tpu.memory_space<vmem>>, vector<11x20xf32>
    tpu.vector_store %arg15[%c0_182, %c0_183], %243 {strides = array<i32>} : memref<584x20xf32, #tpu.memory_space<vmem>>, vector<11x20xf32>,
    %c0_184 = arith.constant 0 : index
    %c0_185 = arith.constant 0 : index
    %245 = tpu.strided_load %arg15[%c0_184, %c0_185] {strides = array<i32: 5, 1>} : memref<584x20xf32, #tpu.memory_space<vmem>>, vector<1x20xf32>
    %c1_186 = arith.constant 1 : index
    %c0_187 = arith.constant 0 : index
    %246 = tpu.strided_load %arg15[%c1_186, %c0_187] {strides = array<i32: 5, 1>} : memref<584x20xf32, #tpu.memory_space<vmem>>, vector<1x20xf32>
    %247 = arith.maximumf %245, %246 : vector<1x20xf32>
    %c2_188 = arith.constant 2 : index
    %c0_189 = arith.constant 0 : index
    %248 = tpu.strided_load %arg15[%c2_188, %c0_189] {strides = array<i32: 5, 1>} : memref<584x20xf32, #tpu.memory_space<vmem>>, vector<1x20xf32>
    %249 = arith.maximumf %247, %248 : vector<1x20xf32>
    %c3_190 = arith.constant 3 : index
    %c0_191 = arith.constant 0 : index
    %250 = tpu.strided_load %arg15[%c3_190, %c0_191] {strides = array<i32: 5, 1>} : memref<584x20xf32, #tpu.memory_space<vmem>>, vector<1x20xf32>
    %251 = arith.maximumf %249, %250 : vector<1x20xf32>
    %c4_192 = arith.constant 4 : index
    %c0_193 = arith.constant 0 : index
    %252 = tpu.strided_load %arg15[%c4_192, %c0_193] {strides = array<i32: 5, 1>} : memref<584x20xf32, #tpu.memory_space<vmem>>, vector<1x20xf32>
    %253 = arith.maximumf %251, %252 : vector<1x20xf32>
    %c5_194 = arith.constant 5 : index
    %c0_195 = arith.constant 0 : index
    %254 = tpu.strided_load %arg15[%c5_194, %c0_195] {strides = array<i32: 5, 1>} : memref<584x20xf32, #tpu.memory_space<vmem>>, vector<1x20xf32>
    %255 = arith.maximumf %253, %254 : vector<1x20xf32>
    %c6_196 = arith.constant 6 : index
    %c0_197 = arith.constant 0 : index
    %256 = tpu.strided_load %arg15[%c6_196, %c0_197] {strides = array<i32: 5, 1>} : memref<584x20xf32, #tpu.memory_space<vmem>>, vector<1x20xf32>
    %257 = arith.maximumf %255, %256 : vector<1x20xf32>
    %c7_198 = arith.constant 7 : index
    %c0_199 = arith.constant 0 : index
    %258 = tpu.strided_load %arg15[%c7_198, %c0_199] {strides = array<i32: 5, 1>} : memref<584x20xf32, #tpu.memory_space<vmem>>, vector<1x20xf32>
    %259 = arith.maximumf %257, %258 : vector<1x20xf32>
    %c8_200 = arith.constant 8 : index
    %c0_201 = arith.constant 0 : index
    %260 = tpu.strided_load %arg15[%c8_200, %c0_201] {strides = array<i32: 5, 1>} : memref<584x20xf32, #tpu.memory_space<vmem>>, vector<1x20xf32>
    %261 = arith.maximumf %259, %260 : vector<1x20xf32>
    %c9_202 = arith.constant 9 : index
    %c0_203 = arith.constant 0 : index
    %262 = tpu.strided_load %arg15[%c9_202, %c0_203] {strides = array<i32: 5, 1>} : memref<584x20xf32, #tpu.memory_space<vmem>>, vector<1x20xf32>
    %263 = arith.maximumf %261, %262 : vector<1x20xf32>
    %c0_204 = arith.constant 0 : index
    %c0_205 = arith.constant 0 : index
    %264 = vector.load %arg16[%c0_204, %c0_205] : memref<120x20xf32, #tpu.memory_space<vmem>>, vector<1x20xf32>
    tpu.vector_store %arg16[%c0_204, %c0_205], %263 {strides = array<i32>} : memref<120x20xf32, #tpu.memory_space<vmem>>, vector<1x20xf32>,
    %c0_206 = arith.constant 0 : index
    %c0_207 = arith.constant 0 : index
    %265 = vector.load %arg16[%c0_206, %c0_207] : memref<120x20xf32, #tpu.memory_space<vmem>>, vector<1x20xf32>
    %cst_208 = arith.constant dense<0.000000e+00> : vector<20xf32>
    %266 = vector.multi_reduction <add>, %265, %cst_208 [0] : vector<1x20xf32> to vector<20xf32>
    %267 = vector.shape_cast %266 : vector<20xf32> to vector<1x20xf32>
    %cst_209 = arith.constant 1.000000e+00 : f32
    %268 = vector.broadcast %cst_209 : f32 to vector<1x20xf32>
    %269 = arith.mulf %267, %268 : vector<1x20xf32>
    %c0_210 = arith.constant 0 : index
    %c0_211 = arith.constant 0 : index
    %270 = vector.load %arg17[%c0_210, %c0_211] : memref<1x20xf32, #tpu.memory_space<vmem>>, vector<1x20xf32>
    tpu.vector_store %arg17[%c0_210, %c0_211], %269 {strides = array<i32>} : memref<1x20xf32, #tpu.memory_space<vmem>>, vector<1x20xf32>,
    %c0_212 = arith.constant 0 : index
    %c0_213 = arith.constant 0 : index
    %271 = vector.load %arg17[%c0_212, %c0_213] : memref<1x20xf32, #tpu.memory_space<vmem>>, vector<1x20xf32>
    %272 = arith.truncf %271 : vector<1x20xf32> to vector<1x20xbf16>
    %c0_214 = arith.constant 0 : index
    %c0_215 = arith.constant 0 : index
    %273 = vector.load %arg8[%c0_214, %c0_215] : memref<20x40xbf16, #tpu.memory_space<vmem>>, vector<20x40xbf16>
    %cst_216 = arith.constant dense<0.000000e+00> : vector<1x40xf32>
    %274 = tpu.matmul %272, %273, %cst_216 {dimension_numbers = #tpu.dot_dimension_numbers<[1], [0], [0], [1], [0, 0, 1, 1], [], []>} : vector<1x20xbf16>, vector<20x40xbf16>, vector<1x40xf32> -> vector<1x40xf32>
    %c0_217 = arith.constant 0 : index
    %c0_218 = arith.constant 0 : index
    %275 = vector.load %arg9[%c0_217, %c0_218] : memref<1x40xf32, #tpu.memory_space<vmem>>, vector<1x40xf32>
    %276 = arith.addf %274, %275 : vector<1x40xf32>
    %277 = arith.truncf %276 : vector<1x40xf32> to vector<1x40xbf16>
    %c0_219 = arith.constant 0 : index
    %c0_220 = arith.constant 0 : index
    %278 = vector.load %arg10[%c0_219, %c0_220] : memref<40x128xbf16, #tpu.memory_space<vmem>>, vector<40x128xbf16>
    %cst_221 = arith.constant dense<0.000000e+00> : vector<1x128xf32>
    %279 = tpu.matmul %277, %278, %cst_221 {dimension_numbers = #tpu.dot_dimension_numbers<[1], [0], [0], [1], [0, 0, 1, 1], [], []>} : vector<1x40xbf16>, vector<40x128xbf16>, vector<1x128xf32> -> vector<1x128xf32>
    %c0_222 = arith.constant 0 : index
    %c0_223 = arith.constant 0 : index
    %280 = vector.load %arg11[%c0_222, %c0_223] : memref<1x128xf32, #tpu.memory_space<vmem>>, vector<1x128xf32>
    %281 = arith.addf %279, %280 : vector<1x128xf32>
    %c0_224 = arith.constant 0 : index
    %c0_225 = arith.constant 0 : index
    %c0_226 = arith.constant 0 : index
    %282 = vector.load %arg12[%c0_224, %c0_225, %c0_226] : memref<1x1x128xf32, #tpu.memory_space<vmem>>, vector<1x1x128xf32>
    %283 = vector.shape_cast %282 : vector<1x1x128xf32> to vector<1x128xf32>
    %284 = vector.shape_cast %281 : vector<1x128xf32> to vector<1x1x128xf32>
    tpu.vector_store %arg12[%c0_224, %c0_225, %c0_226], %284 {strides = array<i32>} : memref<1x1x128xf32, #tpu.memory_space<vmem>>, vector<1x1x128xf32>,
    return
  }
  func.func @transform_0(%arg0: i32) -> (i32, i32, i32, i32) {
    %c0_i32 = arith.constant 0 : i32
    %c0_i32_0 = arith.constant 0 : i32
    %c0_i32_1 = arith.constant 0 : i32
    %c0_i32_2 = arith.constant 0 : i32
    return %arg0, %c0_i32, %c0_i32_0, %c0_i32_1 : i32, i32, i32, i32
  }
  func.func @transform_1(%arg0: i32) -> (i32, i32) {
    %c0_i32 = arith.constant 0 : i32
    %c0_i32_0 = arith.constant 0 : i32
    %c0_i32_1 = arith.constant 0 : i32
    return %c0_i32, %c0_i32_0 : i32, i32
  }
  func.func @transform_2(%arg0: i32) -> (i32, i32) {
    %c0_i32 = arith.constant 0 : i32
    %c0_i32_0 = arith.constant 0 : i32
    %c0_i32_1 = arith.constant 0 : i32
    return %c0_i32, %c0_i32_0 : i32, i32
  }
  func.func @transform_3(%arg0: i32) -> (i32, i32) {
    %c0_i32 = arith.constant 0 : i32
    %c0_i32_0 = arith.constant 0 : i32
    %c0_i32_1 = arith.constant 0 : i32
    return %c0_i32, %c0_i32_0 : i32, i32
  }
  func.func @transform_4(%arg0: i32) -> (i32, i32) {
    %c0_i32 = arith.constant 0 : i32
    %c0_i32_0 = arith.constant 0 : i32
    %c0_i32_1 = arith.constant 0 : i32
    return %c0_i32, %c0_i32_0 : i32, i32
  }
  func.func @transform_5(%arg0: i32) -> (i32, i32) {
    %c0_i32 = arith.constant 0 : i32
    %c0_i32_0 = arith.constant 0 : i32
    %c0_i32_1 = arith.constant 0 : i32
    return %c0_i32, %c0_i32_0 : i32, i32
  }
  func.func @transform_6(%arg0: i32) -> (i32, i32) {
    %c0_i32 = arith.constant 0 : i32
    %c0_i32_0 = arith.constant 0 : i32
    %c0_i32_1 = arith.constant 0 : i32
    return %c0_i32, %c0_i32_0 : i32, i32
  }
  func.func @transform_7(%arg0: i32) -> (i32, i32) {
    %c0_i32 = arith.constant 0 : i32
    %c0_i32_0 = arith.constant 0 : i32
    %c0_i32_1 = arith.constant 0 : i32
    return %c0_i32, %c0_i32_0 : i32, i32
  }
  func.func @transform_8(%arg0: i32) -> (i32, i32) {
    %c0_i32 = arith.constant 0 : i32
    %c0_i32_0 = arith.constant 0 : i32
    %c0_i32_1 = arith.constant 0 : i32
    return %c0_i32, %c0_i32_0 : i32, i32
  }
  func.func @transform_9(%arg0: i32) -> (i32, i32) {
    %c0_i32 = arith.constant 0 : i32
    %c0_i32_0 = arith.constant 0 : i32
    %c0_i32_1 = arith.constant 0 : i32
    return %c0_i32, %c0_i32_0 : i32, i32
  }
  func.func @transform_10(%arg0: i32) -> (i32, i32) {
    %c0_i32 = arith.constant 0 : i32
    %c0_i32_0 = arith.constant 0 : i32
    %c0_i32_1 = arith.constant 0 : i32
    return %c0_i32, %c0_i32_0 : i32, i32
  }
  func.func @transform_11(%arg0: i32) -> (i32, i32, i32) {
    %c0_i32 = arith.constant 0 : i32
    %c0_i32_0 = arith.constant 0 : i32
    %c0_i32_1 = arith.constant 0 : i32
    return %arg0, %c0_i32, %c0_i32_0 : i32, i32, i32
  }
}

</mosaic_0001>

<bundles_post_ra>
// kernel: net2_forward.1
= control target key start
LH: loop header
LB: loop body
LE: loop exit
PB: predicated region body
PF: predicated region fallthrough
CT: control target
= control target key end

     0   :  { %s4243_s0 = inlined_call_operand.vmem [shape: f32[2,1,4,600], index: 0, kind: input, shape index: {}]   ;;  %s4244_s1 = inlined_call_operand.vmem [shape: bf16[20,80], index: 1, kind: input, shape index: {}]   ;;  %s4245_s2 = inlined_call_operand.vmem [shape: f32[20,1], index: 2, kind: input, shape index: {}]   ;;  %s4246_s3 = inlined_call_operand.vmem [shape: bf16[20,240], index: 3, kind: input, shape index: {}]   ;;  %s4247_s4 = inlined_call_operand.vmem [shape: f32[20,1], index: 4, kind: input, shape index: {}]   ;;  %s4248_s5 = inlined_call_operand.vmem [shape: bf16[20,240], index: 5, kind: input, shape index: {}]   ;;  %s4249_s6 = inlined_call_operand.vmem [shape: f32[20,1], index: 6, kind: input, shape index: {}]   ;;  %s4250_s7 = inlined_call_operand.vmem [shape: bf16[20,40], index: 7, kind: input, shape index: {}]   ;;  %s4251_s8 = inlined_call_operand.vmem [shape: f32[1,40], index: 8, kind: input, shape index: {}]   ;;  %s4252_s9 = inlined_call_operand.vmem [shape: bf16[40,128], index: 9, kind: input, shape index: {}]   ;;  %s4253_s10 = inlined_call_operand.vmem [shape: f32[1,128], index: 10, kind: input, shape index: {}]   ;;  %s4254_s11 = inlined_call_operand.hbm [shape: f32[2,1,128], index: 11, kind: output, shape index: {}]  }
   0x1   :  { %4279 = sst [smem:[#allocation10_spill]] %s4243_s0 }
   0x2   :  { %4280 = sst [smem:[#allocation11_spill]] %s4244_s1 }
   0x3   :  { %4281 = sst [smem:[#allocation12_spill]] %s4245_s2 }
   0x4   :  { %4282 = sst [smem:[#allocation13_spill]] %s4247_s4 }
   0x5   :  { %16 = vsyncpa [#allocation8], 0 }
   0x6   :  { %18 = vsyncpa [#allocation8 + $0x1], 0  ;;  %s3386_s17 = smov 0   ;;  %s3388_s18 = smov 0  }
   0x7   :  { %s3390_s19 = smov 0   ;;  %s3392_s20 = smov 0  }
   0x8 LB: > { %s3407_s21 = sadd.s32 4294967295, %s3304_s20   ;;  %s2833_s22 = sadd.s32 4294967294, %s3304_s20   ;;  %s3304_s20 = sphi %s3392_s20, %s4310_s20   ;;  %s3300_s19 = sphi %s3390_s19, %s4309_s19   ;;  %s3296_s18 = sphi %s3388_s18, %s4308_s18   ;;  %s3292_s17 = sphi %s3386_s17, %s4307_s17  }
   0x9   : > { %s3411_s23 = sadd.s32 1, %s3304_s20   ;;  %s267_s24 = sadd.s32 1, %s3300_s19 }
   0xa   : > { %s264_s25 = ssub.s32 %s3304_s20, %s3411_s23  ;;  %p277_p0 = scmp.ne.s32.totalorder %s3300_s19, %s3296_s18 }
   0xb   : > { %p265_p1 = scmp.eq.s32.totalorder %s264_s25, 0  ;;  %p278_p2 = scmp.eq.s32.totalorder %s3407_s21, 1 }
   0xc   : > { %p283_p3 = scmp.ne.s32.totalorder %s3296_s18, %s3292_s17  ;;  %p284_p4 = scmp.eq.s32.totalorder %s2833_s22, 1 }
   0xd   : > { %s3422_s26 = scalar_select %p265_p1, %s3300_s19, %s267_s24  }
   0xe   : > { %p3424_p5 = por %p278_p2, %p277_p0  ;;  %p3428_p6 = por %p284_p4, %p283_p3 }
   0xf   : > { %p2836_p7 = scmp.ge.s32.totalorder %s3304_s20, 1  ;;  %p340_p8 = scmp.lt.s32.totalorder %s3304_s20, 3 }
  0x11   : > { %p341_p9 = pnand %p2836_p7, %p340_p8 }
  0x12   : > { %p379_p10 = scmp.lt.s32.totalorder (!%p341_p9), %s3407_s21, 1  ;;  %s4285_s0 = sld [smem:[#allocation10_spill]] (!%p341_p9) }
  0x13   : > { %344 = sbr.rel (%p341_p9) target bundleno = 2595 (0xa23), region = 64  ;;  %s3306_s15 = smov (!%p341_p9), 110  }
  0x14   : > { %s3307_s16 = smov (!%p341_p9), 112   ;;  %s3308_s22 = smov (!%p341_p9), 111  }
  0x15   : > { %s4256_s24 = smov (!%p341_p9), 116   ;;  %s3310_s25 = smov (!%p341_p9), 109  }
  0x16   : > { %s3313_s12 = smov (!%p341_p9), 114   ;;  %s4257_s13 = smov (!%p341_p9), 120  }
  0x17   : > { %s4295_s2 = sld [smem:[#allocation12_spill]] (!%p341_p9) }
  0x18   : > { %s380_s29 = scalar_select %p379_p10, %s3407_s21, 1  ;;  %vm428_vm0 = vcmask 1043456   ;;  %vm771_vm1 = vcmask 900096   ;;  %vm4269_vm2 = vcmask 916480   ;;  %vm751_vm3 = vcmask 908288  }
  0x19   : > { %vm791_vm4 = vcmask 891904   ;;  %vm411_vm5 = vcmask 558080   ;;  %vm651_vm6 = vcmask 949248   ;;  %vm671_vm7 = vcmask 941056   ;;  %s4296_s1 = sld [smem:[#allocation11_spill]] }
  0x1a   : > { %s3178_s30 = smul.u32 20, %s380_s29  ;;  %s4255_s29 = smov 115   ;;  %vm691_vm8 = vcmask 932864   ;;  %vm711_vm9 = vcmask 924672   ;;  %vm571_vm10 = vcmask 982016   ;;  %vm591_vm11 = vcmask 973824  }
  0x1b   : > { %vm611_vm12 = vcmask 965632   ;;  %vm4270_vm13 = vcmask 957440   ;;  %vm439_vm14 = vcmask 560130   ;;  %vm491_vm15 = vcmask 1014784   ;;  %s4299_s4 = sld [smem:[#allocation13_spill]] }
  0x1c   : > { %s3439_s14 = scalar_lea.vmem %s4285_s0, %s3178_s30  ;;  %s4259_s30 = smov 113  }
  0x1d   : > { %v385_v0 = vld [vmem:[%s3439_s14] sm:$0xff]  ;;  %v386_v1 = vld [vmem:[%s3439_s14 + $0x8] sm:$0xff]  ;;  %v387_v10 = vld [vmem:[%s3439_s14 + $0x10] sm:$0xf]  ;;  %s4262_s14 = smov 117  }
  0x1e   : > { %391 = vst [vmem:[#allocation1] ss:$2 sm:$0xff] %v385_v0 }
  0x1f   : > { %393 = vst [vmem:[#allocation1 + $0x10] ss:$2 sm:$0xff] %v386_v1 }
  0x20   : > { %395 = vst [vmem:[#allocation1 + $0x20] ss:$2 sm:$0xff] %v387_v10 }
  0x25   : > { %v396_v2 = vld.sshfl [vmem:[#allocation1] sm:$0xff pattern:$0x75316420]  ;;  %v397_v3 = vld.sshfl [vmem:[#allocation1 + $0x8] sm:$0xff pattern:$0x75316420] }
  0x26   : > { %v3443_v4 = vpack.c.bf16 %v397_v3, %v396_v2  ;;  %v398_v5 = vld.sshfl [vmem:[#allocation1 + $0x10] sm:$0xff pattern:$0x75316420]  ;;  %v399_v6 = vld.sshfl [vmem:[#allocation1 + $0x18] sm:$0xff pattern:$0x75316420] }
  0x27   : > { %v3445_v7 = vpack.c.bf16 %v399_v6, %v398_v5  ;;  %v400_v11 = vld.sshfl [vmem:[#allocation1 + $0x20] sm:$0xff pattern:$0x75316420] }
  0x28   : > { %761 = vrot.lane.b32.xlu2 %v3443_v4, %s3306_s15  ;;  %409 = vst [vmem:[#allocation2] sm:$0x33] %v3443_v4  ;;  %721 = vrot.lane.b32.xlu0 %v3443_v4, %s3307_s16  ;;  %v3453_v8 = vrot.slane %v3443_v4, 6  ;;  %v3516_v12 = vpack.c.bf16 %v400_v11, %v400_v11 }
  0x29   : > { %410 = vst [vmem:[#allocation2 + $0x8] sm:$0x33] %v3445_v7  ;;  %v3459_v9 = vrot.slane %v3445_v7, 6 }
  0x2a   : > { %741 = vrot.lane.b32.xlu1 %v3453_v8, %s3308_s22  ;;  %v3525_v13 = vrot.slane %v3516_v12, 6  ;;  %412 = vst.msk [vmem:[#allocation2 + $0x10] sm:$0x3] %vm411_vm5, %v3516_v12 }
  0x30   : > { %763 = vrot.lane.b32.xlu2 %v3445_v7, %s3306_s15  ;;  %723 = vrot.lane.b32.xlu0 %v3445_v7, %s3307_s16 }
  0x32   : > { %743 = vrot.lane.b32.xlu1 %v3459_v9, %s3308_s22 }
  0x38   : > { %641 = vrot.lane.b32.xlu2 %v3443_v4, %s4256_s24  ;;  %781 = vrot.lane.b32.xlu0 %v3453_v8, %s3310_s25 }
  0x3a   : > { %783 = vrot.lane.b32.xlu1 %v3459_v9, %s3310_s25 }
  0x40   : > { %663 = vrot.lane.b32.xlu2 %v3459_v9, %s4255_s29  ;;  %643 = vrot.lane.b32.xlu0 %v3445_v7, %s4256_s24  ;;  %s4260_s24 = smov 119  }
  0x42   : > { %661 = vrot.lane.b32.xlu1 %v3453_v8, %s4255_s29  ;;  %s3315_s29 = smov 118  }
  0x48   : > { %701 = vrot.lane.b32.xlu2 %v3453_v8, %s4259_s30  ;;  %681 = vrot.lane.b32.xlu0 %v3443_v4, %s3313_s12 }
  0x4a   : > { %683 = vrot.lane.b32.xlu1 %v3445_v7, %s3313_s12 }
  0x50   : > { %563 = vrot.lane.b32.xlu2 %v3445_v7, %s4257_s13  ;;  %703 = vrot.lane.b32.xlu0 %v3459_v9, %s4259_s30  ;;  %s4273_s30 = smov 124  }
  0x52   : > { %561 = vrot.lane.b32.xlu1 %v3443_v4, %s4257_s13  ;;  %s4277_s13 = smov 123  }
  0x58   : > { %601 = vrot.lane.b32.xlu2 %v3443_v4, %s3315_s29  ;;  %581 = vrot.lane.b32.xlu0 %v3453_v8, %s4260_s24 }
  0x5a   : > { %583 = vrot.lane.b32.xlu1 %v3459_v9, %s4260_s24  ;;  %s4263_s24 = smov 122  }
  0x60   : > { %623 = vrot.lane.b32.xlu2 %v3459_v9, %s4262_s14  ;;  %603 = vrot.lane.b32.xlu0 %v3445_v7, %s3315_s29 }
  0x62   : > { %621 = vrot.lane.b32.xlu1 %v3453_v8, %s4262_s14  ;;  %s4275_s14 = smov 121  }
  0x68   : > { %501 = vrot.lane.b32.xlu2 %v3453_v8, %s4277_s13  ;;  %481 = vrot.lane.b32.xlu0 %v3443_v4, %s4273_s30 }
  0x6a   : > { %483 = vrot.lane.b32.xlu1 %v3445_v7, %s4273_s30 }
  0x70   : > { %523 = vrot.lane.b32.xlu2 %v3445_v7, %s4263_s24  ;;  %503 = vrot.lane.b32.xlu0 %v3459_v9, %s4277_s13 }
  0x72   : > { %521 = vrot.lane.b32.xlu1 %v3443_v4, %s4263_s24  ;;  %s4265_s24 = smov 127  }
  0x78   : > { %725 = vrot.lane.b32.xlu2 %v3516_v12, %s3307_s16  ;;  %541 = vrot.lane.b32.xlu0 %v3453_v8, %s4275_s14  ;;  %s4267_s16 = smov 126  }
  0x7a   : > { %543 = vrot.lane.b32.xlu1 %v3459_v9, %s4275_s14 }
  0x80   : > { %785 = vrot.lane.b32.xlu2 %v3525_v13, %s3310_s25  ;;  %745 = vrot.lane.b32.xlu0 %v3525_v13, %s3308_s22  ;;  %s4286_s22 = smov 116   ;;  %s4287_s25 = smov 115  }
  0x82   : > { %v762_v14 = vpop.permute.xlu2 %761  ;;  %765 = vrot.lane.b32.xlu1 %v3516_v12, %s3306_s15  ;;  %s4271_s15 = smov 125  }
  0x83   : > { %v767_v15 = vrot.slane %v762_v14, 4 }
  0x88   : > { %441 = vrot.lane.b32.xlu2 %v3443_v4, %s4267_s16  ;;  %419 = vrot.lane.b32.xlu0 %v3453_v8, %s4265_s24 }
  0x8a   : > { %v3537_v16 = vpop.permute.xlu2 %763  ;;  %421 = vrot.lane.b32.xlu1 %v3459_v9, %s4265_s24  ;;  %s4288_s24 = smov 119  }
  0x8b   : > { %v768_v17 = vrot.slane %v3537_v16, 4 }
  0x8d   : > { %v770_v18 = vsel %vm428_vm0, %v767_v15, %v768_v17 }
  0x8e   : > { %v772_v19 = vsel %vm771_vm1, %v762_v14, %v770_v18 }
  0x8f   : > { %778 = vst [vmem:[#allocation2 + $0xb4] sm:$0x33] %v772_v19 }
  0x90   : > { %463 = vrot.lane.b32.xlu2 %v3459_v9, %s4271_s15  ;;  %443 = vrot.lane.b32.xlu0 %v3445_v7, %s4267_s16  ;;  %s4289_s16 = smov 113  }
  0x92   : > { %v642_v20 = vpop.permute.xlu2 %641  ;;  %461 = vrot.lane.b32.xlu1 %v3453_v8, %s4271_s15 }
  0x93   : > { %v647_v44 = vrot.slane %v642_v20, 4 }
  0x98   : > { %685 = vrot.lane.b32.xlu2 %v3516_v12, %s3313_s12  ;;  %645 = vrot.lane.b32.xlu0 %v3516_v12, %s4286_s22  ;;  %s4290_s12 = smov 120   ;;  %s4293_s22 = smov 127  }
  0x9a   : > { %v3556_v21 = vpop.permute.xlu2 %663  ;;  %v722_v22 = vpop.permute.xlu0 %721  ;;  %665 = vrot.lane.b32.xlu1 %v3525_v13, %s4287_s25  ;;  %s4294_s25 = smov 126  }
  0x9b   : > { %v727_v26 = vrot.slane %v722_v22, 4  ;;  %v668_v45 = vrot.slane %v3556_v21, 4 }
  0x9c   : > { %v742_v23 = vpop.permute.xlu1 %741 }
  0x9d   : > { %v747_v29 = vrot.slane %v742_v23, 4 }
  0xa0   : > { %585 = vrot.lane.b32.xlu2 %v3525_v13, %s4288_s24  ;;  %705 = vrot.lane.b32.xlu0 %v3525_v13, %s4289_s16  ;;  %s4291_s16 = smov 117  }
  0xa2   : > { %v3564_v24 = vpop.permute.xlu0 %723  ;;  %v3566_v25 = vpop.permute.xlu2 %701  ;;  %565 = vrot.lane.b32.xlu1 %v3516_v12, %s4290_s12 }
  0xa3   : > { %v728_v27 = vrot.slane %v3564_v24, 4  ;;  %v707_v4 = vrot.slane %v3566_v25, 4 }
  0xa4   : > { %v3571_v28 = vpop.permute.xlu1 %743 }
  0xa5   : > { %v730_v30 = vsel %vm428_vm0, %v727_v26, %v728_v27  ;;  %v748_v31 = vrot.slane %v3571_v28, 4 }
  0xa6   : > { %v732_v32 = vsel %vm4269_vm2, %v722_v22, %v730_v30 }
  0xa7   : > { %738 = vst [vmem:[#allocation2 + $0xa0] sm:$0x33] %v732_v32  ;;  %v750_v33 = vsel %vm428_vm0, %v747_v29, %v748_v31 }
  0xa8   : > { %v752_v34 = vsel %vm751_vm3, %v742_v23, %v750_v33  ;;  %485 = vrot.lane.b32.xlu2 %v3516_v12, %s4273_s30  ;;  %605 = vrot.lane.b32.xlu0 %v3516_v12, %s3315_s29  ;;  %s4292_s29 = smov 122  }
  0xa9   : > { %758 = vst [vmem:[#allocation2 + $0xa0] sm:$0xcc] %v752_v34 }
  0xaa   : > { %v3586_v35 = vpop.permute.xlu2 %563  ;;  %v782_v36 = vpop.permute.xlu0 %781  ;;  %625 = vrot.lane.b32.xlu1 %v3525_v13, %s4291_s16 }
  0xab   : > { %v787_v37 = vrot.slane %v782_v36, 4  ;;  %v568_v5 = vrot.slane %v3586_v35, 4 }
  0xac   : > { %v3590_v38 = vpop.permute.xlu1 %783 }
  0xad   : > { %v788_v39 = vrot.slane %v3590_v38, 4 }
  0xaf   : > { %v790_v40 = vsel %vm428_vm0, %v787_v37, %v788_v39 }
  0xb0   : > { %v792_v41 = vsel %vm791_vm4, %v782_v36, %v790_v40  ;;  %545 = vrot.lane.b32.xlu2 %v3525_v13, %s4275_s14  ;;  %505 = vrot.lane.b32.xlu0 %v3525_v13, %s4277_s13  ;;  %v2924_v52 = vld [vmem:[#allocation2 + $0xa0] sm:$0xf]  ;;  %v3128_v55 = vld [vmem:[#allocation2 + $0xa4] sm:$0xf] }
  0xb1   : > { %798 = vst [vmem:[#allocation2 + $0xb4] sm:$0xcc] %v792_v41 }
  0xb2   : > { %v3601_v42 = vpop.permute.xlu2 %601  ;;  %v3603_v43 = vpop.permute.xlu0 %643  ;;  %525 = vrot.lane.b32.xlu1 %v3516_v12, %s4292_s29 }
  0xb3   : > { %v648_v46 = vrot.slane %v3603_v43, 4  ;;  %v607_v33 = vrot.slane %v3601_v42, 4 }
  0xb4   : > { %v662_v47 = vpop.permute.xlu1 %661 }
  0xb5   : > { %v650_v48 = vsel %vm428_vm0, %v647_v44, %v648_v46  ;;  %v667_v49 = vrot.slane %v662_v47, 4 }
  0xb6   : > { %v652_v50 = vsel %vm651_vm6, %v642_v20, %v650_v48 }
  0xb7   : > { %658 = vst [vmem:[#allocation2 + $0x78] sm:$0x33] %v652_v50  ;;  %v670_v51 = vsel %vm428_vm0, %v667_v49, %v668_v45 }
  0xb8   : > { %v672_v53 = vsel %vm671_vm7, %v662_v47, %v670_v51  ;;  %465 = vrot.lane.b32.xlu2 %v3525_v13, %s4271_s15  ;;  %423 = vrot.lane.b32.xlu0 %v3525_v13, %s4293_s22  ;;  %v3130_v54 = vld [vmem:[#allocation2 + $0xb0] sm:$0xf0]  ;;  %v2926_v56 = vld [vmem:[#allocation2 + $0xb4] sm:$0xf0]  ;;  %s4298_s15 = smov 125  }
  0xb9   : > { %678 = vst [vmem:[#allocation2 + $0x78] sm:$0xcc] %v672_v53  ;;  %v2925_v57 = vor.u32 %v3130_v54, %v2924_v52  ;;  %v2929_v58 = vor.u32 %v3128_v55, %v2926_v56 }
  0xba   : > { %v3623_v59 = vpop.permute.xlu2 %623  ;;  %v682_v60 = vpop.permute.xlu0 %681  ;;  %445 = vrot.lane.b32.xlu1 %v3516_v12, %s4294_s25 }
  0xbb   : > { %v687_v61 = vrot.slane %v682_v60, 4  ;;  %1000 = vmatpush.bf16.msra.mxu0 %v2925_v57  ;;  %1018 = vmatpush.bf16.msra.mxu1 %v2929_v58  ;;  %v628_v37 = vrot.slane %v3623_v59, 4 }
  0xbc   : > { %v3627_v62 = vpop.permute.xlu1 %683 }
  0xbd   : > { %v688_v63 = vrot.slane %v3627_v62, 4 }
  0xbf   : > { %v690_v0 = vsel %vm428_vm0, %v687_v61, %v688_v63 }
  0xc0   : > { %v692_v1 = vsel %vm691_vm8, %v682_v60, %v690_v0  ;;  %v2904_v20 = vld [vmem:[#allocation2 + $0x78] sm:$0xf]  ;;  %v3123_v23 = vld [vmem:[#allocation2 + $0x7c] sm:$0xf] }
  0xc1   : > { %698 = vst [vmem:[#allocation2 + $0x8c] sm:$0x33] %v692_v1 }
  0xc2   : > { %v3634_v2 = vpop.permute.xlu2 %501  ;;  %v3636_v3 = vpop.permute.xlu0 %703 }
  0xc3   : > { %v708_v6 = vrot.slane %v3636_v3, 4 }
  0xc4   : > { %v562_v7 = vpop.permute.xlu1 %561 }
  0xc5   : > { %v710_v8 = vsel %vm428_vm0, %v707_v4, %v708_v6  ;;  %v567_v9 = vrot.slane %v562_v7, 4 }
  0xc6   : > { %v712_v10 = vsel %vm711_vm9, %v3566_v25, %v710_v8 }
  0xc7   : > { %718 = vst [vmem:[#allocation2 + $0x8c] sm:$0xcc] %v712_v10  ;;  %v570_v11 = vsel %vm428_vm0, %v567_v9, %v568_v5 }
  0xc8   : > { %v572_v12 = vsel %vm571_vm10, %v562_v7, %v570_v11 }
  0xc9   : > { %578 = vst [vmem:[#allocation2 + $0x50] sm:$0x33] %v572_v12 }
  0xca   : > { %v3650_v13 = vpop.permute.xlu2 %523  ;;  %v582_v14 = vpop.permute.xlu0 %581 }
  0xcb   : > { %v587_v15 = vrot.slane %v582_v14, 4  ;;  %v528_v11 = vrot.slane %v3650_v13, 4 }
  0xcc   : > { %v3652_v18 = vpop.permute.xlu1 %583 }
  0xcd   : > { %v588_v19 = vrot.slane %v3652_v18, 4 }
  0xce   : > { %v3125_v22 = vld [vmem:[#allocation2 + $0x88] sm:$0xf0]  ;;  %v2906_v25 = vld [vmem:[#allocation2 + $0x8c] sm:$0xf0] }
  0xcf   : > { %v590_v26 = vsel %vm428_vm0, %v587_v15, %v588_v19  ;;  %v2905_v29 = vor.u32 %v3125_v22, %v2904_v20  ;;  %v2909_v30 = vor.u32 %v3123_v23, %v2906_v25 }
  0xd0   : > { %v592_v32 = vsel %vm591_vm11, %v582_v14, %v590_v26 }
  0xd1   : > { %598 = vst [vmem:[#allocation2 + $0x50] sm:$0xcc] %v592_v32  ;;  %1001 = vmatpush.bf16.msra.mxu0 %v2905_v29  ;;  %1019 = vmatpush.bf16.msra.mxu1 %v2909_v30 }
  0xd2   : > { %v726_v34 = vpop.permute.xlu2 %725  ;;  %v3660_v36 = vpop.permute.xlu0 %603 }
  0xd3   : > { %v729_v40 = vrot.slane %v726_v34, 4  ;;  %740 = vst.msk [vmem:[#allocation2 + $0xb0] sm:$0x3] %vm411_vm5, %v726_v34  ;;  %v608_v41 = vrot.slane %v3660_v36, 4 }
  0xd4   : > { %v622_v44 = vpop.permute.xlu1 %621 }
  0xd5   : > { %v733_v47 = vsel %vm428_vm0, %v728_v27, %v729_v40  ;;  %v610_v48 = vsel %vm428_vm0, %v607_v33, %v608_v41  ;;  %v627_v49 = vrot.slane %v622_v44, 4 }
  0xd6   : > { %v734_v50 = vsel %vm4269_vm2, %v3564_v24, %v733_v47  ;;  %v612_v51 = vsel %vm611_vm12, %v3601_v42, %v610_v48  ;;  %vm531_vm2 = vcmask 998400  }
  0xd7   : > { %739 = vst [vmem:[#allocation2 + $0xa8] sm:$0x33] %v734_v50  ;;  %v630_v52 = vsel %vm428_vm0, %v627_v49, %v628_v37 }
  0xd8   : > { %618 = vst [vmem:[#allocation2 + $0x64] sm:$0x33] %v612_v51  ;;  %v632_v27 = vsel %vm4270_vm13, %v622_v44, %v630_v52  ;;  %v2884_v61 = vld [vmem:[#allocation2 + $0x50] sm:$0xf]  ;;  %v3118_v4 = vld [vmem:[#allocation2 + $0x54] sm:$0xf] }
  0xd9   : > { %638 = vst [vmem:[#allocation2 + $0x64] sm:$0xcc] %v632_v27  ;;  %vm551_vm13 = vcmask 990208  }
  0xda   : > { %v786_v53 = vpop.permute.xlu2 %785  ;;  %v482_v54 = vpop.permute.xlu0 %481 }
  0xdb   : > { %v789_v55 = vrot.slane %v786_v53, 4  ;;  %800 = vst.msk [vmem:[#allocation2 + $0xc4] sm:$0xc] %vm439_vm14, %v786_v53  ;;  %v487_v56 = vrot.slane %v482_v54, 4 }
  0xdc   : > { %v3680_v24 = vpop.permute.xlu1 %483 }
  0xdd   : > { %v793_v42 = vsel %vm428_vm0, %v788_v39, %v789_v55  ;;  %v488_v57 = vrot.slane %v3680_v24, 4 }
  0xde   : > { %v794_v58 = vsel %vm791_vm4, %v3590_v38, %v793_v42  ;;  %v507_v38 = vrot.slane %v3634_v2, 4  ;;  %vm511_vm4 = vcmask 1006592  }
  0xdf   : > { %799 = vst [vmem:[#allocation2 + $0xbc] sm:$0xcc] %v794_v58  ;;  %v490_v60 = vsel %vm428_vm0, %v487_v56, %v488_v57 }
  0xe0   : > { %v492_v0 = vsel %vm491_vm15, %v482_v54, %v490_v60  ;;  %v3120_v1 = vld [vmem:[#allocation2 + $0x60] sm:$0xf0]  ;;  %v2886_v7 = vld [vmem:[#allocation2 + $0x64] sm:$0xf0] }
  0xe1   : > { %498 = vst [vmem:[#allocation2 + $0x28] sm:$0x33] %v492_v0  ;;  %v2885_v8 = vor.u32 %v3120_v1, %v2884_v61  ;;  %v2889_v39 = vor.u32 %v3118_v4, %v2886_v7 }
  0xe2   : > { %v3692_v9 = vpop.permute.xlu2 %441  ;;  %v3694_v10 = vpop.permute.xlu0 %503 }
  0xe3   : > { %v508_v12 = vrot.slane %v3694_v10, 4  ;;  %1002 = vmatpush.bf16.msra.mxu0 %v2885_v8  ;;  %1020 = vmatpush.bf16.msra.mxu1 %v2889_v39 }
  0xe4   : > { %v522_v14 = vpop.permute.xlu1 %521 }
  0xe5   : > { %v510_v15 = vsel %vm428_vm0, %v507_v38, %v508_v12  ;;  %v527_v20 = vrot.slane %v522_v14, 4 }
  0xe6   : > { %v512_v22 = vsel %vm511_vm4, %v3634_v2, %v510_v15 }
  0xe7   : > { %518 = vst [vmem:[#allocation2 + $0x28] sm:$0xcc] %v512_v22  ;;  %v530_v23 = vsel %vm428_vm0, %v527_v20, %v528_v11  ;;  %v3325_v22 = vmov 0  }
  0xe8   : > { %v532_v25 = vsel %vm531_vm2, %v522_v14, %v530_v23  ;;  %3239 = vset.pattern.permute.xlu0 %v3325_v22  ;;  %3240 = vset.pattern.permute.xlu1 %v3325_v22  ;;  %v447_v23 = vrot.slane %v3692_v9, 4  ;;  %1787 = vst [vmem:[#allocation3 + $0x8] sm:$0xc] %v3325_v22 }
  0xe9   : > { %538 = vst [vmem:[#allocation2 + $0x3c] sm:$0x33] %v532_v25  ;;  %3241 = vset.pattern.permute.xlu2 %v3325_v22 }
  0xea   : > { %v3708_v26 = vpop.permute.xlu2 %463  ;;  %v542_v29 = vpop.permute.xlu0 %541  ;;  %1788 = vst [vmem:[#allocation3 + $0x14] sm:$0xc] %v3325_v22 }
  0xeb   : > { %v547_v30 = vrot.slane %v542_v29, 4  ;;  %1789 = vst [vmem:[#allocation3 + $0x20] sm:$0xc] %v3325_v22 }
  0xec   : > { %v3710_v32 = vpop.permute.xlu1 %543  ;;  %1790 = vst [vmem:[#allocation3 + $0x2c] sm:$0xc] %v3325_v22 }
  0xed   : > { %v548_v33 = vrot.slane %v3710_v32, 4  ;;  %1791 = vst [vmem:[#allocation3 + $0x38] sm:$0xc] %v3325_v22 }
  0xee   : > { %v2864_v55 = vld [vmem:[#allocation2 + $0x28] sm:$0xf]  ;;  %1792 = vst [vmem:[#allocation3 + $0x44] sm:$0xc] %v3325_v22 }
  0xef   : > { %v550_v2 = vsel %vm428_vm0, %v547_v30, %v548_v33  ;;  %v468_v30 = vrot.slane %v3708_v26, 4  ;;  %1793 = vst [vmem:[#allocation3 + $0x50] sm:$0xc] %v3325_v22 }
  0xf0   : > { %v552_v34 = vsel %vm551_vm13, %v542_v29, %v550_v2  ;;  %1794 = vst [vmem:[#allocation3 + $0x5c] sm:$0xc] %v3325_v22 }
  0xf1   : > { %558 = vst [vmem:[#allocation2 + $0x3c] sm:$0xcc] %v552_v34 }
  0xf2   : > { %v686_v40 = vpop.permute.xlu2 %685  ;;  %v746_v44 = vpop.permute.xlu0 %745  ;;  %1795 = vst [vmem:[#allocation3 + $0x68] sm:$0xc] %v3325_v22 }
  0xf3   : > { %v689_v47 = vrot.slane %v686_v40, 4  ;;  %700 = vst.msk [vmem:[#allocation2 + $0x9c] sm:$0x3] %vm411_vm5, %v686_v40  ;;  %v749_v48 = vrot.slane %v746_v44, 4 }
  0xf4   : > { %760 = vst.msk [vmem:[#allocation2 + $0xb0] sm:$0xc] %vm439_vm14, %v746_v44  ;;  %v766_v49 = vpop.permute.xlu1 %765 }
  0xf5   : > { %v693_v50 = vsel %vm428_vm0, %v688_v63, %v689_v47  ;;  %v753_v51 = vsel %vm428_vm0, %v748_v31, %v749_v48  ;;  %v769_v52 = vrot.slane %v766_v49, 4  ;;  %780 = vst.msk [vmem:[#allocation2 + $0xc4] sm:$0x3] %vm411_vm5, %v766_v49  ;;  %v3113_v63 = vld [vmem:[#allocation2 + $0x2c] sm:$0xf] }
  0xf6   : > { %v694_v27 = vsel %vm691_vm8, %v3627_v62, %v693_v50  ;;  %v754_v53 = vsel %vm751_vm3, %v3571_v28, %v753_v51  ;;  %vm451_vm3 = vcmask 1031168   ;;  %vm471_vm8 = vcmask 1022976   ;;  %1796 = vst [vmem:[#allocation3 + $0x74] sm:$0xc] %v3325_v22 }
  0xf7   : > { %699 = vst [vmem:[#allocation2 + $0x94] sm:$0x33] %v694_v27  ;;  %v773_v54 = vsel %vm428_vm0, %v768_v17, %v769_v52  ;;  %v835_v52 = vld [vmem:[%s4295_s2 + $0x8] sm:$0xff] }
  0xf8   : > { %759 = vst [vmem:[#allocation2 + $0xa8] sm:$0xcc] %v754_v53  ;;  %v774_v31 = vsel %vm771_vm1, %v3537_v16, %v773_v54  ;;  %v3115_v56 = vld [vmem:[#allocation2 + $0x38] sm:$0xf0]  ;;  %v2866_v42 = vld [vmem:[#allocation2 + $0x3c] sm:$0xf0]  ;;  %844 = vperm.xlu1 %3240, %v835_v52  }
  0xf9   : > { %779 = vst [vmem:[#allocation2 + $0xbc] sm:$0x33] %v774_v31  ;;  %v2865_v58 = vor.u32 %v3115_v56, %v2864_v55  ;;  %v2869_v60 = vor.u32 %v3113_v63, %v2866_v42  ;;  %vm430_vm1 = vcmask 1039360  }
  0xfa   : > { %v586_v62 = vpop.permute.xlu2 %585  ;;  %v420_v61 = vpop.permute.xlu0 %419 }
  0xfb   : > { %v589_v0 = vrot.slane %v586_v62, 4  ;;  %600 = vst.msk [vmem:[#allocation2 + $0x60] sm:$0xc] %vm439_vm14, %v586_v62  ;;  %v425_v28 = vrot.slane %v420_v61, 4  ;;  %1003 = vmatpush.bf16.msra.mxu0 %v2865_v58  ;;  %1021 = vmatpush.bf16.msra.mxu1 %v2869_v60 }
  0xfc   : > { %v3736_v17 = vpop.permute.xlu1 %421  ;;  %v3132_v58 = vld [vmem:[#allocation2 + $0xc0] sm:$0xf0] }
  0xfd   : > { %v593_v1 = vsel %vm428_vm0, %v588_v19, %v589_v0  ;;  %v426_v16 = vrot.slane %v3736_v17, 4 }
  0xfe   : > { %v594_v4 = vsel %vm591_vm11, %v3652_v18, %v593_v1  ;;  %v834_v18 = vld [vmem:[%s4295_s2] sm:$0xff]  ;;  %vm1850_vm11 = vcmask 861184  }
  0xff   : > { %599 = vst [vmem:[#allocation2 + $0x58] sm:$0xcc] %v594_v4  ;;  %v429_v7 = vsel %vm428_vm0, %v425_v28, %v426_v16  ;;  %v2932_v8 = vld [vmem:[#allocation2 + $0xa8] sm:$0xf]  ;;  %v3129_v39 = vld [vmem:[#allocation2 + $0xac] sm:$0xf]  ;;  %839 = vperm.xlu0 %3239, %v834_v18  }
 0x100   : > { %v431_v38 = vsel %vm430_vm1, %v420_v61, %v429_v7  ;;  %v3131_v14 = vld [vmem:[#allocation2 + $0xb8] sm:$0xf0]  ;;  %v2934_v15 = vld [vmem:[#allocation2 + $0xbc] sm:$0xf0] }
 0x101   : > { %437 = vst [vmem:[#allocation2] sm:$0xcc] %v431_v38  ;;  %v2933_v20 = vor.u32 %v3131_v14, %v2932_v8  ;;  %v2937_v19 = vor.u32 %v3129_v39, %v2934_v15  ;;  %v3804_v8 = vld [vmem:[%s4296_s1] sm:$0xff] }
 0x102   : > { %v486_v25 = vpop.permute.xlu2 %485  ;;  %v3754_v29 = vpop.permute.xlu0 %443 }
 0x103   : > { %v489_v2 = vrot.slane %v486_v25, 4  ;;  %500 = vst.msk [vmem:[#allocation2 + $0x38] sm:$0x3] %vm411_vm5, %v486_v25  ;;  %v448_v34 = vrot.slane %v3754_v29, 4  ;;  %1036 = vmatpush.bf16.msra.mxu2 %v2933_v20  ;;  %1054 = vmatpush.bf16.msra.mxu3 %v2937_v19 }
 0x104   : > { %v462_v40 = vpop.permute.xlu1 %461 }
 0x105   : > { %v493_v44 = vsel %vm428_vm0, %v488_v57, %v489_v2  ;;  %v450_v47 = vsel %vm428_vm0, %v447_v23, %v448_v34  ;;  %v467_v48 = vrot.slane %v462_v40, 4  ;;  %v833_v23 = vld [vmem:[%s4296_s1 + $0x8] sm:$0x3]  ;;  %s4302_s1 = smov 123  }
 0x106   : > { %v494_v49 = vsel %vm491_vm15, %v3680_v24, %v493_v44  ;;  %v452_v50 = vsel %vm451_vm3, %v3692_v9, %v450_v47  ;;  %vm2271_vm15 = vcmask 158720  }
 0x107   : > { %499 = vst [vmem:[#allocation2 + $0x30] sm:$0x33] %v494_v49  ;;  %v470_v57 = vsel %vm428_vm0, %v467_v48, %v468_v30  ;;  %v857_v49 = vunpack.c.l.b16 %v833_v23 }
 0x108   : > { %458 = vst [vmem:[#allocation2 + $0x14] sm:$0x33] %v452_v50  ;;  %v472_v51 = vsel %vm471_vm8, %v462_v40, %v470_v57  ;;  %v2844_v60 = vld [vmem:[#allocation2] sm:$0xf]  ;;  %v3108_v62 = vld [vmem:[#allocation2 + $0x4] sm:$0xf] }
 0x109   : > { %478 = vst [vmem:[#allocation2 + $0x14] sm:$0xcc] %v472_v51  ;;  %v836_v50 = vld [vmem:[%s4295_s2 + $0x10] sm:$0xf]  ;;  %s4303_s2 = smov 124  }
 0x10a   : > { %v546_v27 = vpop.permute.xlu2 %545  ;;  %v646_v24 = vpop.permute.xlu0 %645  ;;  %849 = vperm.xlu2 %3241, %v836_v50  }
 0x10b   : > { %v549_v9 = vrot.slane %v546_v27, 4  ;;  %560 = vst.msk [vmem:[#allocation2 + $0x4c] sm:$0xc] %vm439_vm14, %v546_v27  ;;  %v649_v53 = vrot.slane %v646_v24, 4 }
 0x10c   : > { %660 = vst.msk [vmem:[#allocation2 + $0x88] sm:$0x3] %vm411_vm5, %v646_v24  ;;  %v666_v54 = vpop.permute.xlu1 %665  ;;  %v3850_v24 = vpack.c.b16 %v857_v49, %v857_v49 }
 0x10d   : > { %v553_v55 = vsel %vm428_vm0, %v548_v33, %v549_v9  ;;  %v653_v63 = vsel %vm428_vm0, %v648_v46, %v649_v53  ;;  %v669_v31 = vrot.slane %v666_v54, 4  ;;  %680 = vst.msk [vmem:[#allocation2 + $0x88] sm:$0xc] %vm439_vm14, %v666_v54 }
 0x10e   : > { %v554_v56 = vsel %vm551_vm13, %v3710_v32, %v553_v55  ;;  %v654_v42 = vsel %vm651_vm6, %v3603_v43, %v653_v63  ;;  %v2940_v43 = vld [vmem:[#allocation2 + $0xb0] sm:$0xf]  ;;  %vm990_vm6 = vcmask 654336  }
 0x10f   : > { %559 = vst [vmem:[#allocation2 + $0x44] sm:$0xcc] %v554_v56  ;;  %v673_v33 = vsel %vm428_vm0, %v668_v45, %v669_v31  ;;  %v2941_v7 = vor.u32 %v3132_v58, %v2940_v43 }
 0x110   : > { %659 = vst [vmem:[#allocation2 + $0x80] sm:$0x33] %v654_v42  ;;  %v674_v46 = vsel %vm671_vm7, %v3556_v21, %v673_v33  ;;  %v3110_v61 = vld [vmem:[#allocation2 + $0x10] sm:$0xf0]  ;;  %v2846_v0 = vld [vmem:[#allocation2 + $0x14] sm:$0xf0] }
 0x111   : > { %679 = vst [vmem:[#allocation2 + $0x80] sm:$0xcc] %v674_v46  ;;  %v2845_v32 = vor.u32 %v3110_v61, %v2844_v60  ;;  %v2849_v28 = vor.u32 %v3108_v62, %v2846_v0  ;;  %vm4297_vm7 = vcmask 957440  }
 0x112   : > { %v466_v1 = vpop.permute.xlu2 %465  ;;  %v706_v4 = vpop.permute.xlu0 %705 }
 0x113   : > { %v469_v45 = vrot.slane %v466_v1, 4  ;;  %480 = vst.msk [vmem:[#allocation2 + $0x24] sm:$0xc] %vm439_vm14, %v466_v1  ;;  %v709_v21 = vrot.slane %v706_v4, 4  ;;  %1004 = vmatpush.bf16.msra.mxu0 %v2845_v32  ;;  %1022 = vmatpush.bf16.msra.mxu1 %v2849_v28 }
 0x114   : > { %720 = vst.msk [vmem:[#allocation2 + $0x9c] sm:$0xc] %vm439_vm14, %v706_v4  ;;  %v566_v39 = vpop.permute.xlu1 %565  ;;  %v2920_v18 = vld [vmem:[#allocation2 + $0x88] sm:$0xf] }
 0x115   : > { %v473_v38 = vsel %vm428_vm0, %v468_v30, %v469_v45  ;;  %v713_v14 = vsel %vm428_vm0, %v708_v6, %v709_v21  ;;  %v569_v15 = vrot.slane %v566_v39, 4  ;;  %580 = vst.msk [vmem:[#allocation2 + $0x60] sm:$0x3] %vm411_vm5, %v566_v39 }
 0x116   : > { %v474_v20 = vsel %vm471_vm8, %v3708_v26, %v473_v38  ;;  %v714_v19 = vsel %vm711_vm9, %v3636_v3, %v713_v14  ;;  %2942 = vmatmul.msk.bf16.vlgmr.msra.gmra.mxu0 %vm990_vm6, %v3804_v8  ;;  %2944 = vmatmul.msk.bf16.vlgmr.msra.gmra.mxu1 %vm990_vm6, %v3804_v8  ;;  %vm1785_vm9 = vcmask 157696  }
 0x117   : > { %1072 = vmatpush.bf16.msrb.mxu0 %v2941_v7  ;;  %479 = vst [vmem:[#allocation2 + $0x1c] sm:$0xcc] %v474_v20  ;;  %v573_v6 = vsel %vm428_vm0, %v568_v5, %v569_v15 }
 0x118   : > { %719 = vst [vmem:[#allocation2 + $0x94] sm:$0xcc] %v714_v19  ;;  %v574_v26 = vsel %vm571_vm10, %v3586_v35, %v573_v6  ;;  %v2912_v47 = vld [vmem:[#allocation2 + $0x80] sm:$0xf]  ;;  %v3124_v48 = vld [vmem:[#allocation2 + $0x84] sm:$0xf] }
 0x119   : > { %579 = vst [vmem:[#allocation2 + $0x58] sm:$0x33] %v574_v26  ;;  %vm1847_vm10 = vcmask 863232  }
 0x11a   : > { %v606_v3 = vpop.permute.xlu0 %605 }
 0x11b   : > { %v609_v25 = vrot.slane %v606_v3, 4  ;;  %620 = vst.msk [vmem:[#allocation2 + $0x74] sm:$0x3] %vm411_vm5, %v606_v3  ;;  %v3127_v30 = vld [vmem:[#allocation2 + $0x98] sm:$0xf0] }
 0x11c   : > { %v626_v2 = vpop.permute.xlu1 %625  ;;  %v2921_v5 = vor.u32 %v3127_v30, %v2920_v18  ;;  %v2900_v9 = vld [vmem:[#allocation2 + $0x60] sm:$0xf] }
 0x11d   : > { %v613_v35 = vsel %vm428_vm0, %v608_v41, %v609_v25  ;;  %v629_v40 = vrot.slane %v626_v2, 4  ;;  %640 = vst.msk [vmem:[#allocation2 + $0x74] sm:$0xc] %vm439_vm14, %v626_v2 }
 0x11e   : > { %v614_v44 = vsel %vm611_vm12, %v3660_v36, %v613_v35  ;;  %1073 = vmatpush.bf16.msrb.mxu0 %v2921_v5  ;;  %vm4300_vm12 = vcmask 916480  }
 0x11f   : > { %619 = vst [vmem:[#allocation2 + $0x6c] sm:$0x33] %v614_v44  ;;  %v633_v22 = vsel %vm428_vm0, %v628_v37, %v629_v40  ;;  %v3126_v41 = vld [vmem:[#allocation2 + $0x90] sm:$0xf0]  ;;  %v2914_v57 = vld [vmem:[#allocation2 + $0x94] sm:$0xf0]  ;;  %vm4301_vm13 = vmmov %vm4300_vm12 }
 0x120   : > { %v634_v51 = vsel %vm4297_vm7, %v3623_v59, %v633_v22  ;;  %v2913_v36 = vor.u32 %v3126_v41, %v2912_v47  ;;  %v2917_v52 = vor.u32 %v3124_v48, %v2914_v57  ;;  %v2892_v42 = vld [vmem:[#allocation2 + $0x58] sm:$0xf]  ;;  %v3119_v33 = vld [vmem:[#allocation2 + $0x5c] sm:$0xf]  ;;  %vm2681_vm7 = vcmask 155648  }
 0x121   : > { %639 = vst [vmem:[#allocation2 + $0x6c] sm:$0xcc] %v634_v51 }
 0x122   : > { %1037 = vmatpush.bf16.msra.mxu2 %v2913_v36  ;;  %1055 = vmatpush.bf16.msra.mxu3 %v2917_v52  ;;  %v506_v27 = vpop.permute.xlu0 %505 }
 0x123   : > { %v509_v53 = vrot.slane %v506_v27, 4  ;;  %520 = vst.msk [vmem:[#allocation2 + $0x38] sm:$0xc] %vm439_vm14, %v506_v27 }
 0x124   : > { %v526_v54 = vpop.permute.xlu1 %525  ;;  %v3122_v37 = vld [vmem:[#allocation2 + $0x70] sm:$0xf0] }
 0x125   : > { %v513_v55 = vsel %vm428_vm0, %v508_v12, %v509_v53  ;;  %v529_v63 = vrot.slane %v526_v54, 4  ;;  %540 = vst.msk [vmem:[#allocation2 + $0x4c] sm:$0x3] %vm411_vm5, %v526_v54  ;;  %v2901_v59 = vor.u32 %v3122_v37, %v2900_v9 }
 0x126   : > { %v514_v31 = vsel %vm511_vm4, %v3694_v10, %v513_v55  ;;  %2943 = vmatmul.msk.bf16.gmra.mxu0 %vm990_vm6, %v3850_v24  ;;  %2945 = vmatmul.msk.bf16.gmra.mxu1 %vm990_vm6, %v3850_v24  ;;  %vm2311_vm4 = vcmask 84992  }
 0x127   : > { %519 = vst [vmem:[#allocation2 + $0x30] sm:$0xcc] %v514_v31  ;;  %v533_v56 = vsel %vm428_vm0, %v528_v11, %v529_v63  ;;  %1074 = vmatpush.bf16.msrb.mxu0 %v2901_v59 }
 0x128   : > { %v534_v12 = vsel %vm531_vm2, %v3650_v13, %v533_v56  ;;  %v3121_v58 = vld [vmem:[#allocation2 + $0x68] sm:$0xf0]  ;;  %v2894_v60 = vld [vmem:[#allocation2 + $0x6c] sm:$0xf0]  ;;  %vm1134_vm2 = vcmask 162816  }
 0x129   : > { %539 = vst [vmem:[#allocation2 + $0x44] sm:$0x33] %v534_v12  ;;  %v2893_v10 = vor.u32 %v3121_v58, %v2892_v42  ;;  %v2897_v62 = vor.u32 %v3119_v33, %v2894_v60 }
 0x12a   : > { %v424_v46 = vpop.permute.xlu0 %423  ;;  %v2880_v61 = vld [vmem:[#allocation2 + $0x38] sm:$0xf] }
 0x12b   : > { %v427_v0 = vrot.slane %v424_v46, 4  ;;  %440 = vst.msk [vmem:[#allocation2 + $0x10] sm:$0xc] %vm439_vm14, %v424_v46  ;;  %1038 = vmatpush.bf16.msra.mxu2 %v2893_v10  ;;  %1056 = vmatpush.bf16.msra.mxu3 %v2897_v62  ;;  %vm2210_vm14 = vcmask 156672  }
 0x12c   : > { %v446_v32 = vpop.permute.xlu1 %445  ;;  %v3117_v11 = vld [vmem:[#allocation2 + $0x48] sm:$0xf0] }
 0x12d   : > { %v432_v28 = vsel %vm428_vm0, %v426_v16, %v427_v0  ;;  %v449_v13 = vrot.slane %v446_v32, 4  ;;  %460 = vst.msk [vmem:[#allocation2 + $0x24] sm:$0x3] %vm411_vm5, %v446_v32  ;;  %v2881_v43 = vor.u32 %v3117_v11, %v2880_v61  ;;  %vm1335_vm5 = vcmask 159744  }
 0x12e   : > { %v433_v1 = vsel %vm430_vm1, %v3736_v17, %v432_v28  ;;  %v2872_v7 = vld [vmem:[#allocation2 + $0x30] sm:$0xf]  ;;  %v3114_v39 = vld [vmem:[#allocation2 + $0x34] sm:$0xf]  ;;  %vm2314_vm1 = vcmask 82944  }
 0x12f   : > { %438 = vst [vmem:[#allocation2 + $0x8] sm:$0xcc] %v433_v1  ;;  %v453_v4 = vsel %vm428_vm0, %v448_v34, %v449_v13  ;;  %1075 = vmatpush.bf16.msrb.mxu0 %v2881_v43 }
 0x130   : > { %v454_v45 = vsel %vm451_vm3, %v3754_v29, %v453_v4  ;;  %v3116_v21 = vld [vmem:[#allocation2 + $0x40] sm:$0xf0]  ;;  %v2874_v16 = vld [vmem:[#allocation2 + $0x44] sm:$0xf0]  ;;  %vm4305_vm3 = vmmov %vm4300_vm12 }
 0x131   : > { %459 = vst [vmem:[#allocation2 + $0x1c] sm:$0x33] %v454_v45  ;;  %v2873_v38 = vor.u32 %v3116_v21, %v2872_v7  ;;  %v2877_v14 = vor.u32 %v3114_v39, %v2874_v16  ;;  %vm4306_vm8 = vmmov %vm4305_vm3 }
 0x132   : > { %v2860_v15 = vld [vmem:[#allocation2 + $0x10] sm:$0xf] }
 0x133   : > { %1039 = vmatpush.bf16.msra.mxu2 %v2873_v38  ;;  %1057 = vmatpush.bf16.msra.mxu3 %v2877_v14 }
 0x134   : > { %v3112_v17 = vld [vmem:[#allocation2 + $0x20] sm:$0xf0] }
 0x135   : > { %v2861_v20 = vor.u32 %v3112_v17, %v2860_v15 }
 0x136   : > { %v2852_v19 = vld [vmem:[#allocation2 + $0x8] sm:$0xf]  ;;  %v3109_v34 = vld [vmem:[#allocation2 + $0xc] sm:$0xf] }
 0x137   : > { %1076 = vmatpush.bf16.msrb.mxu0 %v2861_v20 }
 0x138   : > { %v3111_v6 = vld [vmem:[#allocation2 + $0x18] sm:$0xf0]  ;;  %v2854_v26 = vld [vmem:[#allocation2 + $0x1c] sm:$0xf0] }
 0x139   : > { %v2853_v18 = vor.u32 %v3111_v6, %v2852_v19  ;;  %v2857_v3 = vor.u32 %v3109_v34, %v2854_v26 }
 0x13a   : > { %2950 = vmatmul.msk.bf16.vlgmr.msrb.gmra.mxu0 %vm990_vm6, %v3804_v8 }
 0x13b   : > { %1040 = vmatpush.bf16.msra.mxu2 %v2853_v18  ;;  %1058 = vmatpush.bf16.msra.mxu3 %v2857_v3 }
 0x13e   : > { %2946 = vmatmul.msk.bf16.vlgmr.msra.gmra.mxu2 %vm990_vm6, %v3804_v8  ;;  %2948 = vmatmul.msk.bf16.vlgmr.msra.gmra.mxu3 %vm990_vm6, %v3804_v8 }
 0x14a   : > { %2951 = vmatmul.msk.bf16.gmra.mxu0 %vm990_vm6, %v3850_v24 }
 0x14e   : > { %2947 = vmatmul.msk.bf16.gmra.mxu2 %vm990_vm6, %v3850_v24  ;;  %2949 = vmatmul.msk.bf16.gmra.mxu3 %vm990_vm6, %v3850_v24  ;;  %vm2704_vm6 = vcmask 1041408  }
 0x164   : > { %v850_v22 = vpop.permute.xlu2 %849 }
 0x16a   : > { %v3896_v8 = vpop.permute.xlu1 %844 }
 0x171   : > { %v3892_v29 = vpop.permute.xlu0 %839 }
 0x193   : > { %v1006_v23 = vpop.f32.mrf.mxu0  ;;  %v1024_v25 = vpop.f32.mrf.mxu1 }
 0x194   : > { %v1007_v30 = vadd.f32 %v1006_v23, %v3892_v29  ;;  %v1025_v2 = vadd.f32 %v1024_v25, %v3892_v29 }
 0x196   : > { %v1087_v5 = vmax.f32 %v1007_v30, 0.0  ;;  %v1088_v35 = vmax.f32 %v1025_v2, 0.0 }
 0x198   : > { %1102 = vxpose.xlu1.b32.start [1/3] (short) %v1087_v5, 128  ;;  %1151 = vxpose.xlu2.b32.start [1/3] (short) %v1088_v35, 128 }
 0x19b   : > { %v1008_v40 = vpop.f32.mrf.mxu0  ;;  %v1026_v44 = vpop.f32.mrf.mxu1 }
 0x19c   : > { %v1009_v47 = vadd.f32 %v1008_v40, %v3896_v8  ;;  %v1027_v48 = vadd.f32 %v1026_v44, %v3896_v8 }
 0x19e   : > { %v1092_v49 = vmax.f32 %v1009_v47, 0.0  ;;  %v1093_v50 = vmax.f32 %v1027_v48, 0.0 }
 0x1a0   : > { %1103 = vxpose.xlu1.b32.cont [2/3] (short) %v1092_v49, 128  ;;  %1152 = vxpose.xlu2.b32.cont [2/3] (short) %v1093_v50, 128 }
 0x1a3   : > { %v1011_v41 = vpop.f32.mrf.mxu0  ;;  %v1029_v57 = vpop.f32.mrf.mxu1 }
 0x1a4   : > { %v1012_v51 = vadd.f32 %v1011_v41, %v850_v22  ;;  %v1030_v36 = vadd.f32 %v1029_v57, %v850_v22 }
 0x1a6   : > { %v1097_v52 = vmax.f32 %v1012_v51, 0.0  ;;  %v1098_v27 = vmax.f32 %v1030_v36, 0.0 }
 0x1a8   : > { %1104 = vxpose.xlu1.b32.end [3/3] (short) %v1097_v52, 128  ;;  %1153 = vxpose.xlu2.b32.end [3/3] (short) %v1098_v27, 128 }
 0x1ab   : > { %v1031_v24 = vpop.f32.mrf.mxu1  ;;  %v1013_v9 = vpop.f32.mrf.mxu0 }
 0x1b7   : > { %v1078_v53 = vpop.f32.mrf.mxu0 }
 0x1b8   : > { %v1079_v21 = vadd.f32 %v1078_v53, %v3892_v29 }
 0x1ba   : > { %v1091_v16 = vmax.f32 %v1079_v21, 0.0 }
 0x1bf   : > { %v1080_v54 = vpop.f32.mrf.mxu0 }
 0x1c0   : > { %v1081_v14 = vadd.f32 %v1080_v54, %v3896_v8 }
 0x1c1   : > { %v1042_v37 = vpop.f32.mrf.mxu2  ;;  %v1060_v55 = vpop.f32.mrf.mxu3 }
 0x1c2   : > { %v1043_v63 = vadd.f32 %v1042_v37, %v3892_v29  ;;  %v1061_v32 = vadd.f32 %v1060_v55, %v3892_v29  ;;  %v1096_v17 = vmax.f32 %v1081_v14, 0.0 }
 0x1c4   : > { %v1089_v59 = vmax.f32 %v1043_v63, 0.0  ;;  %v1090_v11 = vmax.f32 %v1061_v32, 0.0 }
 0x1c6   : > { %1199 = vxpose.xlu0.b32.start [1/3] (short) %v1089_v59, 128 }
 0x1c7   : > { %v1083_v31 = vpop.f32.mrf.mxu0 }
 0x1c8   : > { %v1084_v19 = vadd.f32 %v1083_v31, %v850_v22 }
 0x1c9   : > { %v1044_v56 = vpop.f32.mrf.mxu2  ;;  %v1062_v42 = vpop.f32.mrf.mxu3 }
 0x1ca   : > { %v1045_v12 = vadd.f32 %v1044_v56, %v3896_v8  ;;  %v1063_v28 = vadd.f32 %v1062_v42, %v3896_v8  ;;  %v1101_v34 = vmax.f32 %v1084_v19, 0.0 }
 0x1cc   : > { %v1094_v58 = vmax.f32 %v1045_v12, 0.0  ;;  %v1095_v13 = vmax.f32 %v1063_v28, 0.0 }
 0x1ce   : > { %1200 = vxpose.xlu0.b32.cont [2/3] (short) %v1094_v58, 128 }
 0x1cf   : > { %v1085_v33 = vpop.f32.mrf.mxu0 }
 0x1d1   : > { %v1047_v60 = vpop.f32.mrf.mxu2  ;;  %v1065_v10 = vpop.f32.mrf.mxu3 }
 0x1d2   : > { %v1048_v62 = vadd.f32 %v1047_v60, %v850_v22  ;;  %v1066_v43 = vadd.f32 %v1065_v10, %v850_v22 }
 0x1d4   : > { %v1099_v46 = vmax.f32 %v1048_v62, 0.0  ;;  %v1100_v1 = vmax.f32 %v1066_v43, 0.0 }
 0x1d6   : > { %1201 = vxpose.xlu0.b32.end [3/3] (short) %v1099_v46, 128 }
 0x1d9   : > { %v1049_v61 = vpop.f32.mrf.mxu2  ;;  %v1067_v0 = vpop.f32.mrf.mxu3 }
 0x218   : > { %1247 = vxpose.xlu2.b32.start [1/3] (short) %v1090_v11, 128 }
 0x220   : > { %1248 = vxpose.xlu2.b32.cont [2/3] (short) %v1095_v13, 128 }
 0x228   : > { %1249 = vxpose.xlu2.b32.end [3/3] (short) %v1100_v1, 128 }
 0x231   : > { %v1167_v4 = vpop.trf.xlu2 }
 0x232   : > { %1183 = vst.msk [vmem:[#allocation4 + $0x80] sm:$0xff] %vm1134_vm2, %v1167_v4 }
 0x239   : > { %v1168_v7 = vpop.trf.xlu2 }
 0x23a   : > { %1184 = vst.msk [vmem:[#allocation4 + $0x88] sm:$0xff] %vm1134_vm2, %v1168_v7 }
 0x23c   : > { %v1118_v45 = vpop.trf.xlu1 }
 0x23d   : > { %1135 = vst.msk [vmem:[#allocation4] sm:$0xff] %vm1134_vm2, %v1118_v45 }
 0x241   : > { %v1169_v39 = vpop.trf.xlu2 }
 0x242   : > { %1185 = vst.msk [vmem:[#allocation4 + $0x90] sm:$0xff] %vm1134_vm2, %v1169_v39 }
 0x244   : > { %v1119_v38 = vpop.trf.xlu1 }
 0x245   : > { %1136 = vst.msk [vmem:[#allocation4 + $0x8] sm:$0xff] %vm1134_vm2, %v1119_v38 }
 0x246   : > { %1295 = vxpose.xlu0.b32.start [1/3] (short) (narrow) %v1091_v16, 72 }
 0x249   : > { %v1170_v15 = vpop.trf.xlu2 }
 0x24a   : > { %1186 = vst.msk [vmem:[#allocation4 + $0x98] sm:$0xff] %vm1134_vm2, %v1170_v15 }
 0x24c   : > { %v1120_v20 = vpop.trf.xlu1 }
 0x24d   : > { %1137 = vst.msk [vmem:[#allocation4 + $0x10] sm:$0xff] %vm1134_vm2, %v1120_v20 }
 0x24e   : > { %1296 = vxpose.xlu0.b32.cont [2/3] (short) (narrow) %v1096_v17, 72 }
 0x251   : > { %v1171_v6 = vpop.trf.xlu2 }
 0x252   : > { %1187 = vst.msk [vmem:[#allocation4 + $0xa0] sm:$0xff] %vm1134_vm2, %v1171_v6 }
 0x254   : > { %v1121_v26 = vpop.trf.xlu1 }
 0x255   : > { %1138 = vst.msk [vmem:[#allocation4 + $0x18] sm:$0xff] %vm1134_vm2, %v1121_v26 }
 0x256   : > { %1297 = vxpose.xlu0.b32.end [3/3] (short) (narrow) %v1101_v34, 72 }
 0x259   : > { %v1172_v18 = vpop.trf.xlu2 }
 0x25a   : > { %1188 = vst.msk [vmem:[#allocation4 + $0xa8] sm:$0xff] %vm1134_vm2, %v1172_v18 }
 0x25c   : > { %v1122_v3 = vpop.trf.xlu1 }
 0x25d   : > { %1139 = vst.msk [vmem:[#allocation4 + $0x20] sm:$0xff] %vm1134_vm2, %v1122_v3 }
 0x261   : > { %v1173_v29 = vpop.trf.xlu2 }
 0x262   : > { %1189 = vst.msk [vmem:[#allocation4 + $0xb0] sm:$0xff] %vm1134_vm2, %v1173_v29 }
 0x264   : > { %v1337_v23 = vld [vmem:[#allocation4] ss:$5 sm:$0xff]  ;;  %v1345_v25 = vld [vmem:[#allocation4 + $0x1] ss:$5 sm:$0xff]  ;;  %v1123_v2 = vpop.trf.xlu1 }
 0x265   : > { %v1357_v30 = vld [vmem:[#allocation4 + $0x2] ss:$5 sm:$0xff]  ;;  %v1352_v5 = vmax.f32 %v1337_v23, %v1345_v25  ;;  %1140 = vst.msk [vmem:[#allocation4 + $0x28] sm:$0xff] %vm1134_vm2, %v1123_v2  ;;  %v1369_v35 = vld [vmem:[#allocation4 + $0x3] ss:$5 sm:$0xff] }
 0x266   : > { %v1381_v40 = vld [vmem:[#allocation4 + $0x4] ss:$5 sm:$0xff] }
 0x267   : > { %v1364_v8 = vmax.f32 %v1352_v5, %v1357_v30 }
 0x269   : > { %v1376_v44 = vmax.f32 %v1364_v8, %v1369_v35  ;;  %v1174_v47 = vpop.trf.xlu2 }
 0x26a   : > { %1190 = vst.msk [vmem:[#allocation4 + $0xb8] sm:$0xff] %vm1134_vm2, %v1174_v47  ;;  %v1215_v48 = vpop.trf.xlu0 }
 0x26b   : > { %1231 = vst.msk [vmem:[#allocation4 + $0x100] sm:$0xff] %vm1134_vm2, %v1215_v48  ;;  %v1388_v49 = vmax.f32 %v1376_v44, %v1381_v40 }
 0x26c   : > { %v1393_v50 = vld [vmem:[#allocation4 + $0x5] ss:$5 sm:$0xff]  ;;  %v1405_v22 = vld [vmem:[#allocation4 + $0x6] ss:$5 sm:$0xff]  ;;  %v1124_v41 = vpop.trf.xlu1 }
 0x26d   : > { %1141 = vst.msk [vmem:[#allocation4 + $0x30] sm:$0xff] %vm1134_vm2, %v1124_v41  ;;  %v1400_v57 = vmax.f32 %v1388_v49, %v1393_v50  ;;  %v1417_v51 = vld [vmem:[#allocation4 + $0x7] ss:$5 sm:$0xff]  ;;  %v1429_v52 = vld [vmem:[#allocation4 + $0x8] ss:$5 sm:$0xff] }
 0x26e   : > { %v1441_v9 = vld [vmem:[#allocation4 + $0x9] ss:$5 sm:$0xff] }
 0x26f   : > { %v1412_v36 = vmax.f32 %v1400_v57, %v1405_v22 }
 0x271   : > { %v1175_v27 = vpop.trf.xlu2  ;;  %v1424_v24 = vmax.f32 %v1412_v36, %v1417_v51 }
 0x272   : > { %1191 = vst.msk [vmem:[#allocation4 + $0xc0] sm:$0xff] %vm1134_vm2, %v1175_v27  ;;  %v1216_v53 = vpop.trf.xlu0 }
 0x273   : > { %1232 = vst.msk [vmem:[#allocation4 + $0x108] sm:$0xff] %vm1134_vm2, %v1216_v53  ;;  %v1436_v54 = vmax.f32 %v1424_v24, %v1429_v52 }
 0x274   : > { %v1125_v37 = vpop.trf.xlu1 }
 0x275   : > { %1142 = vst.msk [vmem:[#allocation4 + $0x38] sm:$0xff] %vm1134_vm2, %v1125_v37  ;;  %v1448_v55 = vmax.f32 %v1436_v54, %v1441_v9 }
 0x277   : > { %1452 = vst.msk [vmem:[#allocation5] sm:$0xff] %vm1134_vm2, %v1448_v55 }
 0x279   : > { %v1457_v63 = vld [vmem:[#allocation4 + $0xa0] ss:$5 sm:$0xff]  ;;  %v1465_v59 = vld [vmem:[#allocation4 + $0xa1] ss:$5 sm:$0xff]  ;;  %v1176_v31 = vpop.trf.xlu2 }
 0x27a   : > { %v1472_v56 = vmax.f32 %v1457_v63, %v1465_v59  ;;  %1192 = vst.msk [vmem:[#allocation4 + $0xc8] sm:$0xff] %vm1134_vm2, %v1176_v31  ;;  %v1217_v42 = vpop.trf.xlu0  ;;  %v1477_v12 = vld [vmem:[#allocation4 + $0xa2] ss:$5 sm:$0xff]  ;;  %v1489_v60 = vld [vmem:[#allocation4 + $0xa3] ss:$5 sm:$0xff] }
 0x27b   : > { %1233 = vst.msk [vmem:[#allocation4 + $0x110] sm:$0xff] %vm1134_vm2, %v1217_v42  ;;  %v1501_v46 = vld [vmem:[#allocation4 + $0xa4] ss:$5 sm:$0xff] }
 0x27c   : > { %v1484_v58 = vmax.f32 %v1472_v56, %v1477_v12  ;;  %v1126_v33 = vpop.trf.xlu1 }
 0x27d   : > { %1143 = vst.msk [vmem:[#allocation4 + $0x40] sm:$0xff] %vm1134_vm2, %v1126_v33 }
 0x27e   : > { %v1496_v10 = vmax.f32 %v1484_v58, %v1489_v60  ;;  %v1797_v62 = vld [vmem:[#allocation5] sm:$0xff] }
 0x27f   : > { %1812 = vxpose.xlu1.b32.start [1/15] (short) (narrow) %v1797_v62, 24 }
 0x280   : > { %v1508_v61 = vmax.f32 %v1496_v10, %v1501_v46 }
 0x281   : > { %v1513_v0 = vld [vmem:[#allocation4 + $0xa5] ss:$5 sm:$0xff]  ;;  %v1177_v32 = vpop.trf.xlu2  ;;  %v1525_v13 = vld [vmem:[#allocation4 + $0xa6] ss:$5 sm:$0xff] }
 0x282   : > { %v1520_v11 = vmax.f32 %v1508_v61, %v1513_v0  ;;  %1193 = vst.msk [vmem:[#allocation4 + $0xd0] sm:$0xff] %vm1134_vm2, %v1177_v32  ;;  %v1218_v28 = vpop.trf.xlu0  ;;  %v1537_v4 = vld [vmem:[#allocation4 + $0xa7] ss:$5 sm:$0xff]  ;;  %v1549_v45 = vld [vmem:[#allocation4 + $0xa8] ss:$5 sm:$0xff] }
 0x283   : > { %1234 = vst.msk [vmem:[#allocation4 + $0x118] sm:$0xff] %vm1134_vm2, %v1218_v28  ;;  %v1561_v39 = vld [vmem:[#allocation4 + $0xa9] ss:$5 sm:$0xff] }
 0x284   : > { %v1532_v43 = vmax.f32 %v1520_v11, %v1525_v13  ;;  %v1127_v1 = vpop.trf.xlu1 }
 0x285   : > { %1144 = vst.msk [vmem:[#allocation4 + $0x48] sm:$0xff] %vm1134_vm2, %v1127_v1 }
 0x286   : > { %v1544_v7 = vmax.f32 %v1532_v43, %v1537_v4 }
 0x288   : > { %v1556_v21 = vmax.f32 %v1544_v7, %v1549_v45 }
 0x289   : > { %v1178_v16 = vpop.trf.xlu2 }
 0x28a   : > { %v1568_v38 = vmax.f32 %v1556_v21, %v1561_v39  ;;  %1194 = vst.msk [vmem:[#allocation4 + $0xd8] sm:$0xff] %vm1134_vm2, %v1178_v16  ;;  %v1219_v14 = vpop.trf.xlu0 }
 0x28b   : > { %1235 = vst.msk [vmem:[#allocation4 + $0x120] sm:$0xff] %vm1134_vm2, %v1219_v14 }
 0x28c   : > { %1572 = vst.msk [vmem:[#allocation5 + $0x20] sm:$0xff] %vm1134_vm2, %v1568_v38  ;;  %v1339_v15 = vld [vmem:[#allocation4 + $0x28] ss:$5 sm:$0xff]  ;;  %v1347_v17 = vld [vmem:[#allocation4 + $0x29] ss:$5 sm:$0xff]  ;;  %v1128_v20 = vpop.trf.xlu1 }
 0x28d   : > { %v1353_v19 = vmax.f32 %v1339_v15, %v1347_v17  ;;  %v1359_v6 = vld [vmem:[#allocation4 + $0x2a] ss:$5 sm:$0xff]  ;;  %v1371_v34 = vld [vmem:[#allocation4 + $0x2b] ss:$5 sm:$0xff]  ;;  %1145 = vst.msk [vmem:[#allocation4 + $0x50] sm:$0xff] %vm1134_vm2, %v1128_v20 }
 0x28e   : > { %v1383_v18 = vld [vmem:[#allocation4 + $0x2c] ss:$5 sm:$0xff] }
 0x28f   : > { %v1365_v26 = vmax.f32 %v1353_v19, %v1359_v6 }
 0x291   : > { %v1377_v3 = vmax.f32 %v1365_v26, %v1371_v34  ;;  %v1179_v29 = vpop.trf.xlu2 }
 0x292   : > { %1195 = vst.msk [vmem:[#allocation4 + $0xe0] sm:$0xff] %vm1134_vm2, %v1179_v29  ;;  %v1220_v23 = vpop.trf.xlu0 }
 0x293   : > { %v1389_v25 = vmax.f32 %v1377_v3, %v1383_v18  ;;  %1236 = vst.msk [vmem:[#allocation4 + $0x128] sm:$0xff] %vm1134_vm2, %v1220_v23 }
 0x294   : > { %v1129_v30 = vpop.trf.xlu1  ;;  %v1395_v2 = vld [vmem:[#allocation4 + $0x2d] ss:$5 sm:$0xff]  ;;  %v1407_v5 = vld [vmem:[#allocation4 + $0x2e] ss:$5 sm:$0xff] }
 0x295   : > { %v1401_v35 = vmax.f32 %v1389_v25, %v1395_v2  ;;  %1146 = vst.msk [vmem:[#allocation4 + $0x58] sm:$0xff] %vm1134_vm2, %v1129_v30  ;;  %v1419_v8 = vld [vmem:[#allocation4 + $0x2f] ss:$5 sm:$0xff]  ;;  %v1431_v44 = vld [vmem:[#allocation4 + $0x30] ss:$5 sm:$0xff] }
 0x296   : > { %v1443_v50 = vld [vmem:[#allocation4 + $0x31] ss:$5 sm:$0xff] }
 0x297   : > { %v1413_v40 = vmax.f32 %v1401_v35, %v1407_v5 }
 0x299   : > { %v1180_v47 = vpop.trf.xlu2  ;;  %v1425_v49 = vmax.f32 %v1413_v40, %v1419_v8 }
 0x29a   : > { %1196 = vst.msk [vmem:[#allocation4 + $0xe8] sm:$0xff] %vm1134_vm2, %v1180_v47  ;;  %v1221_v48 = vpop.trf.xlu0 }
 0x29b   : > { %1237 = vst.msk [vmem:[#allocation4 + $0x130] sm:$0xff] %vm1134_vm2, %v1221_v48  ;;  %v1437_v41 = vmax.f32 %v1425_v49, %v1431_v44 }
 0x29c   : > { %v1130_v22 = vpop.trf.xlu1 }
 0x29d   : > { %1147 = vst.msk [vmem:[#allocation4 + $0x60] sm:$0xff] %vm1134_vm2, %v1130_v22  ;;  %v1449_v57 = vmax.f32 %v1437_v41, %v1443_v50 }
 0x29f   : > { %1453 = vst.msk [vmem:[#allocation5 + $0x8] sm:$0xff] %vm1134_vm2, %v1449_v57 }
 0x2a1   : > { %v1459_v51 = vld [vmem:[#allocation4 + $0xc8] ss:$5 sm:$0xff]  ;;  %v1467_v36 = vld [vmem:[#allocation4 + $0xc9] ss:$5 sm:$0xff]  ;;  %v1181_v52 = vpop.trf.xlu2 }
 0x2a2   : > { %v1473_v27 = vmax.f32 %v1459_v51, %v1467_v36  ;;  %1197 = vst.msk [vmem:[#allocation4 + $0xf0] sm:$0xff] %vm1134_vm2, %v1181_v52  ;;  %v1222_v24 = vpop.trf.xlu0  ;;  %v1479_v9 = vld [vmem:[#allocation4 + $0xca] ss:$5 sm:$0xff]  ;;  %v1491_v37 = vld [vmem:[#allocation4 + $0xcb] ss:$5 sm:$0xff] }
 0x2a3   : > { %1238 = vst.msk [vmem:[#allocation4 + $0x138] sm:$0xff] %vm1134_vm2, %v1222_v24  ;;  %v1503_v63 = vld [vmem:[#allocation4 + $0xcc] ss:$5 sm:$0xff] }
 0x2a4   : > { %v1485_v53 = vmax.f32 %v1473_v27, %v1479_v9  ;;  %v1131_v54 = vpop.trf.xlu1 }
 0x2a5   : > { %1148 = vst.msk [vmem:[#allocation4 + $0x68] sm:$0xff] %vm1134_vm2, %v1131_v54 }
 0x2a6   : > { %v1497_v55 = vmax.f32 %v1485_v53, %v1491_v37  ;;  %v1798_v59 = vld [vmem:[#allocation5 + $0x8] sm:$0xff] }
 0x2a7   : > { %1813 = vxpose.xlu1.b32.cont [2/15] (short) (narrow) %v1798_v59, 24 }
 0x2a8   : > { %v1509_v31 = vmax.f32 %v1497_v55, %v1503_v63 }
 0x2a9   : > { %v1515_v56 = vld [vmem:[#allocation4 + $0xcd] ss:$5 sm:$0xff]  ;;  %v1182_v42 = vpop.trf.xlu2  ;;  %v1527_v60 = vld [vmem:[#allocation4 + $0xce] ss:$5 sm:$0xff] }
 0x2aa   : > { %v1521_v12 = vmax.f32 %v1509_v31, %v1515_v56  ;;  %v1463_v58 = vld [vmem:[#allocation4 + $0x118] ss:$5 sm:$0xff]  ;;  %v1223_v33 = vpop.trf.xlu0  ;;  %v1471_v10 = vld [vmem:[#allocation4 + $0x119] ss:$5 sm:$0xff]  ;;  %1198 = vst.msk [vmem:[#allocation4 + $0xf8] sm:$0xff] %vm1134_vm2, %v1182_v42 }
 0x2ab   : > { %v1475_v46 = vmax.f32 %v1463_v58, %v1471_v10  ;;  %v1539_v0 = vld [vmem:[#allocation4 + $0xcf] ss:$5 sm:$0xff]  ;;  %v1483_v32 = vld [vmem:[#allocation4 + $0x11a] ss:$5 sm:$0xff]  ;;  %1239 = vst.msk [vmem:[#allocation4 + $0x140] sm:$0xff] %vm1134_vm2, %v1223_v33 }
 0x2ac   : > { %v1533_v62 = vmax.f32 %v1521_v12, %v1527_v60  ;;  %v1132_v61 = vpop.trf.xlu1  ;;  %v1551_v13 = vld [vmem:[#allocation4 + $0xd0] ss:$5 sm:$0xff]  ;;  %v1495_v43 = vld [vmem:[#allocation4 + $0x11b] ss:$5 sm:$0xff] }
 0x2ad   : > { %v1487_v28 = vmax.f32 %v1475_v46, %v1483_v32  ;;  %1149 = vst.msk [vmem:[#allocation4 + $0x70] sm:$0xff] %vm1134_vm2, %v1132_v61  ;;  %v1563_v7 = vld [vmem:[#allocation4 + $0xd1] ss:$5 sm:$0xff]  ;;  %v1507_v39 = vld [vmem:[#allocation4 + $0x11c] ss:$5 sm:$0xff] }
 0x2ae   : > { %v1545_v11 = vmax.f32 %v1533_v62, %v1539_v0 }
 0x2af   : > { %v1499_v4 = vmax.f32 %v1487_v28, %v1495_v43 }
 0x2b0   : > { %v1557_v1 = vmax.f32 %v1545_v11, %v1551_v13 }
 0x2b1   : > { %v1263_v45 = vpop.trf.xlu2  ;;  %v1511_v38 = vmax.f32 %v1499_v4, %v1507_v39  ;;  %v1461_v14 = vld [vmem:[#allocation4 + $0xf0] ss:$5 sm:$0xff]  ;;  %v1469_v15 = vld [vmem:[#allocation4 + $0xf1] ss:$5 sm:$0xff]  ;;  %v1565_v58 = vld [vmem:[#allocation4 + $0xf9] ss:$5 sm:$0xff] }
 0x2b2   : > { %v1569_v21 = vmax.f32 %v1557_v1, %v1563_v7  ;;  %1279 = vst.msk [vmem:[#allocation4 + $0x180] sm:$0xff] %vm1134_vm2, %v1263_v45  ;;  %v1224_v16 = vpop.trf.xlu0  ;;  %v1474_v17 = vmax.f32 %v1461_v14, %v1469_v15  ;;  %v1481_v20 = vld [vmem:[#allocation4 + $0xf2] ss:$5 sm:$0xff]  ;;  %v1519_v6 = vld [vmem:[#allocation4 + $0x11d] ss:$5 sm:$0xff] }
 0x2b3   : > { %v1493_v34 = vld [vmem:[#allocation4 + $0xf3] ss:$5 sm:$0xff]  ;;  %v1523_v26 = vmax.f32 %v1511_v38, %v1519_v6  ;;  %v1531_v3 = vld [vmem:[#allocation4 + $0x11e] ss:$5 sm:$0xff]  ;;  %1240 = vst.msk [vmem:[#allocation4 + $0x148] sm:$0xff] %vm1134_vm2, %v1224_v16 }
 0x2b4   : > { %1573 = vst.msk [vmem:[#allocation5 + $0x28] sm:$0xff] %vm1134_vm2, %v1569_v21  ;;  %v1486_v19 = vmax.f32 %v1474_v17, %v1481_v20  ;;  %v1341_v29 = vld [vmem:[#allocation4 + $0x50] ss:$5 sm:$0xff]  ;;  %v1349_v23 = vld [vmem:[#allocation4 + $0x51] ss:$5 sm:$0xff]  ;;  %v1133_v25 = vpop.trf.xlu1 }
 0x2b5   : > { %v1505_v30 = vld [vmem:[#allocation4 + $0xf4] ss:$5 sm:$0xff]  ;;  %v1535_v2 = vmax.f32 %v1523_v26, %v1531_v3  ;;  %v1354_v5 = vmax.f32 %v1341_v29, %v1349_v23  ;;  %v1543_v44 = vld [vmem:[#allocation4 + $0x11f] ss:$5 sm:$0xff]  ;;  %1150 = vst.msk [vmem:[#allocation4 + $0x78] sm:$0xff] %vm1134_vm2, %v1133_v25 }
 0x2b6   : > { %v1498_v18 = vmax.f32 %v1486_v19, %v1493_v34  ;;  %v1361_v35 = vld [vmem:[#allocation4 + $0x52] ss:$5 sm:$0xff]  ;;  %v1373_v47 = vld [vmem:[#allocation4 + $0x53] ss:$5 sm:$0xff]  ;;  %v1555_v57 = vld [vmem:[#allocation4 + $0x120] ss:$5 sm:$0xff] }
 0x2b7   : > { %v1517_v49 = vld [vmem:[#allocation4 + $0xf5] ss:$5 sm:$0xff]  ;;  %v1547_v50 = vmax.f32 %v1535_v2, %v1543_v44  ;;  %v1366_v22 = vmax.f32 %v1354_v5, %v1361_v35  ;;  %v1529_v51 = vld [vmem:[#allocation4 + $0xf6] ss:$5 sm:$0xff] }
 0x2b8   : > { %v1510_v40 = vmax.f32 %v1498_v18, %v1505_v30  ;;  %v1385_v27 = vld [vmem:[#allocation4 + $0x54] ss:$5 sm:$0xff]  ;;  %v1567_v9 = vld [vmem:[#allocation4 + $0x121] ss:$5 sm:$0xff]  ;;  %v1553_v63 = vld [vmem:[#allocation4 + $0xf8] ss:$5 sm:$0xff] }
 0x2b9   : > { %v1264_v8 = vpop.trf.xlu2  ;;  %v1559_v36 = vmax.f32 %v1547_v50, %v1555_v57  ;;  %v1378_v52 = vmax.f32 %v1366_v22, %v1373_v47  ;;  %v1541_v53 = vld [vmem:[#allocation4 + $0xf7] ss:$5 sm:$0xff]  ;;  %v1435_v34 = vld [vmem:[#allocation4 + $0x80] ss:$5 sm:$0xff] }
 0x2ba   : > { %v1225_v48 = vpop.trf.xlu0  ;;  %v1522_v41 = vmax.f32 %v1510_v40, %v1517_v49  ;;  %1280 = vst.msk [vmem:[#allocation4 + $0x188] sm:$0xff] %vm1134_vm2, %v1264_v8  ;;  %v1447_v3 = vld [vmem:[#allocation4 + $0x81] ss:$5 sm:$0xff] }
 0x2bb   : > { %1241 = vst.msk [vmem:[#allocation4 + $0x150] sm:$0xff] %vm1134_vm2, %v1225_v48  ;;  %v1571_v54 = vmax.f32 %v1559_v36, %v1567_v9  ;;  %v1390_v55 = vmax.f32 %v1378_v52, %v1385_v27 }
 0x2bc   : > { %v1534_v24 = vmax.f32 %v1522_v41, %v1529_v51  ;;  %v1343_v56 = vld [vmem:[#allocation4 + $0x78] ss:$5 sm:$0xff]  ;;  %v1351_v42 = vld [vmem:[#allocation4 + $0x79] ss:$5 sm:$0xff] }
 0x2bd   : > { %1575 = vst.msk [vmem:[#allocation5 + $0x38] sm:$0xff] %vm1134_vm2, %v1571_v54  ;;  %v1355_v33 = vmax.f32 %v1343_v56, %v1351_v42  ;;  %v1397_v60 = vld [vmem:[#allocation4 + $0x55] ss:$5 sm:$0xff]  ;;  %v1409_v61 = vld [vmem:[#allocation4 + $0x56] ss:$5 sm:$0xff] }
 0x2be   : > { %v1546_v37 = vmax.f32 %v1534_v24, %v1541_v53  ;;  %v1363_v62 = vld [vmem:[#allocation4 + $0x7a] ss:$5 sm:$0xff]  ;;  %v1402_v46 = vmax.f32 %v1390_v55, %v1397_v60  ;;  %v1375_v11 = vld [vmem:[#allocation4 + $0x7b] ss:$5 sm:$0xff] }
 0x2bf   : > { %v1367_v0 = vmax.f32 %v1355_v33, %v1363_v62  ;;  %v1421_v32 = vld [vmem:[#allocation4 + $0x57] ss:$5 sm:$0xff]  ;;  %v1433_v43 = vld [vmem:[#allocation4 + $0x58] ss:$5 sm:$0xff] }
 0x2c0   : > { %v1558_v31 = vmax.f32 %v1546_v37, %v1553_v63  ;;  %v1414_v28 = vmax.f32 %v1402_v46, %v1409_v61  ;;  %v1387_v1 = vld [vmem:[#allocation4 + $0x7c] ss:$5 sm:$0xff]  ;;  %v1399_v39 = vld [vmem:[#allocation4 + $0x7d] ss:$5 sm:$0xff] }
 0x2c1   : > { %v1265_v59 = vpop.trf.xlu2  ;;  %v1379_v13 = vmax.f32 %v1367_v0, %v1375_v11  ;;  %v1445_v45 = vld [vmem:[#allocation4 + $0x59] ss:$5 sm:$0xff]  ;;  %v1423_v19 = vld [vmem:[#allocation4 + $0x7f] ss:$5 sm:$0xff] }
 0x2c2   : > { %v1226_v12 = vpop.trf.xlu0  ;;  %v1570_v10 = vmax.f32 %v1558_v31, %v1565_v58  ;;  %1281 = vst.msk [vmem:[#allocation4 + $0x190] sm:$0xff] %vm1134_vm2, %v1265_v59  ;;  %v1426_v4 = vmax.f32 %v1414_v28, %v1421_v32  ;;  %v1411_v15 = vld [vmem:[#allocation4 + $0x7e] ss:$5 sm:$0xff] }
 0x2c3   : > { %1242 = vst.msk [vmem:[#allocation4 + $0x158] sm:$0xff] %vm1134_vm2, %v1226_v12  ;;  %v1391_v7 = vmax.f32 %v1379_v13, %v1387_v1  ;;  %v1801_v63 = vld [vmem:[#allocation5 + $0x20] sm:$0xff]  ;;  %v1802_v0 = vld [vmem:[#allocation5 + $0x28] sm:$0xff] }
 0x2c4   : > { %1574 = vst.msk [vmem:[#allocation5 + $0x30] sm:$0xff] %vm1134_vm2, %v1570_v10  ;;  %v1438_v16 = vmax.f32 %v1426_v4, %v1433_v43 }
 0x2c5   : > { %v1403_v14 = vmax.f32 %v1391_v7, %v1399_v39 }
 0x2c6   : > { %v1450_v17 = vmax.f32 %v1438_v16, %v1445_v45 }
 0x2c7   : > { %v1415_v20 = vmax.f32 %v1403_v14, %v1411_v15 }
 0x2c8   : > { %1454 = vst.msk [vmem:[#allocation5 + $0x10] sm:$0xff] %vm1134_vm2, %v1450_v17 }
 0x2c9   : > { %v1266_v21 = vpop.trf.xlu2  ;;  %v1427_v6 = vmax.f32 %v1415_v20, %v1423_v19 }
 0x2ca   : > { %1282 = vst.msk [vmem:[#allocation4 + $0x198] sm:$0xff] %vm1134_vm2, %v1266_v21  ;;  %v1227_v38 = vpop.trf.xlu0 }
 0x2cb   : > { %1243 = vst.msk [vmem:[#allocation4 + $0x160] sm:$0xff] %vm1134_vm2, %v1227_v38  ;;  %v1439_v26 = vmax.f32 %v1427_v6, %v1435_v34  ;;  %v1803_v15 = vld [vmem:[#allocation5 + $0x30] sm:$0xff] }
 0x2cd   : > { %v1451_v2 = vmax.f32 %v1439_v26, %v1447_v3 }
 0x2cf   : > { %v1799_v8 = vld [vmem:[#allocation5 + $0x10] sm:$0xff]  ;;  %1455 = vst.msk [vmem:[#allocation5 + $0x18] sm:$0xff] %vm1134_vm2, %v1451_v2 }
 0x2d0   : > { %1814 = vxpose.xlu1.b32.cont [3/15] (short) (narrow) %v1799_v8, 24 }
 0x2d1   : > { %v1267_v18 = vpop.trf.xlu2 }
 0x2d2   : > { %v1577_v29 = vld [vmem:[#allocation4 + $0x140] ss:$5 sm:$0xff]  ;;  %v1585_v23 = vld [vmem:[#allocation4 + $0x141] ss:$5 sm:$0xff]  ;;  %v1228_v25 = vpop.trf.xlu0  ;;  %1283 = vst.msk [vmem:[#allocation4 + $0x1a0] sm:$0xff] %vm1134_vm2, %v1267_v18 }
 0x2d3   : > { %v1592_v30 = vmax.f32 %v1577_v29, %v1585_v23  ;;  %v1597_v5 = vld [vmem:[#allocation4 + $0x142] ss:$5 sm:$0xff]  ;;  %1244 = vst.msk [vmem:[#allocation4 + $0x168] sm:$0xff] %vm1134_vm2, %v1228_v25  ;;  %v1609_v40 = vld [vmem:[#allocation4 + $0x143] ss:$5 sm:$0xff] }
 0x2d4   : > { %v1621_v47 = vld [vmem:[#allocation4 + $0x144] ss:$5 sm:$0xff] }
 0x2d5   : > { %v1604_v35 = vmax.f32 %v1592_v30, %v1597_v5 }
 0x2d6   : > { %v1800_v57 = vld [vmem:[#allocation5 + $0x18] sm:$0xff] }
 0x2d7   : > { %v1616_v44 = vmax.f32 %v1604_v35, %v1609_v40 }
 0x2d8   : > { %1815 = vxpose.xlu1.b32.cont [4/15] (short) (narrow) %v1800_v57, 24 }
 0x2d9   : > { %v1628_v48 = vmax.f32 %v1616_v44, %v1621_v47  ;;  %v1268_v49 = vpop.trf.xlu2  ;;  %v1804_v44 = vld [vmem:[#allocation5 + $0x38] sm:$0xff] }
 0x2da   : > { %1284 = vst.msk [vmem:[#allocation4 + $0x1a8] sm:$0xff] %vm1134_vm2, %v1268_v49  ;;  %v1229_v50 = vpop.trf.xlu0  ;;  %v1633_v22 = vld [vmem:[#allocation4 + $0x145] ss:$5 sm:$0xff]  ;;  %v1645_v51 = vld [vmem:[#allocation4 + $0x146] ss:$5 sm:$0xff] }
 0x2db   : > { %v1640_v41 = vmax.f32 %v1628_v48, %v1633_v22  ;;  %1245 = vst.msk [vmem:[#allocation4 + $0x170] sm:$0xff] %vm1134_vm2, %v1229_v50  ;;  %v1657_v52 = vld [vmem:[#allocation4 + $0x147] ss:$5 sm:$0xff]  ;;  %v1669_v24 = vld [vmem:[#allocation4 + $0x148] ss:$5 sm:$0xff] }
 0x2dc   : > { %v1681_v37 = vld [vmem:[#allocation4 + $0x149] ss:$5 sm:$0xff] }
 0x2dd   : > { %v1652_v36 = vmax.f32 %v1640_v41, %v1645_v51 }
 0x2df   : > { %v1664_v27 = vmax.f32 %v1652_v36, %v1657_v52 }
 0x2e0   : > { %1816 = vxpose.xlu1.b32.cont [5/15] (short) (narrow) %v1801_v63, 24 }
 0x2e1   : > { %v1269_v9 = vpop.trf.xlu2  ;;  %v1676_v53 = vmax.f32 %v1664_v27, %v1669_v24 }
 0x2e2   : > { %1285 = vst.msk [vmem:[#allocation4 + $0x1b0] sm:$0xff] %vm1134_vm2, %v1269_v9  ;;  %v1230_v54 = vpop.trf.xlu0 }
 0x2e3   : > { %1246 = vst.msk [vmem:[#allocation4 + $0x178] sm:$0xff] %vm1134_vm2, %v1230_v54  ;;  %v1688_v55 = vmax.f32 %v1676_v53, %v1681_v37 }
 0x2e5   : > { %1692 = vst.msk [vmem:[#allocation5 + $0x40] sm:$0xff] %vm1134_vm2, %v1688_v55 }
 0x2e8   : > { %1817 = vxpose.xlu1.b32.cont [6/15] (short) (narrow) %v1802_v0, 24 }
 0x2e9   : > { %v1581_v59 = vld [vmem:[#allocation4 + $0x190] ss:$5 sm:$0xff]  ;;  %v1589_v31 = vld [vmem:[#allocation4 + $0x191] ss:$5 sm:$0xff]  ;;  %v1270_v56 = vpop.trf.xlu2 }
 0x2ea   : > { %v1594_v42 = vmax.f32 %v1581_v59, %v1589_v31  ;;  %v1579_v12 = vld [vmem:[#allocation4 + $0x168] ss:$5 sm:$0xff]  ;;  %v1311_v58 = vpop.trf.xlu0  ;;  %v1587_v60 = vld [vmem:[#allocation4 + $0x169] ss:$5 sm:$0xff]  ;;  %1286 = vst.msk [vmem:[#allocation4 + $0x1b8] sm:$0xff] %vm1134_vm2, %v1270_v56 }
 0x2eb   : > { %v1601_v33 = vld [vmem:[#allocation4 + $0x192] ss:$5 sm:$0xff]  ;;  %v1593_v62 = vmax.f32 %v1579_v12, %v1587_v60  ;;  %v1613_v46 = vld [vmem:[#allocation4 + $0x193] ss:$5 sm:$0xff]  ;;  %v1599_v61 = vld [vmem:[#allocation4 + $0x16a] ss:$5 sm:$0xff] }
 0x2ec   : > { %v1606_v10 = vmax.f32 %v1594_v42, %v1601_v33  ;;  %v1611_v28 = vld [vmem:[#allocation4 + $0x16b] ss:$5 sm:$0xff]  ;;  %1327 = vst.msk [vmem:[#allocation4 + $0x200] sm:$0xff] %vm1134_vm2, %v1311_v58  ;;  %v1625_v43 = vld [vmem:[#allocation4 + $0x194] ss:$5 sm:$0xff] }
 0x2ed   : > { %v1605_v11 = vmax.f32 %v1593_v62, %v1599_v61  ;;  %v1623_v1 = vld [vmem:[#allocation4 + $0x16c] ss:$5 sm:$0xff]  ;;  %v1635_v39 = vld [vmem:[#allocation4 + $0x16d] ss:$5 sm:$0xff] }
 0x2ee   : > { %v1618_v32 = vmax.f32 %v1606_v10, %v1613_v46  ;;  %v1647_v38 = vld [vmem:[#allocation4 + $0x16e] ss:$5 sm:$0xff]  ;;  %v1659_v19 = vld [vmem:[#allocation4 + $0x16f] ss:$5 sm:$0xff] }
 0x2ef   : > { %v1617_v13 = vmax.f32 %v1605_v11, %v1611_v28  ;;  %v1671_v18 = vld [vmem:[#allocation4 + $0x170] ss:$5 sm:$0xff]  ;;  %v1683_v2 = vld [vmem:[#allocation4 + $0x171] ss:$5 sm:$0xff] }
 0x2f0   : > { %v1630_v7 = vmax.f32 %v1618_v32, %v1625_v43  ;;  %1818 = vxpose.xlu1.b32.cont [7/15] (short) (narrow) %v1803_v15, 24  ;;  %v1805_v50 = vld [vmem:[#allocation5 + $0x40] sm:$0xff] }
 0x2f1   : > { %v1271_v4 = vpop.trf.xlu2  ;;  %v1629_v45 = vmax.f32 %v1617_v13, %v1623_v1  ;;  %v1637_v14 = vld [vmem:[#allocation4 + $0x195] ss:$5 sm:$0xff]  ;;  %v1649_v6 = vld [vmem:[#allocation4 + $0x196] ss:$5 sm:$0xff] }
 0x2f2   : > { %1287 = vst.msk [vmem:[#allocation4 + $0x1c0] sm:$0xff] %vm1134_vm2, %v1271_v4  ;;  %v1312_v21 = vpop.trf.xlu0  ;;  %v1642_v20 = vmax.f32 %v1630_v7, %v1637_v14  ;;  %v1661_v3 = vld [vmem:[#allocation4 + $0x197] ss:$5 sm:$0xff]  ;;  %v1673_v5 = vld [vmem:[#allocation4 + $0x198] ss:$5 sm:$0xff] }
 0x2f3   : > { %1328 = vst.msk [vmem:[#allocation4 + $0x208] sm:$0xff] %vm1134_vm2, %v1312_v21  ;;  %v1641_v16 = vmax.f32 %v1629_v45, %v1635_v39  ;;  %v1685_v40 = vld [vmem:[#allocation4 + $0x199] ss:$5 sm:$0xff] }
 0x2f4   : > { %v1654_v26 = vmax.f32 %v1642_v20, %v1649_v6 }
 0x2f5   : > { %v1653_v17 = vmax.f32 %v1641_v16, %v1647_v38 }
 0x2f6   : > { %v1666_v25 = vmax.f32 %v1654_v26, %v1661_v3 }
 0x2f7   : > { %v1665_v34 = vmax.f32 %v1653_v17, %v1659_v19 }
 0x2f8   : > { %v1678_v8 = vmax.f32 %v1666_v25, %v1673_v5  ;;  %1819 = vxpose.xlu1.b32.cont [8/15] (short) (narrow) %v1804_v44, 24 }
 0x2f9   : > { %v1272_v29 = vpop.trf.xlu2  ;;  %v1677_v23 = vmax.f32 %v1665_v34, %v1671_v18 }
 0x2fa   : > { %1288 = vst.msk [vmem:[#allocation4 + $0x1c8] sm:$0xff] %vm1134_vm2, %v1272_v29  ;;  %v1313_v30 = vpop.trf.xlu0  ;;  %v1690_v47 = vmax.f32 %v1678_v8, %v1685_v40 }
 0x2fb   : > { %1329 = vst.msk [vmem:[#allocation4 + $0x210] sm:$0xff] %vm1134_vm2, %v1313_v30  ;;  %v1689_v35 = vmax.f32 %v1677_v23, %v1683_v2 }
 0x2fc   : > { %1694 = vst.msk [vmem:[#allocation5 + $0x50] sm:$0xff] %vm1134_vm2, %v1690_v47 }
 0x2fd   : > { %1693 = vst.msk [vmem:[#allocation5 + $0x48] sm:$0xff] %vm1134_vm2, %v1689_v35 }
 0x300   : > { %1820 = vxpose.xlu1.b32.cont [9/15] (short) (narrow) %v1805_v50, 24 }
 0x301   : > { %v1273_v48 = vpop.trf.xlu2 }
 0x302   : > { %1289 = vst.msk [vmem:[#allocation4 + $0x1d0] sm:$0xff] %vm1134_vm2, %v1273_v48  ;;  %v1314_v49 = vpop.trf.xlu0 }
 0x303   : > { %1330 = vst.msk [vmem:[#allocation4 + $0x218] sm:$0xff] %vm1134_vm2, %v1314_v49  ;;  %v1807_v37 = vld [vmem:[#allocation5 + $0x50] sm:$0xff] }
 0x304   : > { %v1806_v57 = vld [vmem:[#allocation5 + $0x48] sm:$0xff] }
 0x308   : > { %1821 = vxpose.xlu1.b32.cont [10/15] (short) (narrow) %v1806_v57, 24 }
 0x309   : > { %v1274_v22 = vpop.trf.xlu2 }
 0x30a   : > { %1290 = vst.msk [vmem:[#allocation4 + $0x1d8] sm:$0xff] %vm1134_vm2, %v1274_v22  ;;  %v1315_v41 = vpop.trf.xlu0 }
 0x30b   : > { %1331 = vst.msk [vmem:[#allocation4 + $0x220] sm:$0xff] %vm1134_vm2, %v1315_v41 }
 0x310   : > { %1822 = vxpose.xlu1.b32.cont [11/15] (short) (narrow) %v1807_v37, 24 }
 0x311   : > { %v1583_v51 = vld [vmem:[#allocation4 + $0x1b8] ss:$5 sm:$0xff]  ;;  %v1591_v36 = vld [vmem:[#allocation4 + $0x1b9] ss:$5 sm:$0xff]  ;;  %v1275_v52 = vpop.trf.xlu2 }
 0x312   : > { %v1595_v27 = vmax.f32 %v1583_v51, %v1591_v36  ;;  %1291 = vst.msk [vmem:[#allocation4 + $0x1e0] sm:$0xff] %vm1134_vm2, %v1275_v52  ;;  %v1316_v24 = vpop.trf.xlu0  ;;  %v1603_v9 = vld [vmem:[#allocation4 + $0x1ba] ss:$5 sm:$0xff]  ;;  %v1615_v54 = vld [vmem:[#allocation4 + $0x1bb] ss:$5 sm:$0xff] }
 0x313   : > { %1332 = vst.msk [vmem:[#allocation4 + $0x228] sm:$0xff] %vm1134_vm2, %v1316_v24  ;;  %v1627_v63 = vld [vmem:[#allocation4 + $0x1bc] ss:$5 sm:$0xff] }
 0x314   : > { %v1607_v53 = vmax.f32 %v1595_v27, %v1603_v9 }
 0x316   : > { %v1619_v55 = vmax.f32 %v1607_v53, %v1615_v54 }
 0x318   : > { %v1631_v59 = vmax.f32 %v1619_v55, %v1627_v63 }
 0x319   : > { %v1639_v31 = vld [vmem:[#allocation4 + $0x1bd] ss:$5 sm:$0xff]  ;;  %v1276_v56 = vpop.trf.xlu2  ;;  %v1651_v33 = vld [vmem:[#allocation4 + $0x1be] ss:$5 sm:$0xff] }
 0x31a   : > { %v1643_v42 = vmax.f32 %v1631_v59, %v1639_v31  ;;  %v1699_v12 = vld [vmem:[#allocation4 + $0x208] ss:$5 sm:$0xff]  ;;  %v1317_v58 = vpop.trf.xlu0  ;;  %v1705_v60 = vld [vmem:[#allocation4 + $0x209] ss:$5 sm:$0xff]  ;;  %1292 = vst.msk [vmem:[#allocation4 + $0x1e8] sm:$0xff] %vm1134_vm2, %v1276_v56 }
 0x31b   : > { %v1709_v62 = vmax.f32 %v1699_v12, %v1705_v60  ;;  %v1663_v46 = vld [vmem:[#allocation4 + $0x1bf] ss:$5 sm:$0xff]  ;;  %v1714_v61 = vld [vmem:[#allocation4 + $0x20a] ss:$5 sm:$0xff]  ;;  %1333 = vst.msk [vmem:[#allocation4 + $0x230] sm:$0xff] %vm1134_vm2, %v1317_v58 }
 0x31c   : > { %v1655_v10 = vmax.f32 %v1643_v42, %v1651_v33  ;;  %v1675_v11 = vld [vmem:[#allocation4 + $0x1c0] ss:$5 sm:$0xff]  ;;  %v1723_v28 = vld [vmem:[#allocation4 + $0x20b] ss:$5 sm:$0xff] }
 0x31d   : > { %v1718_v32 = vmax.f32 %v1709_v62, %v1714_v61  ;;  %v1687_v1 = vld [vmem:[#allocation4 + $0x1c1] ss:$5 sm:$0xff]  ;;  %v1732_v4 = vld [vmem:[#allocation4 + $0x20c] ss:$5 sm:$0xff] }
 0x31e   : > { %v1667_v0 = vmax.f32 %v1655_v10, %v1663_v46 }
 0x31f   : > { %v1727_v43 = vmax.f32 %v1718_v32, %v1723_v28 }
 0x320   : > { %v1679_v13 = vmax.f32 %v1667_v0, %v1675_v11 }
 0x321   : > { %v1277_v7 = vpop.trf.xlu2  ;;  %v1736_v21 = vmax.f32 %v1727_v43, %v1732_v4 }
 0x322   : > { %v1691_v45 = vmax.f32 %v1679_v13, %v1687_v1  ;;  %1293 = vst.msk [vmem:[#allocation4 + $0x1f0] sm:$0xff] %vm1134_vm2, %v1277_v7  ;;  %v1318_v39 = vpop.trf.xlu0  ;;  %v1741_v16 = vld [vmem:[#allocation4 + $0x20d] ss:$5 sm:$0xff]  ;;  %v1750_v14 = vld [vmem:[#allocation4 + $0x20e] ss:$5 sm:$0xff] }
 0x323   : > { %1334 = vst.msk [vmem:[#allocation4 + $0x238] sm:$0xff] %vm1134_vm2, %v1318_v39  ;;  %v1745_v38 = vmax.f32 %v1736_v21, %v1741_v16  ;;  %v1759_v17 = vld [vmem:[#allocation4 + $0x20f] ss:$5 sm:$0xff]  ;;  %v1768_v19 = vld [vmem:[#allocation4 + $0x210] ss:$5 sm:$0xff] }
 0x324   : > { %1695 = vst.msk [vmem:[#allocation5 + $0x58] sm:$0xff] %vm1134_vm2, %v1691_v45  ;;  %v1777_v25 = vld [vmem:[#allocation4 + $0x211] ss:$5 sm:$0xff] }
 0x325   : > { %v1754_v15 = vmax.f32 %v1745_v38, %v1750_v14  ;;  %v1998_v7 = vld [vmem:[%s4299_s4 + $0x10] sm:$0xf]  ;;  %v1996_v45 = vld [vmem:[%s4299_s4] sm:$0xff]  ;;  %v1997_v21 = vld [vmem:[%s4299_s4 + $0x8] sm:$0xff]  ;;  %s4304_s4 = smov 121  }
 0x327   : > { %v1763_v20 = vmax.f32 %v1754_v15, %v1759_v17 }
 0x329   : > { %v1278_v26 = vpop.trf.xlu2  ;;  %v1772_v18 = vmax.f32 %v1763_v20, %v1768_v19 }
 0x32a   : > { %v1701_v6 = vld [vmem:[#allocation4 + $0x230] ss:$5 sm:$0x7]  ;;  %v1707_v34 = vld [vmem:[#allocation4 + $0x231] ss:$5 sm:$0x7]  ;;  %v1319_v23 = vpop.trf.xlu0 }
 0x32b   : > { %v1710_v3 = vmax.f32 %v1701_v6, %v1707_v34  ;;  %v1716_v29 = vld [vmem:[#allocation4 + $0x232] ss:$5 sm:$0x7]  ;;  %v1725_v30 = vld [vmem:[#allocation4 + $0x233] ss:$5 sm:$0x7]  ;;  %v1781_v2 = vmax.f32 %v1772_v18, %v1777_v25 }
 0x32c   : > { %1294 = vst.msk [vmem:[#allocation4 + $0x1f8] sm:$0xff] %vm1134_vm2, %v1278_v26  ;;  %v1808_v35 = vld [vmem:[#allocation5 + $0x58] sm:$0xff]  ;;  %v1734_v8 = vld [vmem:[#allocation4 + $0x234] ss:$5 sm:$0x7] }
 0x32d   : > { %v1719_v5 = vmax.f32 %v1710_v3, %v1716_v29  ;;  %1823 = vxpose.xlu1.b32.cont [12/15] (short) (narrow) %v1808_v35, 24  ;;  %1336 = vst.msk [vmem:[#allocation4 + $0x240] sm:$0x1f] %vm1335_vm5, %v1319_v23  ;;  %v1743_v47 = vld [vmem:[#allocation4 + $0x235] ss:$5 sm:$0x7] }
 0x32e   : > { %1784 = vst.msk [vmem:[#allocation5 + $0x68] sm:$0xff] %vm1134_vm2, %v1781_v2 }
 0x32f   : > { %v1728_v40 = vmax.f32 %v1719_v5, %v1725_v30 }
 0x331   : > { %v1737_v44 = vmax.f32 %v1728_v40, %v1734_v8 }
 0x333   : > { %v1746_v48 = vmax.f32 %v1737_v44, %v1743_v47  ;;  %v1697_v49 = vld [vmem:[#allocation4 + $0x1e0] ss:$5 sm:$0xff]  ;;  %v1703_v50 = vld [vmem:[#allocation4 + $0x1e1] ss:$5 sm:$0xff]  ;;  %v1775_v62 = vld [vmem:[#allocation4 + $0x1e9] ss:$5 sm:$0xff] }
 0x334   : > { %v1708_v22 = vmax.f32 %v1697_v49, %v1703_v50  ;;  %v1712_v41 = vld [vmem:[#allocation4 + $0x1e2] ss:$5 sm:$0xff]  ;;  %v1721_v36 = vld [vmem:[#allocation4 + $0x1e3] ss:$5 sm:$0xff] }
 0x335   : > { %v1752_v51 = vld [vmem:[#allocation4 + $0x236] ss:$5 sm:$0x7]  ;;  %v1761_v27 = vld [vmem:[#allocation4 + $0x237] ss:$5 sm:$0x7] }
 0x336   : > { %v1717_v57 = vmax.f32 %v1708_v22, %v1712_v41  ;;  %v1755_v52 = vmax.f32 %v1746_v48, %v1752_v51  ;;  %v1770_v9 = vld [vmem:[#allocation4 + $0x238] ss:$5 sm:$0x7]  ;;  %v1779_v55 = vld [vmem:[#allocation4 + $0x239] ss:$5 sm:$0x7] }
 0x337   : > { %v1730_v53 = vld [vmem:[#allocation4 + $0x1e4] ss:$5 sm:$0xff]  ;;  %v1739_v63 = vld [vmem:[#allocation4 + $0x1e5] ss:$5 sm:$0xff] }
 0x338   : > { %v1726_v24 = vmax.f32 %v1717_v57, %v1721_v36  ;;  %v1764_v54 = vmax.f32 %v1755_v52, %v1761_v27  ;;  %v1748_v56 = vld [vmem:[#allocation4 + $0x1e6] ss:$5 sm:$0xff]  ;;  %v1757_v58 = vld [vmem:[#allocation4 + $0x1e7] ss:$5 sm:$0xff] }
 0x339   : > { %v1766_v60 = vld [vmem:[#allocation4 + $0x1e8] ss:$5 sm:$0xff] }
 0x33a   : > { %v1735_v37 = vmax.f32 %v1726_v24, %v1730_v53  ;;  %v1773_v59 = vmax.f32 %v1764_v54, %v1770_v9  ;;  %v1810_v0 = vld [vmem:[#allocation5 + $0x68] sm:$0xff] }
 0x33c   : > { %v1744_v31 = vmax.f32 %v1735_v37, %v1739_v63  ;;  %v1782_v42 = vmax.f32 %v1773_v59, %v1779_v55  ;;  %v3149_v55 = vld [vmem:[%s4246_s3 + $0x4] sm:$0xf]  ;;  %v2956_v63 = vld [vmem:[%s4246_s3 + $0x8] sm:$0xf0] }
 0x33e   : > { %v1753_v12 = vmax.f32 %v1744_v31, %v1748_v56  ;;  %1786 = vst.msk [vmem:[#allocation5 + $0x70] sm:$0x7] %vm1785_vm9, %v1782_v42  ;;  %v2959_v56 = vor.u32 %v3149_v55, %v2956_v63  ;;  %v2954_v42 = vld [vmem:[%s4246_s3] sm:$0xf] }
 0x340   : > { %v1762_v33 = vmax.f32 %v1753_v12, %v1757_v58  ;;  %v3150_v12 = vld [vmem:[%s4246_s3 + $0x4] sm:$0xf0] }
 0x342   : > { %v1771_v10 = vmax.f32 %v1762_v33, %v1766_v60  ;;  %v2955_v33 = vor.u32 %v3150_v12, %v2954_v42  ;;  %v1995_v60 = vld [vmem:[%s4246_s3 + $0x10] sm:$0x33] }
 0x344   : > { %v1780_v46 = vmax.f32 %v1771_v10, %v1775_v62  ;;  %v2022_v10 = vunpack.c.h.b16 %v1995_v60 }
 0x345   : > { %v1811_v32 = vld [vmem:[#allocation5 + $0x70] sm:$0x7] }
 0x346   : > { %1783 = vst.msk [vmem:[#allocation5 + $0x60] sm:$0xff] %vm1134_vm2, %v1780_v46  ;;  %v2026_v62 = vpack.c.b16 %v2022_v10, %v2022_v10  ;;  %v2021_v46 = vunpack.c.l.b16 %v1995_v60 }
 0x34d   : > { %v1809_v61 = vld [vmem:[#allocation5 + $0x60] sm:$0xff] }
 0x34e   : > { %1824 = vxpose.xlu1.b32.cont [13/15] (short) (narrow) %v1809_v61, 24  ;;  %v2025_v61 = vpack.c.b16 %v2021_v46, %v2021_v46 }
 0x356   : > { %1825 = vxpose.xlu1.b32.cont [14/15] (short) (narrow) %v1810_v0, 24 }
 0x35e   : > { %1826 = vxpose.xlu1.b32.end [15/15] (short) (narrow) %v1811_v32, 24 }
 0x392   : > { %v1828_v11 = vpop.trf.xlu1 }
 0x393   : > { %v1844_v28 = vpack.c.bf16 %v1828_v11, %v1828_v11 }
 0x395   : > { %1903 = vrot.lane.b32.xlu0 %v1844_v28, %s4277_s13  ;;  %1848 = vst.msk [vmem:[#allocation3] sm:$0xf] %vm1847_vm10, %v1844_v28 }
 0x39a   : > { %v1829_v13 = vpop.trf.xlu1 }
 0x39b   : > { %v1845_v43 = vpack.c.bf16 %v1829_v13, %v1829_v13 }
 0x39d   : > { %1891 = vrot.lane.b32.xlu0 %v1844_v28, %s4273_s30  ;;  %1941 = vrot.lane.b32.xlu2 %v1845_v43, %s4290_s12  ;;  %1849 = vst.msk [vmem:[#allocation3 + $0x4] sm:$0xf] %vm1847_vm10, %v1845_v43 }
 0x3a2   : > { %v1830_v1 = vpop.trf.xlu1 }
 0x3a3   : > { %v1846_v4 = vpack.c.bf16 %v1830_v1, %v1830_v1 }
 0x3a4   : > { %v3134_v58 = vld [vmem:[#allocation3] sm:$0xff] }
 0x3a5   : > { %1951 = vrot.lane.b32.xlu0 %v1844_v28, %s4288_s24  ;;  %1929 = vrot.lane.b32.xlu2 %v1845_v43, %s4275_s14  ;;  %1851 = vst.msk [vmem:[#allocation3 + $0x8] sm:$0x3] %vm1850_vm11, %v1846_v4 }
 0x3ad   : > { %1869 = vrot.lane.b32.xlu2 %v1845_v43, %s4294_s25  ;;  %1893 = vrot.lane.b32.xlu0 %v1845_v43, %s4273_s30 }
 0x3b5   : > { %1955 = vrot.lane.b32.xlu0 %v1846_v4, %s4288_s24  ;;  %1895 = vrot.lane.b32.xlu2 %v1846_v4, %s4273_s30 }
 0x3b8   : > { %1939 = vrot.lane.b32.xlu1 %v1844_v28, %s4290_s12 }
 0x3bd   : > { %1943 = vrot.lane.b32.xlu0 %v1846_v4, %s4290_s12  ;;  %1857 = vrot.lane.b32.xlu2 %v1845_v43, %s4293_s22 }
 0x3c0   : > { %1879 = vrot.lane.b32.xlu1 %v1844_v28, %s4298_s15 }
 0x3c5   : > { %1883 = vrot.lane.b32.xlu0 %v1846_v4, %s4298_s15  ;;  %1917 = vrot.lane.b32.xlu2 %v1845_v43, %s4292_s29 }
 0x3c8   : > { %1867 = vrot.lane.b32.xlu1 %v1844_v28, %s4294_s25 }
 0x3cd   : > { %1871 = vrot.lane.b32.xlu0 %v1846_v4, %s4294_s25  ;;  %1907 = vrot.lane.b32.xlu2 %v1846_v4, %s4277_s13 }
 0x3d0   : > { %1927 = vrot.lane.b32.xlu1 %v1844_v28, %s4275_s14 }
 0x3d5   : > { %1931 = vrot.lane.b32.xlu0 %v1846_v4, %s4275_s14  ;;  %2011 = vperm.xlu2 %3241, %v1998_v7  }
 0x3d8   : > { %1953 = vrot.lane.b32.xlu1 %v1845_v43, %s4288_s24 }
 0x3dd   : > { %1919 = vrot.lane.b32.xlu0 %v1846_v4, %s4292_s29 }
 0x3e0   : > { %1881 = vrot.lane.b32.xlu1 %v1845_v43, %s4298_s15 }
 0x3e5   : > { %1859 = vrot.lane.b32.xlu0 %v1846_v4, %s4293_s22 }
 0x3e8   : > { %1915 = vrot.lane.b32.xlu1 %v1844_v28, %s4292_s29 }
 0x3ed   : > { %1855 = vrot.lane.b32.xlu0 %v1844_v28, %s4293_s22 }
 0x3f0   : > { %1905 = vrot.lane.b32.xlu1 %v1845_v43, %s4277_s13  ;;  %s377_s13 = sand.u32 1, %s3296_s18  }
 0x3f1   : > { %s2766_s0 = scalar_lea.sflag [#allocation8], %s377_s13 }
 0x3f5   : > { %2001 = vperm.xlu0 %3239, %v1996_v45  }
 0x3f7   : > { %v1942_v39 = vpop.permute.xlu2 %1941 }
 0x3f8   : > { %1949 = vst.msk [vmem:[#allocation3 + $0x64] sm:$0xf] %vm1847_vm10, %v1942_v39  ;;  %2006 = vperm.xlu1 %3240, %v1997_v21  }
 0x3ff   : > { %v1930_v16 = vpop.permute.xlu2 %1929 }
 0x400   : > { %1937 = vst.msk [vmem:[#allocation3 + $0x58] sm:$0xf] %vm1847_vm10, %v1930_v16 }
 0x407   : > { %v1904_v38 = vpop.permute.xlu0 %1903  ;;  %v1870_v14 = vpop.permute.xlu2 %1869 }
 0x408   : > { %1912 = vst.msk [vmem:[#allocation3 + $0x3c] sm:$0xf] %vm1847_vm10, %v1904_v38 }
 0x409   : > { %1877 = vst.msk [vmem:[#allocation3 + $0x1c] sm:$0xf] %vm1847_vm10, %v1870_v14 }
 0x40f   : > { %v1892_v15 = vpop.permute.xlu0 %1891  ;;  %v1896_v17 = vpop.permute.xlu2 %1895 }
 0x410   : > { %1900 = vst.msk [vmem:[#allocation3 + $0x30] sm:$0xf] %vm1847_vm10, %v1892_v15 }
 0x411   : > { %1902 = vst.msk [vmem:[#allocation3 + $0x38] sm:$0x3] %vm1850_vm11, %v1896_v17 }
 0x417   : > { %v1952_v20 = vpop.permute.xlu0 %1951  ;;  %v1858_v19 = vpop.permute.xlu2 %1857 }
 0x418   : > { %1960 = vst.msk [vmem:[#allocation3 + $0x6c] sm:$0xf] %vm1847_vm10, %v1952_v20  ;;  %v3141_v6 = vld [vmem:[#allocation3 + $0x38] sm:$0xff] }
 0x419   : > { %1865 = vst.msk [vmem:[#allocation3 + $0x10] sm:$0xf] %vm1847_vm10, %v1858_v19  ;;  %2126 = vmatpush.bf16.msrb.mxu1 %v3141_v6 }
 0x41f   : > { %v1894_v34 = vpop.permute.xlu0 %1893  ;;  %v1918_v26 = vpop.permute.xlu2 %1917 }
 0x420   : > { %1901 = vst.msk [vmem:[#allocation3 + $0x34] sm:$0xf] %vm1847_vm10, %v1894_v34 }
 0x421   : > { %1925 = vst.msk [vmem:[#allocation3 + $0x4c] sm:$0xf] %vm1847_vm10, %v1918_v26 }
 0x427   : > { %v1956_v18 = vpop.permute.xlu0 %1955  ;;  %v1908_v3 = vpop.permute.xlu2 %1907  ;;  %v3140_v29 = vld [vmem:[#allocation3 + $0x30] sm:$0xff] }
 0x428   : > { %1962 = vst.msk [vmem:[#allocation3 + $0x74] sm:$0x3] %vm1850_vm11, %v1956_v18  ;;  %2127 = vmatpush.bf16.msrb.mxu1 %v3140_v29 }
 0x429   : > { %1914 = vst.msk [vmem:[#allocation3 + $0x44] sm:$0x3] %vm1850_vm11, %v1908_v3 }
 0x42a   : > { %v1940_v23 = vpop.permute.xlu1 %1939 }
 0x42b   : > { %1948 = vst.msk [vmem:[#allocation3 + $0x60] sm:$0xf] %vm1847_vm10, %v1940_v23 }
 0x42f   : > { %v1944_v25 = vpop.permute.xlu0 %1943  ;;  %v2012_v16 = vpop.permute.xlu2 %2011 }
 0x430   : > { %1950 = vst.msk [vmem:[#allocation3 + $0x68] sm:$0x3] %vm1850_vm11, %v1944_v25 }
 0x432   : > { %v1880_v30 = vpop.permute.xlu1 %1879  ;;  %v3146_v51 = vld [vmem:[#allocation3 + $0x60] sm:$0xff] }
 0x433   : > { %1888 = vst.msk [vmem:[#allocation3 + $0x24] sm:$0xf] %vm1847_vm10, %v1880_v30 }
 0x437   : > { %v1884_v2 = vpop.permute.xlu0 %1883  ;;  %v3147_v50 = vld [vmem:[#allocation3 + $0x68] sm:$0xff] }
 0x438   : > { %1890 = vst.msk [vmem:[#allocation3 + $0x2c] sm:$0x3] %vm1850_vm11, %v1884_v2 }
 0x43a   : > { %v1868_v5 = vpop.permute.xlu1 %1867 }
 0x43b   : > { %1876 = vst.msk [vmem:[#allocation3 + $0x18] sm:$0xf] %vm1847_vm10, %v1868_v5 }
 0x43f   : > { %v1872_v35 = vpop.permute.xlu0 %1871 }
 0x440   : > { %1878 = vst.msk [vmem:[#allocation3 + $0x20] sm:$0x3] %vm1850_vm11, %v1872_v35 }
 0x442   : > { %v1928_v8 = vpop.permute.xlu1 %1927  ;;  %v3137_v9 = vld [vmem:[#allocation3 + $0x18] sm:$0xff] }
 0x443   : > { %1936 = vst.msk [vmem:[#allocation3 + $0x54] sm:$0xf] %vm1847_vm10, %v1928_v8 }
 0x447   : > { %v1932_v40 = vpop.permute.xlu0 %1931  ;;  %v3138_v36 = vld [vmem:[#allocation3 + $0x20] sm:$0xff] }
 0x448   : > { %1938 = vst.msk [vmem:[#allocation3 + $0x5c] sm:$0x3] %vm1850_vm11, %v1932_v40 }
 0x44a   : > { %v1954_v44 = vpop.permute.xlu1 %1953 }
 0x44b   : > { %1961 = vst.msk [vmem:[#allocation3 + $0x70] sm:$0xf] %vm1847_vm10, %v1954_v44 }
 0x44f   : > { %v1920_v47 = vpop.permute.xlu0 %1919  ;;  %v3145_v52 = vld [vmem:[#allocation3 + $0x58] sm:$0xff] }
 0x450   : > { %1926 = vst.msk [vmem:[#allocation3 + $0x50] sm:$0x3] %vm1850_vm11, %v1920_v47 }
 0x452   : > { %v1882_v48 = vpop.permute.xlu1 %1881  ;;  %v3148_v49 = vld [vmem:[#allocation3 + $0x70] sm:$0xff] }
 0x453   : > { %1889 = vst.msk [vmem:[#allocation3 + $0x28] sm:$0xf] %vm1847_vm10, %v1882_v48  ;;  %2145 = vmatpush.bf16.msrb.mxu2 %v3148_v49 }
 0x457   : > { %v1860_v22 = vpop.permute.xlu0 %1859  ;;  %2146 = vmatpush.bf16.msrb.mxu2 %v3147_v50  ;;  %v3144_v53 = vld [vmem:[#allocation3 + $0x50] sm:$0xff] }
 0x458   : > { %1866 = vst.msk [vmem:[#allocation3 + $0x14] sm:$0x3] %vm1850_vm11, %v1860_v22 }
 0x45a   : > { %v1916_v41 = vpop.permute.xlu1 %1915  ;;  %v3139_v57 = vld [vmem:[#allocation3 + $0x28] sm:$0xff] }
 0x45b   : > { %1924 = vst.msk [vmem:[#allocation3 + $0x48] sm:$0xf] %vm1847_vm10, %v1916_v41  ;;  %2128 = vmatpush.bf16.msrb.mxu1 %v3139_v57  ;;  %2147 = vmatpush.bf16.msrb.mxu2 %v3146_v51 }
 0x45f   : > { %v1856_v27 = vpop.permute.xlu0 %1855  ;;  %2129 = vmatpush.bf16.msrb.mxu1 %v3138_v36  ;;  %2148 = vmatpush.bf16.msrb.mxu2 %v3145_v52  ;;  %v3136_v54 = vld [vmem:[#allocation3 + $0x10] sm:$0xff] }
 0x460   : > { %1864 = vst.msk [vmem:[#allocation3 + $0xc] sm:$0xf] %vm1847_vm10, %v1856_v27 }
 0x462   : > { %v1906_v24 = vpop.permute.xlu1 %1905  ;;  %v3143_v37 = vld [vmem:[#allocation3 + $0x48] sm:$0xff] }
 0x463   : > { %1913 = vst.msk [vmem:[#allocation3 + $0x40] sm:$0xf] %vm1847_vm10, %v1906_v24  ;;  %2130 = vmatpush.bf16.msrb.mxu1 %v3137_v9  ;;  %2149 = vmatpush.bf16.msrb.mxu2 %v3144_v53 }
 0x467   : > { %2131 = vmatpush.bf16.msrb.mxu1 %v3136_v54  ;;  %2150 = vmatpush.bf16.msrb.mxu2 %v3143_v37  ;;  %v3135_v59 = vld [vmem:[#allocation3 + $0x8] sm:$0xff]  ;;  %v2002_v0 = vpop.permute.xlu0 %2001 }
 0x46a   : > { %v3142_v31 = vld [vmem:[#allocation3 + $0x40] sm:$0xff]  ;;  %v2007_v1 = vpop.permute.xlu1 %2006 }
 0x46b   : > { %2132 = vmatpush.bf16.msrb.mxu1 %v3135_v59  ;;  %2151 = vmatpush.bf16.msrb.mxu2 %v3142_v31 }
 0x46e   : > { %3020 = vmatmul.msk.bf16.vlgmr.msrb.gmra.mxu2 %vm4300_vm12, %v2959_v56 }
 0x46f   : > { %2133 = vmatpush.bf16.msrb.mxu1 %v3134_v58 }
 0x472   : > { %2134 = vmatmul.bf16.vlgmr.msrb.gmra.mxu1 %v2955_v33 }
 0x47e   : > { %3021 = vmatmul.msk.bf16.gmra.mxu2 %vm4301_vm13, %v2026_v62 }
 0x482   : > { %2139 = vmatmul.bf16.gmra.mxu1 %v2025_v61 }
 0x4ef   : > { %v2135_v32 = vpop.f32.mrf.mxu1 }
 0x4f0   : > { %v2136_v11 = vadd.f32 %v2135_v32, %v2002_v0 }
 0x4f1   : > { %v2153_v28 = vpop.f32.mrf.mxu2 }
 0x4f2   : > { %v2154_v13 = vadd.f32 %v2153_v28, %v2136_v11 }
 0x4f4   : > { %v2162_v43 = vmax.f32 %v2154_v13, 0.0 }
 0x4f6   : > { %2165 = vxpose.xlu0.b32.start [1/3] (short) (narrow) %v2162_v43, 112 }
 0x4f7   : > { %v2137_v4 = vpop.f32.mrf.mxu1 }
 0x4f8   : > { %v2138_v7 = vadd.f32 %v2137_v4, %v2007_v1 }
 0x4f9   : > { %v2155_v45 = vpop.f32.mrf.mxu2 }
 0x4fa   : > { %v2156_v21 = vadd.f32 %v2155_v45, %v2138_v7 }
 0x4fc   : > { %v2163_v39 = vmax.f32 %v2156_v21, 0.0 }
 0x4fe   : > { %2166 = vxpose.xlu0.b32.cont [2/3] (short) (narrow) %v2163_v39, 112 }
 0x4ff   : > { %v2140_v38 = vpop.f32.mrf.mxu1 }
 0x500   : > { %v2141_v14 = vadd.f32 %v2140_v38, %v2012_v16 }
 0x501   : > { %v2158_v15 = vpop.f32.mrf.mxu2 }
 0x502   : > { %v2159_v17 = vadd.f32 %v2158_v15, %v2141_v14 }
 0x504   : > { %v2164_v20 = vmax.f32 %v2159_v17, 0.0 }
 0x506   : > { %2167 = vxpose.xlu0.b32.end [3/3] (short) (narrow) %v2164_v20, 112 }
 0x507   : > { %v2142_v19 = vpop.f32.mrf.mxu1 }
 0x509   : > { %v2160_v6 = vpop.f32.mrf.mxu2 }
 0x59a   : > { %v2181_v34 = vpop.trf.xlu0 }
 0x59b   : > { %2197 = vst.msk [vmem:[#allocation4] sm:$0xff] %vm1134_vm2, %v2181_v34 }
 0x5a2   : > { %v2182_v26 = vpop.trf.xlu0 }
 0x5a3   : > { %2198 = vst.msk [vmem:[#allocation4 + $0x8] sm:$0xff] %vm1134_vm2, %v2182_v26 }
 0x5aa   : > { %v2183_v18 = vpop.trf.xlu0 }
 0x5ab   : > { %2199 = vst.msk [vmem:[#allocation4 + $0x10] sm:$0xff] %vm1134_vm2, %v2183_v18 }
 0x5b2   : > { %v2184_v3 = vpop.trf.xlu0 }
 0x5b3   : > { %2200 = vst.msk [vmem:[#allocation4 + $0x18] sm:$0xff] %vm1134_vm2, %v2184_v3 }
 0x5ba   : > { %v2185_v29 = vpop.trf.xlu0 }
 0x5bb   : > { %2201 = vst.msk [vmem:[#allocation4 + $0x20] sm:$0xff] %vm1134_vm2, %v2185_v29 }
 0x5c2   : > { %v2186_v23 = vpop.trf.xlu0  ;;  %v2212_v25 = vld [vmem:[#allocation4] ss:$5 sm:$0xff]  ;;  %v2215_v30 = vld [vmem:[#allocation4 + $0x1] ss:$5 sm:$0xff] }
 0x5c3   : > { %2202 = vst.msk [vmem:[#allocation4 + $0x28] sm:$0xff] %vm1134_vm2, %v2186_v23  ;;  %v2218_v2 = vmax.f32 %v2212_v25, %v2215_v30  ;;  %v2221_v5 = vld [vmem:[#allocation4 + $0x2] ss:$5 sm:$0xff]  ;;  %v2227_v8 = vld [vmem:[#allocation4 + $0x3] ss:$5 sm:$0xff] }
 0x5c4   : > { %v2233_v44 = vld [vmem:[#allocation4 + $0x4] ss:$5 sm:$0xff] }
 0x5c5   : > { %v2224_v35 = vmax.f32 %v2218_v2, %v2221_v5 }
 0x5c7   : > { %v2230_v40 = vmax.f32 %v2224_v35, %v2227_v8 }
 0x5c9   : > { %v2236_v47 = vmax.f32 %v2230_v40, %v2233_v44 }
 0x5ca   : > { %v2187_v48 = vpop.trf.xlu0  ;;  %v2239_v49 = vld [vmem:[#allocation4 + $0x5] ss:$5 sm:$0xff]  ;;  %v2245_v22 = vld [vmem:[#allocation4 + $0x6] ss:$5 sm:$0xff] }
 0x5cb   : > { %2203 = vst.msk [vmem:[#allocation4 + $0x30] sm:$0xff] %vm1134_vm2, %v2187_v48  ;;  %v2242_v50 = vmax.f32 %v2236_v47, %v2239_v49  ;;  %v2251_v57 = vld [vmem:[#allocation4 + $0x7] ss:$5 sm:$0xff]  ;;  %v2257_v36 = vld [vmem:[#allocation4 + $0x8] ss:$5 sm:$0xff] }
 0x5cc   : > { %v2263_v24 = vld [vmem:[#allocation4 + $0x9] ss:$5 sm:$0xff] }
 0x5cd   : > { %v2248_v41 = vmax.f32 %v2242_v50, %v2245_v22  ;;  %v2461_v49 = vld [vmem:[%s4249_s6 + $0x8] sm:$0xff] }
 0x5cf   : > { %v2254_v51 = vmax.f32 %v2248_v41, %v2251_v57 }
 0x5d1   : > { %v2260_v52 = vmax.f32 %v2254_v51, %v2257_v36 }
 0x5d2   : > { %v2188_v27 = vpop.trf.xlu0 }
 0x5d3   : > { %2204 = vst.msk [vmem:[#allocation4 + $0x38] sm:$0xff] %vm1134_vm2, %v2188_v27  ;;  %v2266_v9 = vmax.f32 %v2260_v52, %v2263_v24 }
 0x5d5   : > { %2269 = vst.msk [vmem:[#allocation5] sm:$0xff] %vm1134_vm2, %v2266_v9 }
 0x5da   : > { %v2189_v53 = vpop.trf.xlu0 }
 0x5db   : > { %2205 = vst.msk [vmem:[#allocation4 + $0x40] sm:$0xff] %vm1134_vm2, %v2189_v53 }
 0x5dc   : > { %v2273_v54 = vld [vmem:[#allocation5] sm:$0xff] }
 0x5dd   : > { %2276 = vxpose.xlu1.b32.start [1/3] (short) (narrow) %v2273_v54, 24 }
 0x5e2   : > { %v2190_v37 = vpop.trf.xlu0 }
 0x5e3   : > { %2206 = vst.msk [vmem:[#allocation4 + $0x48] sm:$0xff] %vm1134_vm2, %v2190_v37 }
 0x5ea   : > { %v2191_v55 = vpop.trf.xlu0  ;;  %v2213_v63 = vld [vmem:[#allocation4 + $0x28] ss:$5 sm:$0xff]  ;;  %v2216_v59 = vld [vmem:[#allocation4 + $0x29] ss:$5 sm:$0xff] }
 0x5eb   : > { %2207 = vst.msk [vmem:[#allocation4 + $0x50] sm:$0xff] %vm1134_vm2, %v2191_v55  ;;  %v2219_v31 = vmax.f32 %v2213_v63, %v2216_v59  ;;  %v2222_v56 = vld [vmem:[#allocation4 + $0x2a] ss:$5 sm:$0xff]  ;;  %v2228_v12 = vld [vmem:[#allocation4 + $0x2b] ss:$5 sm:$0xff] }
 0x5ec   : > { %v2234_v33 = vld [vmem:[#allocation4 + $0x2c] ss:$5 sm:$0xff] }
 0x5ed   : > { %v2225_v42 = vmax.f32 %v2219_v31, %v2222_v56 }
 0x5ef   : > { %v2231_v58 = vmax.f32 %v2225_v42, %v2228_v12 }
 0x5f1   : > { %v2237_v60 = vmax.f32 %v2231_v58, %v2234_v33  ;;  %v2460_v33 = vld [vmem:[%s4249_s6] sm:$0xff] }
 0x5f2   : > { %v2192_v10 = vpop.trf.xlu0  ;;  %v2240_v62 = vld [vmem:[#allocation4 + $0x2d] ss:$5 sm:$0xff]  ;;  %v2246_v61 = vld [vmem:[#allocation4 + $0x2e] ss:$5 sm:$0xff] }
 0x5f3   : > { %2208 = vst.msk [vmem:[#allocation4 + $0x58] sm:$0xff] %vm1134_vm2, %v2192_v10  ;;  %v2243_v46 = vmax.f32 %v2237_v60, %v2240_v62  ;;  %v2252_v32 = vld [vmem:[#allocation4 + $0x2f] ss:$5 sm:$0xff]  ;;  %v2258_v28 = vld [vmem:[#allocation4 + $0x30] ss:$5 sm:$0xff] }
 0x5f4   : > { %v2264_v1 = vld [vmem:[#allocation4 + $0x31] ss:$5 sm:$0xff] }
 0x5f5   : > { %v2249_v0 = vmax.f32 %v2243_v46, %v2246_v61  ;;  %v2462_v10 = vld [vmem:[%s4249_s6 + $0x10] sm:$0xf] }
 0x5f7   : > { %v2255_v11 = vmax.f32 %v2249_v0, %v2252_v32 }
 0x5f9   : > { %v2261_v13 = vmax.f32 %v2255_v11, %v2258_v28 }
 0x5fa   : > { %v2193_v43 = vpop.trf.xlu0  ;;  %v2214_v7 = vld [vmem:[#allocation4 + $0x50] ss:$5 sm:$0xf] }
 0x5fb   : > { %2209 = vst.msk [vmem:[#allocation4 + $0x60] sm:$0xff] %vm1134_vm2, %v2193_v43  ;;  %v2267_v4 = vmax.f32 %v2261_v13, %v2264_v1  ;;  %v3024_v43 = vld [vmem:[%s4248_s5] sm:$0xf]  ;;  %v3167_v1 = vld [vmem:[%s4248_s5 + $0x4] sm:$0xf0] }
 0x5fd   : > { %2270 = vst.msk [vmem:[#allocation5 + $0x8] sm:$0xff] %vm1134_vm2, %v2267_v4 }
 0x602   : > { %v2217_v45 = vld [vmem:[#allocation4 + $0x51] ss:$5 sm:$0xf]  ;;  %v2194_v39 = vpop.trf.xlu0  ;;  %v2223_v16 = vld [vmem:[#allocation4 + $0x52] ss:$5 sm:$0xf] }
 0x603   : > { %v2220_v21 = vmax.f32 %v2214_v7, %v2217_v45  ;;  %v2229_v14 = vld [vmem:[#allocation4 + $0x53] ss:$5 sm:$0xf]  ;;  %2211 = vst.msk [vmem:[#allocation4 + $0x68] sm:$0x3] %vm2210_vm14, %v2194_v39 }
 0x604   : > { %v2274_v15 = vld [vmem:[#allocation5 + $0x8] sm:$0xff]  ;;  %v2259_v23 = vld [vmem:[#allocation4 + $0x58] ss:$5 sm:$0xf] }
 0x605   : > { %v2226_v38 = vmax.f32 %v2220_v21, %v2223_v16  ;;  %2277 = vxpose.xlu1.b32.cont [2/3] (short) (narrow) %v2274_v15, 24  ;;  %v2235_v20 = vld [vmem:[#allocation4 + $0x54] ss:$5 sm:$0xf]  ;;  %v3025_v21 = vor.u32 %v3167_v1, %v3024_v43 }
 0x606   : > { %v2241_v6 = vld [vmem:[#allocation4 + $0x55] ss:$5 sm:$0xf]  ;;  %v2247_v26 = vld [vmem:[#allocation4 + $0x56] ss:$5 sm:$0xf] }
 0x607   : > { %v2232_v17 = vmax.f32 %v2226_v38, %v2229_v14  ;;  %v2253_v3 = vld [vmem:[#allocation4 + $0x57] ss:$5 sm:$0xf]  ;;  %v2459_v38 = vld [vmem:[%s4248_s5 + $0x10] sm:$0x33] }
 0x608   : > { %v2485_v15 = vunpack.c.l.b16 %v2459_v38 }
 0x609   : > { %v2238_v19 = vmax.f32 %v2232_v17, %v2235_v20 }
 0x60a   : > { %v2265_v30 = vld [vmem:[#allocation4 + $0x59] ss:$5 sm:$0xf] }
 0x60b   : > { %v2244_v34 = vmax.f32 %v2238_v19, %v2241_v6  ;;  %v2489_v19 = vpack.c.b16 %v2485_v15, %v2485_v15 }
 0x60d   : > { %v2250_v18 = vmax.f32 %v2244_v34, %v2247_v26 }
 0x60f   : > { %v2256_v29 = vmax.f32 %v2250_v18, %v2253_v3  ;;  %v2486_v18 = vunpack.c.h.b16 %v2459_v38  ;;  %v3166_v3 = vld [vmem:[%s4248_s5 + $0x4] sm:$0xf] }
 0x611   : > { %v2262_v25 = vmax.f32 %v2256_v29, %v2259_v23  ;;  %v3026_v29 = vld [vmem:[%s4248_s5 + $0x8] sm:$0xf0] }
 0x613   : > { %v2268_v2 = vmax.f32 %v2262_v25, %v2265_v30  ;;  %v2490_v25 = vpack.c.b16 %v2486_v18, %v2486_v18  ;;  %v3029_v30 = vor.u32 %v3166_v3, %v3026_v29  ;;  %v2727_v29 = vld [vmem:[%s4253_s10] sm:$0x1] }
 0x615   : > { %2272 = vst.msk [vmem:[#allocation5 + $0x10] sm:$0xf] %vm2271_vm15, %v2268_v2 }
 0x61c   : > { %v2275_v5 = vld [vmem:[#allocation5 + $0x10] sm:$0xf] }
 0x61d   : > { %2278 = vxpose.xlu1.b32.end [3/3] (short) (narrow) %v2275_v5, 24 }
 0x6b1   : > { %v2292_v35 = vpop.trf.xlu1 }
 0x6b2   : > { %v2308_v8 = vpack.c.bf16 %v2292_v35, %v2292_v35 }
 0x6b4   : > { %2367 = vrot.lane.b32.xlu2 %v2308_v8, %s4302_s1  ;;  %2312 = vst.msk [vmem:[#allocation3] sm:$0xf] %vm2311_vm4, %v2308_v8 }
 0x6b9   : > { %v2293_v40 = vpop.trf.xlu1 }
 0x6ba   : > { %v4093_v44 = vpack.c.bf16 %v2293_v40, %v2293_v40 }
 0x6bc   : > { %2355 = vrot.lane.b32.xlu2 %v2308_v8, %s4303_s2  ;;  %2321 = vrot.lane.b32.xlu1 %v4093_v44, %s4293_s22  ;;  %2313 = vst.msk [vmem:[#allocation3 + $0x4] sm:$0xf] %vm2311_vm4, %v4093_v44 }
 0x6c1   : > { %v2294_v47 = vpop.trf.xlu1 }
 0x6c2   : > { %v2310_v48 = vpack.c.bf16 %v2294_v47, %v2294_v47 }
 0x6c3   : > { %v3151_v7 = vld [vmem:[#allocation3] sm:$0xff] }
 0x6c4   : > { %2391 = vrot.lane.b32.xlu1 %v2308_v8, %s4304_s4  ;;  %2357 = vrot.lane.b32.xlu2 %v4093_v44, %s4303_s2  ;;  %2315 = vst.msk [vmem:[#allocation3 + $0x8] sm:$0x3] %vm2314_vm1, %v2310_v48 }
 0x6c5   : > { %2335 = vrot.lane.b32.xlu0 %v2310_v48, %s4294_s25 }
 0x6cc   : > { %2381 = vrot.lane.b32.xlu1 %v4093_v44, %s4292_s29  ;;  %2345 = vrot.lane.b32.xlu2 %v4093_v44, %s4298_s15 }
 0x6d4   : > { %2371 = vrot.lane.b32.xlu1 %v2310_v48, %s4302_s1  ;;  %2359 = vrot.lane.b32.xlu2 %v2310_v48, %s4303_s2 }
 0x6dc   : > { %2470 = vperm.xlu1 %3240, %v2461_v49   ;;  %2347 = vrot.lane.b32.xlu2 %v2310_v48, %s4298_s15 }
 0x6e4   : > { %2343 = vrot.lane.b32.xlu2 %v2308_v8, %s4298_s15 }
 0x6ec   : > { %2331 = vrot.lane.b32.xlu2 %v2308_v8, %s4294_s25 }
 0x6f4   : > { %2333 = vrot.lane.b32.xlu2 %v4093_v44, %s4294_s25  ;;  %s378_s25 = scalar_lea.vmem [#allocation7], %s377_s13 }
 0x6f5   : > { %s2776_s15 = sshll.u32 %s378_s25, 4  ;;  %s2777_s15 = int_to_ptr.vmem [resolvable:$true] %s2776_s15 }
 0x6fc   : > { %2319 = vrot.lane.b32.xlu2 %v2308_v8, %s4293_s22 }
 0x704   : > { %2417 = vrot.lane.b32.xlu2 %v4093_v44, %s4288_s24 }
 0x70c   : > { %2415 = vrot.lane.b32.xlu2 %v2308_v8, %s4288_s24 }
 0x70e   : > { %v2368_v50 = vpop.permute.xlu2 %2367 }
 0x70f   : > { %2376 = vst.msk [vmem:[#allocation3 + $0x3c] sm:$0xf] %vm2311_vm4, %v2368_v50 }
 0x714   : > { %2403 = vrot.lane.b32.xlu2 %v2308_v8, %s4290_s12 }
 0x716   : > { %v2356_v22 = vpop.permute.xlu2 %2355 }
 0x717   : > { %2364 = vst.msk [vmem:[#allocation3 + $0x30] sm:$0xf] %vm2311_vm4, %v2356_v22 }
 0x71c   : > { %2405 = vrot.lane.b32.xlu2 %v4093_v44, %s4290_s12 }
 0x71e   : > { %v2358_v41 = vpop.permute.xlu2 %2357 }
 0x71f   : > { %2365 = vst.msk [vmem:[#allocation3 + $0x34] sm:$0xf] %vm2311_vm4, %v2358_v41 }
 0x724   : > { %2393 = vrot.lane.b32.xlu2 %v4093_v44, %s4304_s4 }
 0x726   : > { %v2346_v57 = vpop.permute.xlu2 %2345  ;;  %v3157_v53 = vld [vmem:[#allocation3 + $0x30] sm:$0xff] }
 0x727   : > { %2353 = vst.msk [vmem:[#allocation3 + $0x28] sm:$0xf] %vm2311_vm4, %v2346_v57 }
 0x72c   : > { %2379 = vrot.lane.b32.xlu2 %v2308_v8, %s4292_s29 }
 0x72e   : > { %v2360_v51 = vpop.permute.xlu2 %2359  ;;  %v2322_v36 = vpop.permute.xlu1 %2321 }
 0x72f   : > { %2366 = vst.msk [vmem:[#allocation3 + $0x38] sm:$0x3] %vm2314_vm1, %v2360_v51 }
 0x730   : > { %2329 = vst.msk [vmem:[#allocation3 + $0x10] sm:$0xf] %vm2311_vm4, %v2322_v36 }
 0x734   : > { %2323 = vrot.lane.b32.xlu2 %v2310_v48, %s4293_s22 }
 0x736   : > { %v2348_v52 = vpop.permute.xlu2 %2347  ;;  %v2392_v27 = vpop.permute.xlu1 %2391  ;;  %v3158_v24 = vld [vmem:[#allocation3 + $0x38] sm:$0xff] }
 0x737   : > { %2354 = vst.msk [vmem:[#allocation3 + $0x2c] sm:$0x3] %vm2314_vm1, %v2348_v52  ;;  %v2336_v9 = vpop.permute.xlu0 %2335  ;;  %2589 = vmatpush.bf16.msrb.mxu3 %v3158_v24 }
 0x738   : > { %2400 = vst.msk [vmem:[#allocation3 + $0x54] sm:$0xf] %vm2311_vm4, %v2392_v27 }
 0x739   : > { %2342 = vst.msk [vmem:[#allocation3 + $0x20] sm:$0x3] %vm2314_vm1, %v2336_v9 }
 0x73b   : > { %2590 = vmatpush.bf16.msrb.mxu3 %v3157_v53 }
 0x73c   : > { %2419 = vrot.lane.b32.xlu2 %v2310_v48, %s4288_s24 }
 0x73e   : > { %v2344_v54 = vpop.permute.xlu2 %2343  ;;  %v2382_v37 = vpop.permute.xlu1 %2381  ;;  %v3156_v55 = vld [vmem:[#allocation3 + $0x28] sm:$0xff] }
 0x73f   : > { %2352 = vst.msk [vmem:[#allocation3 + $0x24] sm:$0xf] %vm2311_vm4, %v2344_v54  ;;  %2591 = vmatpush.bf16.msrb.mxu3 %v3156_v55  ;;  %v2690_v54 = vld [vmem:[%s4250_s7 + $0x8] sm:$0x3] }
 0x740   : > { %2389 = vst.msk [vmem:[#allocation3 + $0x4c] sm:$0xf] %vm2311_vm4, %v2382_v37  ;;  %v2697_v37 = vunpack.c.l.b16 %v2690_v54 }
 0x742   : > { %v2699_v55 = vpack.c.b16 %v2697_v37, %v2697_v37 }
 0x744   : > { %2407 = vrot.lane.b32.xlu2 %v2310_v48, %s4290_s12  ;;  %s2774_s12 = scalar_lea.hbm %s4254_s11, %s3407_s21 }
 0x745   : > { %s2778_s16 = sshll.u32 %s2774_s12, 4  ;;  %s2779_s16 = int_to_ptr.hbm [resolvable:$true] %s2778_s16 }
 0x746   : > { %v2332_v63 = vpop.permute.xlu2 %2331  ;;  %v2372_v59 = vpop.permute.xlu1 %2371  ;;  %v3155_v31 = vld [vmem:[#allocation3 + $0x20] sm:$0xff]  ;;  %s3256_s14 = sshra.s32 %s2779_s16, 4  ;;  %s3257_s14 = int_to_ptr.hbm [resolvable:$true] %s3256_s14 }
 0x747   : > { %2340 = vst.msk [vmem:[#allocation3 + $0x18] sm:$0xf] %vm2311_vm4, %v2332_v63  ;;  %2592 = vmatpush.bf16.msrb.mxu3 %v3155_v31  ;;  %v2706_v63 = vsel %vm2704_vm6, %v2699_v55, 0  ;;  %p3263_p0 = scmp.lt.s32.totalorder %s3257_s14, %s4254_s11 }
 0x748   : > { %2378 = vst.msk [vmem:[#allocation3 + $0x44] sm:$0x3] %vm2314_vm1, %v2372_v59  ;;  %2714 = vmatpush.bf16.msra.mxu1 %v2706_v63  ;;  %v3168_v59 = vld [vmem:[%s4250_s7] sm:$0xff] }
 0x74c   : > { %2395 = vrot.lane.b32.xlu2 %v2310_v48, %s4304_s4  ;;  %2715 = vmatpush.bf16.msra.mxu1 %v3168_v59  ;;  %s3262_s4 = scalar_lea.hbm %s4254_s11, 2 }
 0x74e   : > { %v2334_v56 = vpop.permute.xlu2 %2333  ;;  %v2471_v50 = vpop.permute.xlu1 %2470 }
 0x74f   : > { %2341 = vst.msk [vmem:[#allocation3 + $0x1c] sm:$0xf] %vm2311_vm4, %v2334_v56 }
 0x754   : > { %2383 = vrot.lane.b32.xlu2 %v2310_v48, %s4292_s29 }
 0x756   : > { %v2320_v42 = vpop.permute.xlu2 %2319  ;;  %v3154_v12 = vld [vmem:[#allocation3 + $0x18] sm:$0xff] }
 0x757   : > { %2328 = vst.msk [vmem:[#allocation3 + $0xc] sm:$0xf] %vm2311_vm4, %v2320_v42  ;;  %2593 = vmatpush.bf16.msrb.mxu3 %v3154_v12 }
 0x75c   : > { %2369 = vrot.lane.b32.xlu2 %v4093_v44, %s4302_s1  ;;  %s3258_s1 = scalar_lea.hbm %s3257_s14, 1 }
 0x75d   : > { %p3259_p11 = scmp.ne.s32.totalorder %s3257_s14, %s3258_s1  ;;  %p3264_p1 = scmp.lt.s32.totalorder %s3262_s4, %s3258_s1 }
 0x75e   : > { %v2418_v58 = vpop.permute.xlu2 %2417  ;;  %v3152_v13 = vld [vmem:[#allocation3 + $0x8] sm:$0xff] }
 0x75f   : > { %2425 = vst.msk [vmem:[#allocation3 + $0x70] sm:$0xf] %vm2311_vm4, %v2418_v58  ;;  %p3260_p12 = pnand %p3259_p11, %p3424_p5  ;;  %p3265_p2 = por %p3264_p1, %p3263_p0 }
 0x761   : > { %p3261_p13 = pneg %p3260_p12 }
 0x763   : > { %p3266_p3 = pnand %p3265_p2, %p3261_p13 }
 0x764   : > { %2465 = vperm.xlu2 %3241, %v2460_v33  }
 0x766   : > { %v2416_v60 = vpop.permute.xlu2 %2415 }
 0x767   : > { %2424 = vst.msk [vmem:[#allocation3 + $0x6c] sm:$0xf] %vm2311_vm4, %v2416_v60 }
 0x76c   : > { %2475 = vperm.xlu2 %3241, %v2462_v10  }
 0x76e   : > { %v2404_v62 = vpop.permute.xlu2 %2403 }
 0x76f   : > { %2412 = vst.msk [vmem:[#allocation3 + $0x60] sm:$0xf] %vm2311_vm4, %v2404_v62 }
 0x776   : > { %v2406_v46 = vpop.permute.xlu2 %2405 }
 0x777   : > { %2413 = vst.msk [vmem:[#allocation3 + $0x64] sm:$0xf] %vm2311_vm4, %v2406_v46  ;;  %v2726_v46 = vld [vmem:[%s4252_s9 + $0x10] sm:$0xf] }
 0x77e   : > { %v2394_v61 = vpop.permute.xlu2 %2393  ;;  %v3163_v14 = vld [vmem:[#allocation3 + $0x60] sm:$0xff] }
 0x77f   : > { %2401 = vst.msk [vmem:[#allocation3 + $0x58] sm:$0xf] %vm2311_vm4, %v2394_v61 }
 0x786   : > { %v2380_v0 = vpop.permute.xlu2 %2379 }
 0x787   : > { %2388 = vst.msk [vmem:[#allocation3 + $0x48] sm:$0xf] %vm2311_vm4, %v2380_v0  ;;  %v2737_v0 = vunpack.c.l.b16 %v2726_v46 }
 0x78e   : > { %v2324_v32 = vpop.permute.xlu2 %2323  ;;  %v3160_v26 = vld [vmem:[#allocation3 + $0x48] sm:$0xff] }
 0x78f   : > { %2330 = vst.msk [vmem:[#allocation3 + $0x14] sm:$0x3] %vm2314_vm1, %v2324_v32 }
 0x796   : > { %v2420_v11 = vpop.permute.xlu2 %2419  ;;  %v3153_v28 = vld [vmem:[#allocation3 + $0x10] sm:$0xff] }
 0x797   : > { %2426 = vst.msk [vmem:[#allocation3 + $0x74] sm:$0x3] %vm2314_vm1, %v2420_v11  ;;  %2594 = vmatpush.bf16.msrb.mxu3 %v3153_v28  ;;  %v2740_v28 = vpack.c.b16 %v2737_v0, %v2737_v0 }
 0x799   : > { %v2749_v1 = vsel %vm428_vm0, %v2740_v28, 0  ;;  %vm2743_vm0 = vcmask 326656  }
 0x79a   : > { %2756 = vmatpush.bf16.msra.mxu2 %v2749_v1 }
 0x79b   : > { %2595 = vmatpush.bf16.msrb.mxu3 %v3152_v13 }
 0x79e   : > { %v2408_v4 = vpop.permute.xlu2 %2407  ;;  %v3165_v45 = vld [vmem:[#allocation3 + $0x70] sm:$0xff] }
 0x79f   : > { %2414 = vst.msk [vmem:[#allocation3 + $0x68] sm:$0x3] %vm2314_vm1, %v2408_v4  ;;  %2596 = vmatpush.bf16.msrb.mxu3 %v3151_v7  ;;  %2608 = vmatpush.bf16.msra.mxu0 %v3165_v45  ;;  %v3170_v7 = vld [vmem:[%s4252_s9 + $0x8] sm:$0xff] }
 0x7a0   : > { %2757 = vmatpush.bf16.msra.mxu2 %v3170_v7 }
 0x7a2   : > { %2597 = vmatmul.bf16.vlgmr.msrb.gmra.mxu3 %v3025_v21 }
 0x7a3   : > { %3171 = vmatpush.bf16.msra.mxu3 %v3165_v45 }
 0x7a6   : > { %v2396_v39 = vpop.permute.xlu2 %2395  ;;  %v3164_v16 = vld [vmem:[#allocation3 + $0x68] sm:$0xff] }
 0x7a7   : > { %2402 = vst.msk [vmem:[#allocation3 + $0x5c] sm:$0x3] %vm2314_vm1, %v2396_v39  ;;  %2609 = vmatpush.bf16.msra.mxu0 %v3164_v16  ;;  %3172 = vmatpush.bf16.msra.mxu3 %v3164_v16 }
 0x7ab   : > { %2610 = vmatpush.bf16.msra.mxu0 %v3163_v14  ;;  %3173 = vmatpush.bf16.msra.mxu3 %v3163_v14 }
 0x7ae   : > { %v2384_v17 = vpop.permute.xlu2 %2383  ;;  %v3162_v20 = vld [vmem:[#allocation3 + $0x58] sm:$0xff] }
 0x7af   : > { %2390 = vst.msk [vmem:[#allocation3 + $0x50] sm:$0x3] %vm2314_vm1, %v2384_v17  ;;  %2611 = vmatpush.bf16.msra.mxu0 %v3162_v20  ;;  %3174 = vmatpush.bf16.msra.mxu3 %v3162_v20 }
 0x7b2   : > { %2602 = vmatmul.bf16.gmra.mxu3 %v2489_v19  ;;  %v3169_v19 = vld [vmem:[%s4252_s9] sm:$0xff] }
 0x7b3   : > { %2758 = vmatpush.bf16.msra.mxu2 %v3169_v19 }
 0x7b6   : > { %v2370_v6 = vpop.permute.xlu2 %2369  ;;  %v3161_v34 = vld [vmem:[#allocation3 + $0x50] sm:$0xff] }
 0x7b7   : > { %2377 = vst.msk [vmem:[#allocation3 + $0x40] sm:$0xf] %vm2311_vm4, %v2370_v6  ;;  %2612 = vmatpush.bf16.msra.mxu0 %v3161_v34  ;;  %3175 = vmatpush.bf16.msra.mxu3 %v3161_v34  ;;  %v2691_v6 = vld [vmem:[%s4251_s8] sm:$0x1] }
 0x7bb   : > { %2613 = vmatpush.bf16.msra.mxu0 %v3160_v26  ;;  %3176 = vmatpush.bf16.msra.mxu3 %v3160_v26 }
 0x7be   : > { %v3159_v23 = vld [vmem:[#allocation3 + $0x40] sm:$0xff]  ;;  %v2466_v8 = vpop.permute.xlu2 %2465 }
 0x7bf   : > { %2614 = vmatpush.bf16.msra.mxu0 %v3159_v23  ;;  %3177 = vmatpush.bf16.msra.mxu3 %v3159_v23 }
 0x7c2   : > { %3090 = vmatmul.msk.bf16.vlgmr.msra.gmra.mxu0 %vm4305_vm3, %v3029_v30  ;;  %3091 = vmatmul.msk.bf16.vlgmr.msra.gmra.mxu3 %vm4306_vm8, %v2490_v25 }
 0x7c6   : > { %v2476_v52 = vpop.permute.xlu2 %2475 }
 0x825   : > { %v2598_v2 = vpop.f32.mrf.mxu3 }
 0x826   : > { %v2599_v44 = vadd.f32 %v2598_v2, %v2466_v8 }
 0x82d   : > { %v2600_v5 = vpop.f32.mrf.mxu3 }
 0x82e   : > { %v2601_v41 = vadd.f32 %v2600_v5, %v2471_v50 }
 0x835   : > { %v2603_v35 = vpop.f32.mrf.mxu3 }
 0x836   : > { %v2604_v27 = vadd.f32 %v2603_v35, %v2476_v52 }
 0x83d   : > { %v2605_v40 = vpop.f32.mrf.mxu3 }
 0x83f   : > { %v2616_v47 = vpop.f32.mrf.mxu0 }
 0x840   : > { %v2617_v48 = vadd.f32 %v2616_v47, %v2599_v44 }
 0x842   : > { %v2625_v49 = vmax.f32 %v2617_v48, 0.0 }
 0x844   : > { %2628 = vxpose.xlu1.b32.start [1/3] (short) (narrow) %v2625_v49, 16 }
 0x845   : > { %v2621_v22 = vpop.f32.mrf.mxu3 }
 0x846   : > { %v2622_v9 = vadd.f32 %v2621_v22, %v2604_v27 }
 0x847   : > { %v2618_v57 = vpop.f32.mrf.mxu0 }
 0x848   : > { %v2619_v51 = vadd.f32 %v2618_v57, %v2601_v41  ;;  %v2627_v53 = vmax.f32 %v2622_v9, 0.0 }
 0x84a   : > { %v2626_v36 = vmax.f32 %v2619_v51, 0.0 }
 0x84c   : > { %2629 = vxpose.xlu1.b32.cont [2/3] (short) (narrow) %v2626_v36, 16 }
 0x84d   : > { %v2623_v24 = vpop.f32.mrf.mxu3 }
 0x854   : > { %2630 = vxpose.xlu1.b32.end [3/3] (short) (narrow) %v2627_v53, 16 }
 0x8e8   : > { %v2644_v31 = vpop.trf.xlu1 }
 0x8e9   : > { %2660 = vst.msk [vmem:[#allocation4] sm:$0xff] %vm1134_vm2, %v2644_v31 }
 0x8f0   : > { %v2645_v56 = vpop.trf.xlu1  ;;  %v2662_v42 = vld [vmem:[#allocation4] ss:$5 sm:$0x1]  ;;  %v2663_v12 = vld [vmem:[#allocation4 + $0x1] ss:$5 sm:$0x1] }
 0x8f1   : > { %2661 = vst.msk [vmem:[#allocation4 + $0x8] sm:$0x7] %vm1785_vm9, %v2645_v56  ;;  %v2664_v58 = vmax.f32 %v2662_v42, %v2663_v12  ;;  %v2665_v33 = vld [vmem:[#allocation4 + $0x2] ss:$5 sm:$0x1] }
 0x8f2   : > { %v2667_v10 = vld [vmem:[#allocation4 + $0x3] ss:$5 sm:$0x1]  ;;  %v2669_v61 = vld [vmem:[#allocation4 + $0x4] ss:$5 sm:$0x1] }
 0x8f3   : > { %v2666_v60 = vmax.f32 %v2664_v58, %v2665_v33  ;;  %v2671_v11 = vld [vmem:[#allocation4 + $0x5] ss:$5 sm:$0x1]  ;;  %v2673_v43 = vld [vmem:[#allocation4 + $0x6] ss:$5 sm:$0x1] }
 0x8f4   : > { %v2675_v45 = vld [vmem:[#allocation4 + $0x7] ss:$5 sm:$0x1] }
 0x8f5   : > { %v2668_v62 = vmax.f32 %v2666_v60, %v2667_v10 }
 0x8f7   : > { %v2670_v32 = vmax.f32 %v2668_v62, %v2669_v61 }
 0x8f8   : > { %v2677_v21 = vld [vmem:[#allocation4 + $0x8] ss:$5 sm:$0x1]  ;;  %v2679_v38 = vld [vmem:[#allocation4 + $0x9] ss:$5 sm:$0x1] }
 0x8f9   : > { %v2672_v13 = vmax.f32 %v2670_v32, %v2671_v11 }
 0x8fb   : > { %v2674_v4 = vmax.f32 %v2672_v13, %v2673_v43 }
 0x8fd   : > { %v2676_v39 = vmax.f32 %v2674_v4, %v2675_v45 }
 0x8ff   : > { %v2678_v16 = vmax.f32 %v2676_v39, %v2677_v21 }
 0x901   : > { %v2680_v14 = vmax.f32 %v2678_v16, %v2679_v38 }
 0x903   : > { %2682 = vst.msk [vmem:[#allocation5] sm:$0x1] %vm2681_vm7, %v2680_v14 }
 0x90a   : > { %v2683_v15 = vld [vmem:[#allocation5] sm:$0x1] }
 0x90b   : > { %2685 = vst.msk [vmem:[#allocation6] sm:$0x1] %vm2681_vm7, %v2683_v15 }
 0x912   : > { %v2686_v17 = vld [vmem:[#allocation6] sm:$0x1] }
 0x913   : > { %v2687_v20 = vpack.c.bf16 %v2686_v17, %v2686_v17 }
 0x915   : > { %3096 = vmatmul.msk.bf16.vlgmr.msra.gmra.mxu1 %vm1134_vm2, %v2687_v20 }
 0x992   : > { %v2717_v34 = vpop.f32.mrf.mxu1 }
 0x993   : > { %v2718_v26 = vadd.f32 %v2717_v34, %v2691_v6 }
 0x995   : > { %v2721_v18 = vpack.c.bf16 %v2718_v26, %v2718_v26 }
 0x997   : > { %3105 = vmatmul.msk.bf16.vlgmr.msra.gmra.mxu2 %vm2743_vm0, %v2721_v18 }
 0x99a   : > { %v2719_v3 = vpop.f32.mrf.mxu1 }
 0xa1a   : > { %v2760_v23 = vpop.f32.mrf.mxu2 }
 0xa1b   : > { %v2761_v25 = vadd.f32 %v2760_v23, %v2727_v29 }
 0xa1d   : > { %2764 = vst [vmem:[%s378_s25] sm:$0x1] %v2761_v25 }
 0xa1e   : > { %3269 = shalt.err (!%p3266_p3)
}
 0xa1f   : > { %3179 = dma.vmem_to_hbm [thread:$0]  (%p3424_p5), %s2777_s15, 16, %s2779_s16, %s2766_s0  }
 0xa22   : > { %v2762_v30 = vpop.f32.mrf.mxu2 }
 0xa23 PF: > { %p3185_p4 = scmp.ge.s32.totalorder %s3304_s20, 2  ;;  %s2790_s13 = sand.u32 1, %s3292_s17  }
 0xa24   : > { %s2791_s12 = scalar_lea.sflag [#allocation8], %s2790_s13 }
 0xa25   : > { %p3182_p7 = pnand %p3185_p4, %p3428_p6 }
 0xa27   : > { %p3183_p8 = pneg %p3182_p7 }
 0xa29   : > { %3287 = dma.done.wait (%p3183_p8), %s2791_s12, 16  }
 0xa2a   : > { %3289 = vsyncadd (%p3183_p8), %s2791_s12, 4294967280  ;;  %p21_p9 = scmp.ge.s32.totalorder %s3411_s23, 4   ;;  %s4307_s17 = smov %s3296_s18 }
 0xa2b   : > { %s4308_s18 = smov %s3300_s19  ;;  %s4309_s19 = smov %s3422_s26 }
 0xa2c   : > { %s4310_s20 = smov %s3411_s23  ;;  %23 = sbr.rel (!%p21_p9) target bundleno = 8 (0x8), region = 250 }
 0xa31   :  { %2796 = vsyncpa [#allocation8], 1 }
 0xa32   :  { %2798 = vsyncpa [#allocation8 + $0x1], 1 }

</bundles_post_ra>
